<compile_context>
chip_gen: v7x
topology: tpu7x:2x2x1
jax: 0.10.0
libtpu: 0.0.40
codegen_flags: <defaults>
</compile_context>

<pallas_src>
import math

import jax
import jax.numpy as jnp
import numpy as np
from jax.experimental import pallas as pl
from jax.experimental.pallas import tpu as pltpu

# ---------------- configuration (small, consistent with the module) ----------------
B = 2            # batch
IN_CH = 4        # input_channels
H = W = 16       # spatial
HQ = WQ = H // 2 # spatial after MaxPool(3, 2, 1)
CS = 16          # conv_starts (scaled down from 64)
SQ = 8           # squeeze_start
EF = 16          # ef_start  (mid/"feat" channels = 2*EF)
NUM_WEATHER = 4  # WeatherClassifyHead(..., 4)

N_FULL = H * W   # 256 lanes
N_Q = HQ * WQ    # 64 lanes

_DOT_DT = jnp.bfloat16   # MXU operand dtype (v6e/v7x native); accumulation stays f32

# Constant 0/1 matrices (exact in bf16): stride-2 window selection for the pool and
# x2 nearest-neighbour replication for the DeFire upsample (tiny MXU matmuls in-kernel).
_SELT_NP = np.zeros((N_FULL, N_Q), np.float32)          # dense(CS,256) @ SELT -> (CS,64)
for _i in range(HQ):
    for _j in range(WQ):
        _SELT_NP[(2 * _i) * W + 2 * _j, _i * WQ + _j] = 1.0
_REPT_NP = np.zeros((N_Q, N_FULL), np.float32)          # dsq(SQ,64) @ REPT -> (SQ,256)
for _h in range(H):
    for _w in range(W):
        _REPT_NP[(_h // 2) * WQ + (_w // 2), _h * W + _w] = 1.0


# ================================ in-kernel helpers ================================

def _edge_masks(n, w):
    # multiplicative 0/1 masks (f32) zeroing the left / right image column
    col = jax.lax.broadcasted_iota(jnp.int32, (1, n), 1) % w
    not_left = (col != 0).astype(jnp.float32)
    not_right = (col != (w - 1)).astype(jnp.float32)
    return not_left, not_right


def _shift(x, dh, dw, w, masks):
    # out[:, h*w + w_] = x[:, (h+dh)*w + (w_+dw)] with exact zero padding at borders.
    # Lane shift via slice + zero-concat handles the h border; the 0/1 column mask
    # handles the w border (wrap across rows).
    n = x.shape[-1]
    s = dh * w + dw
    if s == 0:
        y = x
    elif s > 0:
        y = jnp.concatenate([x[:, s:], jnp.zeros((x.shape[0], s), x.dtype)], axis=1)
    else:
        y = jnp.concatenate([jnp.zeros((x.shape[0], -s), x.dtype), x[:, :n + s]], axis=1)
    if dw == -1:
        y = y * masks[0]
    elif dw == 1:
        y = y * masks[1]
    return y


def _conv3x3(x, w, masks, w9t_ref, b_ref, relu=True):
    # 3x3 conv (pad=1) as ONE im2col matmul: (Cout, 9*Cin) @ (9*Cin, N), f32 accumulate.
    taps = [_shift(x, kh - 1, kw - 1, w, masks)
            for kh in range(3) for kw in range(3)]
    x9 = jnp.concatenate(taps, axis=0).astype(_DOT_DT)       # (9*Cin, N)
    y = jnp.dot(w9t_ref[...], x9,
                preferred_element_type=jnp.float32) + b_ref[...]
    return jnp.maximum(y, 0.0) if relu else y


def _pool3x3(x, w, masks):
    # stride-1 3x3 max pool; zero padding == -inf padding because inputs are >= 0.
    m = x
    for kh in range(3):
        for kw in range(3):
            if kh == 1 and kw == 1:
                continue
            m = jnp.maximum(m, _shift(x, kh - 1, kw - 1, w, masks))
    return m


def _mm(x, w_ref, b_ref, act=None):
    # 1x1 conv / linear: (Cout, Cin) @ (Cin, N) + (Cout, 1); weights pre-cast to bf16.
    y = jnp.dot(w_ref[...], x.astype(_DOT_DT),
                preferred_element_type=jnp.float32) + b_ref[...]
    if act == "relu":
        return jnp.maximum(y, 0.0)
    if act == "sigmoid":
        return jax.nn.sigmoid(y)
    return y


def _cam(x, pooled, w1_ref, b1_ref, w2_ref, b2_ref):
    # TODO(synk): md.ContextAggregation internals unknown; SqueezeSegV2-style CAM gate.
    g = _mm(_mm(pooled, w1_ref, b1_ref, act="relu"), w2_ref, b2_ref)
    return x * jax.nn.sigmoid(g)


# ================================ fused kernel ================================

def _fused_kernel(
        x_ref,
        scw_ref, scb_ref,                                   # start Conv3x3
        c0w1_ref, c0b1_ref, c0w2_ref, c0b2_ref,             # CAM 0
        s11w_ref, s11b_ref,                                 # start Conv1x1
        f1sw_ref, f1sb_ref, f1ew_ref, f1eb_ref,             # Fire 1 (folded expand)
        f2sw_ref, f2sb_ref, f2ew_ref, f2eb_ref,             # Fire 2 (folded expand)
        c1w1_ref, c1b1_ref, c1w2_ref, c1b2_ref,             # CAM 1
        dfsw_ref, dfsb_ref, dfew_ref, dfeb_ref,             # DeFire (folded expand)
        hwx_ref, hwr_ref, hb_ref,                           # reflectivity head (split)
        www_ref, wwb_ref,                                   # weather head
        selt_ref, rept_ref,                                 # pool-select / upsample matrices
        reflect_ref, weather_ref):                          # outputs
    mks_full = _edge_masks(N_FULL, W)                       # masks for (*, 256) planes
    mks_q = _edge_masks(N_Q, WQ)                            # masks for (*, 64) planes

    x = x_ref[0]                                            # (IN_CH, 256)  f32

    # ---- start: Conv3x3 + ReLU ----
    # TODO(synk): md.Conv(_, _, 3, 1, 2) padding semantics unknown; SAME (pad=1) used.
    s1 = _conv3x3(x, W, mks_full, scw_ref, scb_ref)         # (CS, 256)

    # ---- start: ContextAggregation ----
    s2 = _cam(s1, _pool3x3(s1, W, mks_full),
              c0w1_ref, c0b1_ref, c0w2_ref, c0b2_ref)       # (CS, 256)

    # ---- start: Conv1x1 + ReLU -> pre_add (residual source) ----
    pre_add = _mm(s2, s11w_ref, s11b_ref, act="relu")       # (CS, 256)

    # ---- MaxPool2d(3, stride=2, padding=1): dense 3x3 max + bf16 0/1 selection dot ----
    dense = _pool3x3(pre_add, W, mks_full)                  # (CS, 256)
    xq = jnp.dot(dense.astype(_DOT_DT), selt_ref[...],
                 preferred_element_type=jnp.float32)         # (CS, 64)

    # ---- SqueezePart: Fire x2 (+expand-1x1 folded into 3x3 centre tap), CAM ----
    # TODO(synk): md.SqueezePartRaw internals unknown; squeeze_depth fires + cam_depth CAM.
    s = _mm(xq, f1sw_ref, f1sb_ref, act="relu")             # (SQ, 64)
    xq = _conv3x3(s, WQ, mks_q, f1ew_ref, f1eb_ref)         # (2*EF, 64)

    s = _mm(xq, f2sw_ref, f2sb_ref, act="relu")             # (SQ, 64)
    xq = _conv3x3(s, WQ, mks_q, f2ew_ref, f2eb_ref)         # (2*EF, 64)

    mid = _cam(xq, _pool3x3(xq, WQ, mks_q),
               c1w1_ref, c1b1_ref, c1w2_ref, c1b2_ref)      # (2*EF, 64)  == "mid"

    # ---- weather head: GAP + linear (VPU multiply + sublane reduce, no M=1 dot) ----
    # TODO(synk): WeatherClassifyHead internals unknown; GAP + linear -> 4 approximation.
    gap = jnp.mean(mid, axis=1, keepdims=True)              # (2*EF, 1)
    weather_ref[0] = (jnp.sum(www_ref[...] * gap, axis=0, keepdims=True)
                      + wwb_ref[...])                       # (1, NUM_WEATHER)

    # ---- DeFire: squeeze 1x1 -> x2 upsample (bf16 replication dot) -> folded expand ----
    # TODO(synk): DeFire transposed-conv upsample approximated by nearest x2 upsample.
    dsq = _mm(mid, dfsw_ref, dfsb_ref, act="relu")          # (SQ, 64)
    up = jnp.dot(dsq.astype(_DOT_DT), rept_ref[...],
                 preferred_element_type=jnp.float32)         # (SQ, 256)
    insides = _conv3x3(up, W, mks_full, dfew_ref, dfeb_ref)  # (CS, 256)

    feat = pre_add + insides                                # Dropout2d -> identity (eval)

    # ---- reflectivity head: concat(x, feat) @ w == sublane-reduced VPU products ----
    # TODO(synk): head_cls unknown; concat(x, feat) -> 1x1 conv -> 1 channel approximation.
    r = (jnp.sum(x * hwx_ref[...], axis=0, keepdims=True)
         + jnp.sum(feat * hwr_ref[...], axis=0, keepdims=True)
         + hb_ref[...])                                     # (1, 256)
    reflect_ref[0] = r


# ================================ parameters ================================

def _init_linear(key, cin, cout):
    kw, kb = jax.random.split(key)
    w = jax.random.normal(kw, (cin, cout), jnp.float32) * (1.0 / math.sqrt(cin))
    b = jax.random.normal(kb, (1, cout), jnp.float32) * 0.01
    return w, b


def _init_conv3(key, cin, cout):
    kw, kb = jax.random.split(key)
    w = jax.random.normal(kw, (3, 3, cin, cout), jnp.float32) * (1.0 / math.sqrt(9 * cin))
    b = jax.random.normal(kb, (1, cout), jnp.float32) * 0.01
    return w, b


def init_params(key):
    ks = jax.random.split(key, 16)
    cs, sq, ef = CS, SQ, EF
    p = {}
    # start: Conv3x3 -> ContextAggregation -> Conv1x1
    p['start_conv_w'], p['start_conv_b'] = _init_conv3(ks[0], IN_CH, cs)
    p['cam0_w1'], p['cam0_b1'] = _init_linear(ks[1], cs, cs // 2)
    p['cam0_w2'], p['cam0_b2'] = _init_linear(ks[2], cs // 2, cs)
    p['start_1x1_w'], p['start_1x1_b'] = _init_linear(ks[3], cs, cs)
    # squeeze part: fire x2 (squeeze_depth=2) + CAM x1 (cam_depth=1)
    p['f1_sq_w'], p['f1_sq_b'] = _init_linear(ks[4], cs, sq)
    p['f1_e1_w'], p['f1_e1_b'] = _init_linear(ks[5], sq, ef)
    p['f1_e3_w'], p['f1_e3_b'] = _init_conv3(ks[6], sq, ef)
    p['f2_sq_w'], p['f2_sq_b'] = _init_linear(ks[7], 2 * ef, sq)
    p['f2_e1_w'], p['f2_e1_b'] = _init_linear(ks[8], sq, ef)
    p['f2_e3_w'], p['f2_e3_b'] = _init_conv3(ks[9], sq, ef)
    p['cam1_w1'], p['cam1_b1'] = _init_linear(ks[10], 2 * ef, ef)
    p['cam1_w2'], p['cam1_b2'] = _init_linear(ks[11], ef, 2 * ef)
    # DeFire(2*ef_start, squeeze_start, conv_starts/2)
    p['df_sq_w'], p['df_sq_b'] = _init_linear(ks[12], 2 * ef, sq)
    p['df_e1_w'], p['df_e1_b'] = _init_linear(ks[13], sq, cs // 2)
    p['df_e3_w'], p['df_e3_b'] = _init_conv3(ks[14], sq, cs // 2)
    # heads
    kh1, kh2 = jax.random.split(ks[15])
    p['head_w'], p['head_b'] = _init_linear(kh1, IN_CH + cs, 1)
    p['weather_w'], p['weather_b'] = _init_linear(kh2, 2 * ef, NUM_WEATHER)
    return p


# -------- host-side weight prep (transposed + bf16 for the (C, N) kernel layout) --------

def _t_bf16(w):                      # (cin, cout) -> (cout, cin) bf16
    return w.T.astype(jnp.bfloat16)


def _bcol(b):                        # (1, cout) -> (cout, 1) f32 (broadcast along lanes)
    return b.reshape(-1, 1).astype(jnp.float32)


def _conv_t(w):                      # (3,3,cin,cout) -> (cout, 9*cin) bf16, tap-major rows
    cin, cout = w.shape[2], w.shape[3]
    return w.reshape(9 * cin, cout).T.astype(jnp.bfloat16)


def _fold_expand_t(w1x1, b1x1, w3, b3):
    # Fold expand-1x1 into the centre tap of expand-3x3 (identical to conv1x1 || conv3x3
    # followed by channel concat).  Output: (E1+E3, 9*Cin) bf16, (E1+E3, 1) f32.
    cin, e1 = w1x1.shape
    e3 = w3.shape[-1]
    w3r = w3.reshape(9, cin, e3)
    left = jnp.zeros((9, cin, e1), jnp.float32).at[4].set(w1x1)
    w9 = jnp.concatenate([left, w3r], axis=-1)                       # (9, cin, e1+e3)
    w9t = w9.reshape(9 * cin, e1 + e3).T.astype(jnp.bfloat16)        # (e1+e3, 9*cin)
    b = jnp.concatenate([b1x1.reshape(-1), b3.reshape(-1)])[:, None].astype(jnp.float32)
    return w9t, b


def _wspec(a):
    nd = a.ndim
    return pl.BlockSpec(a.shape, lambda b, _nd=nd: (0,) * _nd)


# ================================ forward ================================

@jax.jit
def forward(params, x_nchw):
    p = params
    # Consume NCHW directly: per batch element the layout is already (C, H*W).
    x2d = x_nchw.astype(jnp.float32).reshape(B, IN_CH, N_FULL)
    # reduce=1 => replicate-pad branch in SqueezeSegBoneRaw.forward never triggers.

    scw, scb = _conv_t(p['start_conv_w']), _bcol(p['start_conv_b'])
    c0w1, c0b1 = _t_bf16(p['cam0_w1']), _bcol(p['cam0_b1'])
    c0w2, c0b2 = _t_bf16(p['cam0_w2']), _bcol(p['cam0_b2'])
    s11w, s11b = _t_bf16(p['start_1x1_w']), _bcol(p['start_1x1_b'])
    f1sw, f1sb = _t_bf16(p['f1_sq_w']), _bcol(p['f1_sq_b'])
    f1ew, f1eb = _fold_expand_t(p['f1_e1_w'], p['f1_e1_b'], p['f1_e3_w'], p['f1_e3_b'])
    f2sw, f2sb = _t_bf16(p['f2_sq_w']), _bcol(p['f2_sq_b'])
    f2ew, f2eb = _fold_expand_t(p['f2_e1_w'], p['f2_e1_b'], p['f2_e3_w'], p['f2_e3_b'])
    c1w1, c1b1 = _t_bf16(p['cam1_w1']), _bcol(p['cam1_b1'])
    c1w2, c1b2 = _t_bf16(p['cam1_w2']), _bcol(p['cam1_b2'])
    dfsw, dfsb = _t_bf16(p['df_sq_w']), _bcol(p['df_sq_b'])
    dfew, dfeb = _fold_expand_t(p['df_e1_w'], p['df_e1_b'], p['df_e3_w'], p['df_e3_b'])
    hwx = p['head_w'][:IN_CH].astype(jnp.float32)        # (IN_CH, 1)   VPU path, f32
    hwr = p['head_w'][IN_CH:].astype(jnp.float32)        # (CS, 1)
    hb = p['head_b'].astype(jnp.float32)                 # (1, 1)
    www = p['weather_w'].astype(jnp.float32)             # (2*EF, NUM_WEATHER)
    wwb = p['weather_b'].astype(jnp.float32)             # (1, NUM_WEATHER)
    selt = jnp.asarray(_SELT_NP, jnp.bfloat16)           # exact 0/1 in bf16
    rept = jnp.asarray(_REPT_NP, jnp.bfloat16)

    args = (
        x2d,
        scw, scb,
        c0w1, c0b1, c0w2, c0b2,
        s11w, s11b,
        f1sw, f1sb, f1ew, f1eb,
        f2sw, f2sb, f2ew, f2eb,
        c1w1, c1b1, c1w2, c1b2,
        dfsw, dfsb, dfew, dfeb,
        hwx, hwr, hb,
        www, wwb,
        selt, rept,
    )

    in_specs = [pl.BlockSpec((1, IN_CH, N_FULL), lambda b: (b, 0, 0))]
    in_specs += [_wspec(a) for a in args[1:]]

    reflect2d, weather3d = pl.pallas_call(
        _fused_kernel,
        grid=(B,),
        in_specs=in_specs,
        out_specs=(pl.BlockSpec((1, 1, N_FULL), lambda b: (b, 0, 0)),       # lane-dense
                   pl.BlockSpec((1, 1, NUM_WEATHER), lambda b: (b, 0, 0))),
        out_shape=(jax.ShapeDtypeStruct((B, 1, N_FULL), jnp.float32),
                   jax.ShapeDtypeStruct((B, 1, NUM_WEATHER), jnp.float32)),
        compiler_params=pltpu.CompilerParams(
            dimension_semantics=("parallel",)),            # v7x: batch across 2 TCs
    )(*args)

    reflect = reflect2d.reshape(B, 1, H, W)                # (B, 1, H, W)  NCHW
    weather = weather3d.reshape(B, NUM_WEATHER)
    return reflect, weather


# ================================ main ================================

if __name__ == "__main__":
    key = jax.random.PRNGKey(0)
    kparams, kx = jax.random.split(key)
    params = init_params(kparams)
    x = jax.random.normal(kx, (B, IN_CH, H, W), jnp.float32)   # PyTorch NCHW input

    reflect, weather = forward(params, x)
    jax.block_until_ready(reflect)
    jax.block_until_ready(weather)

    assert reflect.shape == (B, 1, H, W)
    assert weather.shape == (B, NUM_WEATHER)
    assert bool(jnp.all(jnp.isfinite(reflect)))
    assert bool(jnp.all(jnp.isfinite(weather)))
    print("KERNEL_OK")
</pallas_src>

<mosaic_0001>
module attributes {stable_mosaic.version = 11 : i64} {
  func.func @_fused_kernel(%arg0: i32, %arg1: memref<1x4x256xf32, #tpu.memory_space<vmem>>, %arg2: memref<16x36xbf16, #tpu.memory_space<vmem>>, %arg3: memref<16x1xf32, #tpu.memory_space<vmem>>, %arg4: memref<8x16xbf16, #tpu.memory_space<vmem>>, %arg5: memref<8x1xf32, #tpu.memory_space<vmem>>, %arg6: memref<16x8xbf16, #tpu.memory_space<vmem>>, %arg7: memref<16x1xf32, #tpu.memory_space<vmem>>, %arg8: memref<16x16xbf16, #tpu.memory_space<vmem>>, %arg9: memref<16x1xf32, #tpu.memory_space<vmem>>, %arg10: memref<8x16xbf16, #tpu.memory_space<vmem>>, %arg11: memref<8x1xf32, #tpu.memory_space<vmem>>, %arg12: memref<32x72xbf16, #tpu.memory_space<vmem>>, %arg13: memref<32x1xf32, #tpu.memory_space<vmem>>, %arg14: memref<8x32xbf16, #tpu.memory_space<vmem>>, %arg15: memref<8x1xf32, #tpu.memory_space<vmem>>, %arg16: memref<32x72xbf16, #tpu.memory_space<vmem>>, %arg17: memref<32x1xf32, #tpu.memory_space<vmem>>, %arg18: memref<16x32xbf16, #tpu.memory_space<vmem>>, %arg19: memref<16x1xf32, #tpu.memory_space<vmem>>, %arg20: memref<32x16xbf16, #tpu.memory_space<vmem>>, %arg21: memref<32x1xf32, #tpu.memory_space<vmem>>, %arg22: memref<8x32xbf16, #tpu.memory_space<vmem>>, %arg23: memref<8x1xf32, #tpu.memory_space<vmem>>, %arg24: memref<16x72xbf16, #tpu.memory_space<vmem>>, %arg25: memref<16x1xf32, #tpu.memory_space<vmem>>, %arg26: memref<4x1xf32, #tpu.memory_space<vmem>>, %arg27: memref<16x1xf32, #tpu.memory_space<vmem>>, %arg28: memref<1x1xf32, #tpu.memory_space<vmem>>, %arg29: memref<32x4xf32, #tpu.memory_space<vmem>>, %arg30: memref<1x4xf32, #tpu.memory_space<vmem>>, %arg31: memref<256x64xbf16, #tpu.memory_space<vmem>>, %arg32: memref<64x256xbf16, #tpu.memory_space<vmem>>, %arg33: memref<1x1x256xf32, #tpu.memory_space<vmem>>, %arg34: memref<1x1x4xf32, #tpu.memory_space<vmem>>) attributes {dimension_semantics = [#tpu.dimension_semantics<parallel>], iteration_bounds = array<i64: 2>, scalar_prefetch = 0 : i64, scratch_operands = 0 : i64, tpu.core_type = #tpu.core_type<tc>, window_params = [{transform_indices = @transform_0, window_bounds = array<i64: 1, 4, 256>}, {pipeline_mode = #tpu.pipeline_mode<synchronous>, transform_indices = @transform_1, window_bounds = array<i64: 16, 36>}, {pipeline_mode = #tpu.pipeline_mode<synchronous>, transform_indices = @transform_2, window_bounds = array<i64: 16, 1>}, {pipeline_mode = #tpu.pipeline_mode<synchronous>, transform_indices = @transform_3, window_bounds = array<i64: 8, 16>}, {pipeline_mode = #tpu.pipeline_mode<synchronous>, transform_indices = @transform_4, window_bounds = array<i64: 8, 1>}, {pipeline_mode = #tpu.pipeline_mode<synchronous>, transform_indices = @transform_5, window_bounds = array<i64: 16, 8>}, {pipeline_mode = #tpu.pipeline_mode<synchronous>, transform_indices = @transform_6, window_bounds = array<i64: 16, 1>}, {pipeline_mode = #tpu.pipeline_mode<synchronous>, transform_indices = @transform_7, window_bounds = array<i64: 16, 16>}, {pipeline_mode = #tpu.pipeline_mode<synchronous>, transform_indices = @transform_8, window_bounds = array<i64: 16, 1>}, {pipeline_mode = #tpu.pipeline_mode<synchronous>, transform_indices = @transform_9, window_bounds = array<i64: 8, 16>}, {pipeline_mode = #tpu.pipeline_mode<synchronous>, transform_indices = @transform_10, window_bounds = array<i64: 8, 1>}, {pipeline_mode = #tpu.pipeline_mode<synchronous>, transform_indices = @transform_11, window_bounds = array<i64: 32, 72>}, {pipeline_mode = #tpu.pipeline_mode<synchronous>, transform_indices = @transform_12, window_bounds = array<i64: 32, 1>}, {pipeline_mode = #tpu.pipeline_mode<synchronous>, transform_indices = @transform_13, window_bounds = array<i64: 8, 32>}, {pipeline_mode = #tpu.pipeline_mode<synchronous>, transform_indices = @transform_14, window_bounds = array<i64: 8, 1>}, {pipeline_mode = #tpu.pipeline_mode<synchronous>, transform_indices = @transform_15, window_bounds = array<i64: 32, 72>}, {pipeline_mode = #tpu.pipeline_mode<synchronous>, transform_indices = @transform_16, window_bounds = array<i64: 32, 1>}, {pipeline_mode = #tpu.pipeline_mode<synchronous>, transform_indices = @transform_17, window_bounds = array<i64: 16, 32>}, {pipeline_mode = #tpu.pipeline_mode<synchronous>, transform_indices = @transform_18, window_bounds = array<i64: 16, 1>}, {pipeline_mode = #tpu.pipeline_mode<synchronous>, transform_indices = @transform_19, window_bounds = array<i64: 32, 16>}, {pipeline_mode = #tpu.pipeline_mode<synchronous>, transform_indices = @transform_20, window_bounds = array<i64: 32, 1>}, {pipeline_mode = #tpu.pipeline_mode<synchronous>, transform_indices = @transform_21, window_bounds = array<i64: 8, 32>}, {pipeline_mode = #tpu.pipeline_mode<synchronous>, transform_indices = @transform_22, window_bounds = array<i64: 8, 1>}, {pipeline_mode = #tpu.pipeline_mode<synchronous>, transform_indices = @transform_23, window_bounds = array<i64: 16, 72>}, {pipeline_mode = #tpu.pipeline_mode<synchronous>, transform_indices = @transform_24, window_bounds = array<i64: 16, 1>}, {pipeline_mode = #tpu.pipeline_mode<synchronous>, transform_indices = @transform_25, window_bounds = array<i64: 4, 1>}, {pipeline_mode = #tpu.pipeline_mode<synchronous>, transform_indices = @transform_26, window_bounds = array<i64: 16, 1>}, {pipeline_mode = #tpu.pipeline_mode<synchronous>, transform_indices = @transform_27, window_bounds = array<i64: 1, 1>}, {pipeline_mode = #tpu.pipeline_mode<synchronous>, transform_indices = @transform_28, window_bounds = array<i64: 32, 4>}, {pipeline_mode = #tpu.pipeline_mode<synchronous>, transform_indices = @transform_29, window_bounds = array<i64: 1, 4>}, {pipeline_mode = #tpu.pipeline_mode<synchronous>, transform_indices = @transform_30, window_bounds = array<i64: 256, 64>}, {pipeline_mode = #tpu.pipeline_mode<synchronous>, transform_indices = @transform_31, window_bounds = array<i64: 64, 256>}, {transform_indices = @transform_32, window_bounds = array<i64: 1, 1, 256>}, {transform_indices = @transform_33, window_bounds = array<i64: 1, 1, 4>}]} {
    %0 = tpu.iota {dimensions = array<i32: 1>} : vector<1x256xi32>
    %c16_i32 = arith.constant 16 : i32
    %c0_i32 = arith.constant 0 : i32
    %1 = arith.cmpi eq, %c16_i32, %c0_i32 : i32
    %c1_i32 = arith.constant 1 : i32
    %2 = arith.select %1, %c1_i32, %c16_i32 : i32
    %3 = vector.broadcast %2 : i32 to vector<1x256xi32>
    %4 = arith.remsi %0, %3 : vector<1x256xi32>
    %c0_i32_0 = arith.constant 0 : i32
    %5 = vector.broadcast %c0_i32_0 : i32 to vector<1x256xi32>
    %6 = arith.cmpi ne, %4, %5 : vector<1x256xi32>
    %c0_i32_1 = arith.constant 0 : i32
    %7 = vector.broadcast %c0_i32_1 : i32 to vector<1x256xi32>
    %8 = arith.cmpi slt, %4, %7 : vector<1x256xi32>
    %c0_i32_2 = arith.constant 0 : i32
    %9 = arith.cmpi slt, %2, %c0_i32_2 : i32
    %10 = vector.broadcast %9 : i1 to vector<1x256xi1>
    %11 = vector.broadcast %10 : vector<1x256xi1> to vector<1x256xi1>
    %12 = arith.xori %8, %11 : vector<1x256xi1>
    %13 = arith.andi %12, %6 : vector<1x256xi1>
    %14 = vector.broadcast %2 : i32 to vector<1x256xi32>
    %15 = arith.addi %4, %14 : vector<1x256xi32>
    %16 = arith.select %13, %15, %4 : vector<1x256xi1>, vector<1x256xi32>
    %c0_i32_3 = arith.constant 0 : i32
    %17 = vector.broadcast %c0_i32_3 : i32 to vector<1x256xi32>
    %18 = arith.cmpi ne, %16, %17 : vector<1x256xi32>
    %19 = arith.extui %18 : vector<1x256xi1> to vector<1x256xi32>
    %20 = arith.sitofp %19 : vector<1x256xi32> to vector<1x256xf32>
    %c15_i32 = arith.constant 15 : i32
    %21 = vector.broadcast %c15_i32 : i32 to vector<1x256xi32>
    %22 = arith.cmpi ne, %16, %21 : vector<1x256xi32>
    %23 = arith.extui %22 : vector<1x256xi1> to vector<1x256xi32>
    %24 = arith.sitofp %23 : vector<1x256xi32> to vector<1x256xf32>
    %25 = tpu.iota {dimensions = array<i32: 1>} : vector<1x64xi32>
    %c8_i32 = arith.constant 8 : i32
    %c0_i32_4 = arith.constant 0 : i32
    %26 = arith.cmpi eq, %c8_i32, %c0_i32_4 : i32
    %c1_i32_5 = arith.constant 1 : i32
    %27 = arith.select %26, %c1_i32_5, %c8_i32 : i32
    %28 = vector.broadcast %27 : i32 to vector<1x64xi32>
    %29 = arith.remsi %25, %28 : vector<1x64xi32>
    %c0_i32_6 = arith.constant 0 : i32
    %30 = vector.broadcast %c0_i32_6 : i32 to vector<1x64xi32>
    %31 = arith.cmpi ne, %29, %30 : vector<1x64xi32>
    %c0_i32_7 = arith.constant 0 : i32
    %32 = vector.broadcast %c0_i32_7 : i32 to vector<1x64xi32>
    %33 = arith.cmpi slt, %29, %32 : vector<1x64xi32>
    %c0_i32_8 = arith.constant 0 : i32
    %34 = arith.cmpi slt, %27, %c0_i32_8 : i32
    %35 = vector.broadcast %34 : i1 to vector<1x64xi1>
    %36 = vector.broadcast %35 : vector<1x64xi1> to vector<1x64xi1>
    %37 = arith.xori %33, %36 : vector<1x64xi1>
    %38 = arith.andi %37, %31 : vector<1x64xi1>
    %39 = vector.broadcast %27 : i32 to vector<1x64xi32>
    %40 = arith.addi %29, %39 : vector<1x64xi32>
    %41 = arith.select %38, %40, %29 : vector<1x64xi1>, vector<1x64xi32>
    %c0_i32_9 = arith.constant 0 : i32
    %42 = vector.broadcast %c0_i32_9 : i32 to vector<1x64xi32>
    %43 = arith.cmpi ne, %41, %42 : vector<1x64xi32>
    %44 = arith.extui %43 : vector<1x64xi1> to vector<1x64xi32>
    %45 = arith.sitofp %44 : vector<1x64xi32> to vector<1x64xf32>
    %c7_i32 = arith.constant 7 : i32
    %46 = vector.broadcast %c7_i32 : i32 to vector<1x64xi32>
    %47 = arith.cmpi ne, %41, %46 : vector<1x64xi32>
    %48 = arith.extui %47 : vector<1x64xi1> to vector<1x64xi32>
    %49 = arith.sitofp %48 : vector<1x64xi32> to vector<1x64xf32>
    %c0 = arith.constant 0 : index
    %c0_10 = arith.constant 0 : index
    %c0_11 = arith.constant 0 : index
    %50 = vector.load %arg1[%c0, %c0_10, %c0_11] : memref<1x4x256xf32, #tpu.memory_space<vmem>>, vector<1x4x256xf32>
    %51 = vector.shape_cast %50 : vector<1x4x256xf32> to vector<4x256xf32>
    %cst = arith.constant 0.000000e+00 : f32
    %52 = vector.broadcast %cst : f32 to vector<4x17xf32>
    %53 = vector.extract_strided_slice %51 {offsets = [0, 0], sizes = [4, 239], strides = [1, 1]} : vector<4x256xf32> to vector<4x239xf32>
    %54 = tpu.concatenate %52, %53 in 1 : vector<4x17xf32>, vector<4x239xf32> -> vector<4x256xf32>
    %55 = vector.broadcast %20 : vector<1x256xf32> to vector<4x256xf32>
    %56 = arith.mulf %54, %55 : vector<4x256xf32>
    %cst_12 = arith.constant 0.000000e+00 : f32
    %57 = vector.broadcast %cst_12 : f32 to vector<4x16xf32>
    %58 = vector.extract_strided_slice %51 {offsets = [0, 0], sizes = [4, 240], strides = [1, 1]} : vector<4x256xf32> to vector<4x240xf32>
    %59 = tpu.concatenate %57, %58 in 1 : vector<4x16xf32>, vector<4x240xf32> -> vector<4x256xf32>
    %cst_13 = arith.constant 0.000000e+00 : f32
    %60 = vector.broadcast %cst_13 : f32 to vector<4x15xf32>
    %61 = vector.extract_strided_slice %51 {offsets = [0, 0], sizes = [4, 241], strides = [1, 1]} : vector<4x256xf32> to vector<4x241xf32>
    %62 = tpu.concatenate %60, %61 in 1 : vector<4x15xf32>, vector<4x241xf32> -> vector<4x256xf32>
    %63 = vector.broadcast %24 : vector<1x256xf32> to vector<4x256xf32>
    %64 = arith.mulf %62, %63 : vector<4x256xf32>
    %cst_14 = arith.constant 0.000000e+00 : f32
    %65 = vector.broadcast %cst_14 : f32 to vector<4x1xf32>
    %66 = vector.extract_strided_slice %51 {offsets = [0, 0], sizes = [4, 255], strides = [1, 1]} : vector<4x256xf32> to vector<4x255xf32>
    %67 = tpu.concatenate %65, %66 in 1 : vector<4x1xf32>, vector<4x255xf32> -> vector<4x256xf32>
    %68 = vector.broadcast %20 : vector<1x256xf32> to vector<4x256xf32>
    %69 = arith.mulf %67, %68 : vector<4x256xf32>
    %70 = vector.extract_strided_slice %51 {offsets = [0, 1], sizes = [4, 255], strides = [1, 1]} : vector<4x256xf32> to vector<4x255xf32>
    %cst_15 = arith.constant 0.000000e+00 : f32
    %71 = vector.broadcast %cst_15 : f32 to vector<4x1xf32>
    %72 = tpu.concatenate %70, %71 in 1 : vector<4x255xf32>, vector<4x1xf32> -> vector<4x256xf32>
    %73 = vector.broadcast %24 : vector<1x256xf32> to vector<4x256xf32>
    %74 = arith.mulf %72, %73 : vector<4x256xf32>
    %75 = vector.extract_strided_slice %51 {offsets = [0, 15], sizes = [4, 241], strides = [1, 1]} : vector<4x256xf32> to vector<4x241xf32>
    %cst_16 = arith.constant 0.000000e+00 : f32
    %76 = vector.broadcast %cst_16 : f32 to vector<4x15xf32>
    %77 = tpu.concatenate %75, %76 in 1 : vector<4x241xf32>, vector<4x15xf32> -> vector<4x256xf32>
    %78 = vector.broadcast %20 : vector<1x256xf32> to vector<4x256xf32>
    %79 = arith.mulf %77, %78 : vector<4x256xf32>
    %80 = vector.extract_strided_slice %51 {offsets = [0, 16], sizes = [4, 240], strides = [1, 1]} : vector<4x256xf32> to vector<4x240xf32>
    %cst_17 = arith.constant 0.000000e+00 : f32
    %81 = vector.broadcast %cst_17 : f32 to vector<4x16xf32>
    %82 = tpu.concatenate %80, %81 in 1 : vector<4x240xf32>, vector<4x16xf32> -> vector<4x256xf32>
    %83 = vector.extract_strided_slice %51 {offsets = [0, 17], sizes = [4, 239], strides = [1, 1]} : vector<4x256xf32> to vector<4x239xf32>
    %cst_18 = arith.constant 0.000000e+00 : f32
    %84 = vector.broadcast %cst_18 : f32 to vector<4x17xf32>
    %85 = tpu.concatenate %83, %84 in 1 : vector<4x239xf32>, vector<4x17xf32> -> vector<4x256xf32>
    %86 = vector.broadcast %24 : vector<1x256xf32> to vector<4x256xf32>
    %87 = arith.mulf %85, %86 : vector<4x256xf32>
    %88 = tpu.concatenate %56, %59, %64, %69, %51, %74, %79, %82, %87 in 0 : vector<4x256xf32>, vector<4x256xf32>, vector<4x256xf32>, vector<4x256xf32>, vector<4x256xf32>, vector<4x256xf32>, vector<4x256xf32>, vector<4x256xf32>, vector<4x256xf32> -> vector<36x256xf32>
    %89 = arith.truncf %88 : vector<36x256xf32> to vector<36x256xbf16>
    %c0_19 = arith.constant 0 : index
    %c0_20 = arith.constant 0 : index
    %90 = vector.load %arg2[%c0_19, %c0_20] : memref<16x36xbf16, #tpu.memory_space<vmem>>, vector<16x36xbf16>
    %cst_21 = arith.constant dense<0.000000e+00> : vector<16x256xf32>
    %91 = tpu.matmul %90, %89, %cst_21 {dimension_numbers = #tpu.dot_dimension_numbers<[1], [0], [0], [1], [0, 0, 1, 1], [], []>} : vector<16x36xbf16>, vector<36x256xbf16>, vector<16x256xf32> -> vector<16x256xf32>
    %c0_22 = arith.constant 0 : index
    %c0_23 = arith.constant 0 : index
    %92 = vector.load %arg3[%c0_22, %c0_23] : memref<16x1xf32, #tpu.memory_space<vmem>>, vector<16x1xf32>
    %93 = vector.broadcast %92 : vector<16x1xf32> to vector<16x256xf32>
    %94 = arith.addf %91, %93 : vector<16x256xf32>
    %cst_24 = arith.constant 0.000000e+00 : f32
    %95 = vector.broadcast %cst_24 : f32 to vector<16x256xf32>
    %96 = arith.maximumf %94, %95 : vector<16x256xf32>
    %cst_25 = arith.constant 0.000000e+00 : f32
    %97 = vector.broadcast %cst_25 : f32 to vector<16x17xf32>
    %98 = vector.extract_strided_slice %96 {offsets = [0, 0], sizes = [16, 239], strides = [1, 1]} : vector<16x256xf32> to vector<16x239xf32>
    %99 = tpu.concatenate %97, %98 in 1 : vector<16x17xf32>, vector<16x239xf32> -> vector<16x256xf32>
    %100 = vector.broadcast %20 : vector<1x256xf32> to vector<16x256xf32>
    %101 = arith.mulf %99, %100 : vector<16x256xf32>
    %102 = arith.maximumf %96, %101 : vector<16x256xf32>
    %cst_26 = arith.constant 0.000000e+00 : f32
    %103 = vector.broadcast %cst_26 : f32 to vector<16x16xf32>
    %104 = vector.extract_strided_slice %96 {offsets = [0, 0], sizes = [16, 240], strides = [1, 1]} : vector<16x256xf32> to vector<16x240xf32>
    %105 = tpu.concatenate %103, %104 in 1 : vector<16x16xf32>, vector<16x240xf32> -> vector<16x256xf32>
    %106 = arith.maximumf %102, %105 : vector<16x256xf32>
    %cst_27 = arith.constant 0.000000e+00 : f32
    %107 = vector.broadcast %cst_27 : f32 to vector<16x15xf32>
    %108 = vector.extract_strided_slice %96 {offsets = [0, 0], sizes = [16, 241], strides = [1, 1]} : vector<16x256xf32> to vector<16x241xf32>
    %109 = tpu.concatenate %107, %108 in 1 : vector<16x15xf32>, vector<16x241xf32> -> vector<16x256xf32>
    %110 = vector.broadcast %24 : vector<1x256xf32> to vector<16x256xf32>
    %111 = arith.mulf %109, %110 : vector<16x256xf32>
    %112 = arith.maximumf %106, %111 : vector<16x256xf32>
    %cst_28 = arith.constant 0.000000e+00 : f32
    %113 = vector.broadcast %cst_28 : f32 to vector<16x1xf32>
    %114 = vector.extract_strided_slice %96 {offsets = [0, 0], sizes = [16, 255], strides = [1, 1]} : vector<16x256xf32> to vector<16x255xf32>
    %115 = tpu.concatenate %113, %114 in 1 : vector<16x1xf32>, vector<16x255xf32> -> vector<16x256xf32>
    %116 = vector.broadcast %20 : vector<1x256xf32> to vector<16x256xf32>
    %117 = arith.mulf %115, %116 : vector<16x256xf32>
    %118 = arith.maximumf %112, %117 : vector<16x256xf32>
    %119 = vector.extract_strided_slice %96 {offsets = [0, 1], sizes = [16, 255], strides = [1, 1]} : vector<16x256xf32> to vector<16x255xf32>
    %cst_29 = arith.constant 0.000000e+00 : f32
    %120 = vector.broadcast %cst_29 : f32 to vector<16x1xf32>
    %121 = tpu.concatenate %119, %120 in 1 : vector<16x255xf32>, vector<16x1xf32> -> vector<16x256xf32>
    %122 = vector.broadcast %24 : vector<1x256xf32> to vector<16x256xf32>
    %123 = arith.mulf %121, %122 : vector<16x256xf32>
    %124 = arith.maximumf %118, %123 : vector<16x256xf32>
    %125 = vector.extract_strided_slice %96 {offsets = [0, 15], sizes = [16, 241], strides = [1, 1]} : vector<16x256xf32> to vector<16x241xf32>
    %cst_30 = arith.constant 0.000000e+00 : f32
    %126 = vector.broadcast %cst_30 : f32 to vector<16x15xf32>
    %127 = tpu.concatenate %125, %126 in 1 : vector<16x241xf32>, vector<16x15xf32> -> vector<16x256xf32>
    %128 = vector.broadcast %20 : vector<1x256xf32> to vector<16x256xf32>
    %129 = arith.mulf %127, %128 : vector<16x256xf32>
    %130 = arith.maximumf %124, %129 : vector<16x256xf32>
    %131 = vector.extract_strided_slice %96 {offsets = [0, 16], sizes = [16, 240], strides = [1, 1]} : vector<16x256xf32> to vector<16x240xf32>
    %cst_31 = arith.constant 0.000000e+00 : f32
    %132 = vector.broadcast %cst_31 : f32 to vector<16x16xf32>
    %133 = tpu.concatenate %131, %132 in 1 : vector<16x240xf32>, vector<16x16xf32> -> vector<16x256xf32>
    %134 = arith.maximumf %130, %133 : vector<16x256xf32>
    %135 = vector.extract_strided_slice %96 {offsets = [0, 17], sizes = [16, 239], strides = [1, 1]} : vector<16x256xf32> to vector<16x239xf32>
    %cst_32 = arith.constant 0.000000e+00 : f32
    %136 = vector.broadcast %cst_32 : f32 to vector<16x17xf32>
    %137 = tpu.concatenate %135, %136 in 1 : vector<16x239xf32>, vector<16x17xf32> -> vector<16x256xf32>
    %138 = vector.broadcast %24 : vector<1x256xf32> to vector<16x256xf32>
    %139 = arith.mulf %137, %138 : vector<16x256xf32>
    %140 = arith.maximumf %134, %139 : vector<16x256xf32>
    %c0_33 = arith.constant 0 : index
    %c0_34 = arith.constant 0 : index
    %141 = vector.load %arg4[%c0_33, %c0_34] : memref<8x16xbf16, #tpu.memory_space<vmem>>, vector<8x16xbf16>
    %142 = arith.truncf %140 : vector<16x256xf32> to vector<16x256xbf16>
    %cst_35 = arith.constant dense<0.000000e+00> : vector<8x256xf32>
    %143 = tpu.matmul %141, %142, %cst_35 {dimension_numbers = #tpu.dot_dimension_numbers<[1], [0], [0], [1], [0, 0, 1, 1], [], []>} : vector<8x16xbf16>, vector<16x256xbf16>, vector<8x256xf32> -> vector<8x256xf32>
    %c0_36 = arith.constant 0 : index
    %c0_37 = arith.constant 0 : index
    %144 = vector.load %arg5[%c0_36, %c0_37] : memref<8x1xf32, #tpu.memory_space<vmem>>, vector<8x1xf32>
    %145 = vector.broadcast %144 : vector<8x1xf32> to vector<8x256xf32>
    %146 = arith.addf %143, %145 : vector<8x256xf32>
    %cst_38 = arith.constant 0.000000e+00 : f32
    %147 = vector.broadcast %cst_38 : f32 to vector<8x256xf32>
    %148 = arith.maximumf %146, %147 : vector<8x256xf32>
    %c0_39 = arith.constant 0 : index
    %c0_40 = arith.constant 0 : index
    %149 = vector.load %arg6[%c0_39, %c0_40] : memref<16x8xbf16, #tpu.memory_space<vmem>>, vector<16x8xbf16>
    %150 = arith.truncf %148 : vector<8x256xf32> to vector<8x256xbf16>
    %cst_41 = arith.constant dense<0.000000e+00> : vector<16x256xf32>
    %151 = tpu.matmul %149, %150, %cst_41 {dimension_numbers = #tpu.dot_dimension_numbers<[1], [0], [0], [1], [0, 0, 1, 1], [], []>} : vector<16x8xbf16>, vector<8x256xbf16>, vector<16x256xf32> -> vector<16x256xf32>
    %c0_42 = arith.constant 0 : index
    %c0_43 = arith.constant 0 : index
    %152 = vector.load %arg7[%c0_42, %c0_43] : memref<16x1xf32, #tpu.memory_space<vmem>>, vector<16x1xf32>
    %153 = vector.broadcast %152 : vector<16x1xf32> to vector<16x256xf32>
    %154 = arith.addf %151, %153 : vector<16x256xf32>
    %155 = arith.negf %154 : vector<16x256xf32>
    %156 = math.exp %155 : vector<16x256xf32>
    %cst_44 = arith.constant 1.000000e+00 : f32
    %157 = vector.broadcast %cst_44 : f32 to vector<16x256xf32>
    %158 = arith.addf %157, %156 : vector<16x256xf32>
    %159 = arith.divf %157, %158 : vector<16x256xf32>
    %160 = arith.mulf %96, %159 : vector<16x256xf32>
    %c0_45 = arith.constant 0 : index
    %c0_46 = arith.constant 0 : index
    %161 = vector.load %arg8[%c0_45, %c0_46] : memref<16x16xbf16, #tpu.memory_space<vmem>>, vector<16x16xbf16>
    %162 = arith.truncf %160 : vector<16x256xf32> to vector<16x256xbf16>
    %cst_47 = arith.constant dense<0.000000e+00> : vector<16x256xf32>
    %163 = tpu.matmul %161, %162, %cst_47 {dimension_numbers = #tpu.dot_dimension_numbers<[1], [0], [0], [1], [0, 0, 1, 1], [], []>} : vector<16x16xbf16>, vector<16x256xbf16>, vector<16x256xf32> -> vector<16x256xf32>
    %c0_48 = arith.constant 0 : index
    %c0_49 = arith.constant 0 : index
    %164 = vector.load %arg9[%c0_48, %c0_49] : memref<16x1xf32, #tpu.memory_space<vmem>>, vector<16x1xf32>
    %165 = vector.broadcast %164 : vector<16x1xf32> to vector<16x256xf32>
    %166 = arith.addf %163, %165 : vector<16x256xf32>
    %cst_50 = arith.constant 0.000000e+00 : f32
    %167 = vector.broadcast %cst_50 : f32 to vector<16x256xf32>
    %168 = arith.maximumf %166, %167 : vector<16x256xf32>
    %cst_51 = arith.constant 0.000000e+00 : f32
    %169 = vector.broadcast %cst_51 : f32 to vector<16x17xf32>
    %170 = vector.extract_strided_slice %168 {offsets = [0, 0], sizes = [16, 239], strides = [1, 1]} : vector<16x256xf32> to vector<16x239xf32>
    %171 = tpu.concatenate %169, %170 in 1 : vector<16x17xf32>, vector<16x239xf32> -> vector<16x256xf32>
    %172 = vector.broadcast %20 : vector<1x256xf32> to vector<16x256xf32>
    %173 = arith.mulf %171, %172 : vector<16x256xf32>
    %174 = arith.maximumf %168, %173 : vector<16x256xf32>
    %cst_52 = arith.constant 0.000000e+00 : f32
    %175 = vector.broadcast %cst_52 : f32 to vector<16x16xf32>
    %176 = vector.extract_strided_slice %168 {offsets = [0, 0], sizes = [16, 240], strides = [1, 1]} : vector<16x256xf32> to vector<16x240xf32>
    %177 = tpu.concatenate %175, %176 in 1 : vector<16x16xf32>, vector<16x240xf32> -> vector<16x256xf32>
    %178 = arith.maximumf %174, %177 : vector<16x256xf32>
    %cst_53 = arith.constant 0.000000e+00 : f32
    %179 = vector.broadcast %cst_53 : f32 to vector<16x15xf32>
    %180 = vector.extract_strided_slice %168 {offsets = [0, 0], sizes = [16, 241], strides = [1, 1]} : vector<16x256xf32> to vector<16x241xf32>
    %181 = tpu.concatenate %179, %180 in 1 : vector<16x15xf32>, vector<16x241xf32> -> vector<16x256xf32>
    %182 = vector.broadcast %24 : vector<1x256xf32> to vector<16x256xf32>
    %183 = arith.mulf %181, %182 : vector<16x256xf32>
    %184 = arith.maximumf %178, %183 : vector<16x256xf32>
    %cst_54 = arith.constant 0.000000e+00 : f32
    %185 = vector.broadcast %cst_54 : f32 to vector<16x1xf32>
    %186 = vector.extract_strided_slice %168 {offsets = [0, 0], sizes = [16, 255], strides = [1, 1]} : vector<16x256xf32> to vector<16x255xf32>
    %187 = tpu.concatenate %185, %186 in 1 : vector<16x1xf32>, vector<16x255xf32> -> vector<16x256xf32>
    %188 = vector.broadcast %20 : vector<1x256xf32> to vector<16x256xf32>
    %189 = arith.mulf %187, %188 : vector<16x256xf32>
    %190 = arith.maximumf %184, %189 : vector<16x256xf32>
    %191 = vector.extract_strided_slice %168 {offsets = [0, 1], sizes = [16, 255], strides = [1, 1]} : vector<16x256xf32> to vector<16x255xf32>
    %cst_55 = arith.constant 0.000000e+00 : f32
    %192 = vector.broadcast %cst_55 : f32 to vector<16x1xf32>
    %193 = tpu.concatenate %191, %192 in 1 : vector<16x255xf32>, vector<16x1xf32> -> vector<16x256xf32>
    %194 = vector.broadcast %24 : vector<1x256xf32> to vector<16x256xf32>
    %195 = arith.mulf %193, %194 : vector<16x256xf32>
    %196 = arith.maximumf %190, %195 : vector<16x256xf32>
    %197 = vector.extract_strided_slice %168 {offsets = [0, 15], sizes = [16, 241], strides = [1, 1]} : vector<16x256xf32> to vector<16x241xf32>
    %cst_56 = arith.constant 0.000000e+00 : f32
    %198 = vector.broadcast %cst_56 : f32 to vector<16x15xf32>
    %199 = tpu.concatenate %197, %198 in 1 : vector<16x241xf32>, vector<16x15xf32> -> vector<16x256xf32>
    %200 = vector.broadcast %20 : vector<1x256xf32> to vector<16x256xf32>
    %201 = arith.mulf %199, %200 : vector<16x256xf32>
    %202 = arith.maximumf %196, %201 : vector<16x256xf32>
    %203 = vector.extract_strided_slice %168 {offsets = [0, 16], sizes = [16, 240], strides = [1, 1]} : vector<16x256xf32> to vector<16x240xf32>
    %cst_57 = arith.constant 0.000000e+00 : f32
    %204 = vector.broadcast %cst_57 : f32 to vector<16x16xf32>
    %205 = tpu.concatenate %203, %204 in 1 : vector<16x240xf32>, vector<16x16xf32> -> vector<16x256xf32>
    %206 = arith.maximumf %202, %205 : vector<16x256xf32>
    %207 = vector.extract_strided_slice %168 {offsets = [0, 17], sizes = [16, 239], strides = [1, 1]} : vector<16x256xf32> to vector<16x239xf32>
    %cst_58 = arith.constant 0.000000e+00 : f32
    %208 = vector.broadcast %cst_58 : f32 to vector<16x17xf32>
    %209 = tpu.concatenate %207, %208 in 1 : vector<16x239xf32>, vector<16x17xf32> -> vector<16x256xf32>
    %210 = vector.broadcast %24 : vector<1x256xf32> to vector<16x256xf32>
    %211 = arith.mulf %209, %210 : vector<16x256xf32>
    %212 = arith.maximumf %206, %211 : vector<16x256xf32>
    %213 = arith.truncf %212 : vector<16x256xf32> to vector<16x256xbf16>
    %c0_59 = arith.constant 0 : index
    %c0_60 = arith.constant 0 : index
    %214 = vector.load %arg31[%c0_59, %c0_60] : memref<256x64xbf16, #tpu.memory_space<vmem>>, vector<256x64xbf16>
    %cst_61 = arith.constant dense<0.000000e+00> : vector<16x64xf32>
    %215 = tpu.matmul %213, %214, %cst_61 {dimension_numbers = #tpu.dot_dimension_numbers<[1], [0], [0], [1], [0, 0, 1, 1], [], []>} : vector<16x256xbf16>, vector<256x64xbf16>, vector<16x64xf32> -> vector<16x64xf32>
    %c0_62 = arith.constant 0 : index
    %c0_63 = arith.constant 0 : index
    %216 = vector.load %arg10[%c0_62, %c0_63] : memref<8x16xbf16, #tpu.memory_space<vmem>>, vector<8x16xbf16>
    %217 = arith.truncf %215 : vector<16x64xf32> to vector<16x64xbf16>
    %cst_64 = arith.constant dense<0.000000e+00> : vector<8x64xf32>
    %218 = tpu.matmul %216, %217, %cst_64 {dimension_numbers = #tpu.dot_dimension_numbers<[1], [0], [0], [1], [0, 0, 1, 1], [], []>} : vector<8x16xbf16>, vector<16x64xbf16>, vector<8x64xf32> -> vector<8x64xf32>
    %c0_65 = arith.constant 0 : index
    %c0_66 = arith.constant 0 : index
    %219 = vector.load %arg11[%c0_65, %c0_66] : memref<8x1xf32, #tpu.memory_space<vmem>>, vector<8x1xf32>
    %220 = vector.broadcast %219 : vector<8x1xf32> to vector<8x64xf32>
    %221 = arith.addf %218, %220 : vector<8x64xf32>
    %cst_67 = arith.constant 0.000000e+00 : f32
    %222 = vector.broadcast %cst_67 : f32 to vector<8x64xf32>
    %223 = arith.maximumf %221, %222 : vector<8x64xf32>
    %cst_68 = arith.constant 0.000000e+00 : f32
    %224 = vector.broadcast %cst_68 : f32 to vector<8x9xf32>
    %225 = vector.extract_strided_slice %223 {offsets = [0, 0], sizes = [8, 55], strides = [1, 1]} : vector<8x64xf32> to vector<8x55xf32>
    %226 = tpu.concatenate %224, %225 in 1 : vector<8x9xf32>, vector<8x55xf32> -> vector<8x64xf32>
    %227 = vector.broadcast %45 : vector<1x64xf32> to vector<8x64xf32>
    %228 = arith.mulf %226, %227 : vector<8x64xf32>
    %cst_69 = arith.constant 0.000000e+00 : f32
    %229 = vector.broadcast %cst_69 : f32 to vector<8x8xf32>
    %230 = vector.extract_strided_slice %223 {offsets = [0, 0], sizes = [8, 56], strides = [1, 1]} : vector<8x64xf32> to vector<8x56xf32>
    %231 = tpu.concatenate %229, %230 in 1 : vector<8x8xf32>, vector<8x56xf32> -> vector<8x64xf32>
    %cst_70 = arith.constant 0.000000e+00 : f32
    %232 = vector.broadcast %cst_70 : f32 to vector<8x7xf32>
    %233 = vector.extract_strided_slice %223 {offsets = [0, 0], sizes = [8, 57], strides = [1, 1]} : vector<8x64xf32> to vector<8x57xf32>
    %234 = tpu.concatenate %232, %233 in 1 : vector<8x7xf32>, vector<8x57xf32> -> vector<8x64xf32>
    %235 = vector.broadcast %49 : vector<1x64xf32> to vector<8x64xf32>
    %236 = arith.mulf %234, %235 : vector<8x64xf32>
    %cst_71 = arith.constant 0.000000e+00 : f32
    %237 = vector.broadcast %cst_71 : f32 to vector<8x1xf32>
    %238 = vector.extract_strided_slice %223 {offsets = [0, 0], sizes = [8, 63], strides = [1, 1]} : vector<8x64xf32> to vector<8x63xf32>
    %239 = tpu.concatenate %237, %238 in 1 : vector<8x1xf32>, vector<8x63xf32> -> vector<8x64xf32>
    %240 = vector.broadcast %45 : vector<1x64xf32> to vector<8x64xf32>
    %241 = arith.mulf %239, %240 : vector<8x64xf32>
    %242 = vector.extract_strided_slice %223 {offsets = [0, 1], sizes = [8, 63], strides = [1, 1]} : vector<8x64xf32> to vector<8x63xf32>
    %cst_72 = arith.constant 0.000000e+00 : f32
    %243 = vector.broadcast %cst_72 : f32 to vector<8x1xf32>
    %244 = tpu.concatenate %242, %243 in 1 : vector<8x63xf32>, vector<8x1xf32> -> vector<8x64xf32>
    %245 = vector.broadcast %49 : vector<1x64xf32> to vector<8x64xf32>
    %246 = arith.mulf %244, %245 : vector<8x64xf32>
    %247 = vector.extract_strided_slice %223 {offsets = [0, 7], sizes = [8, 57], strides = [1, 1]} : vector<8x64xf32> to vector<8x57xf32>
    %cst_73 = arith.constant 0.000000e+00 : f32
    %248 = vector.broadcast %cst_73 : f32 to vector<8x7xf32>
    %249 = tpu.concatenate %247, %248 in 1 : vector<8x57xf32>, vector<8x7xf32> -> vector<8x64xf32>
    %250 = vector.broadcast %45 : vector<1x64xf32> to vector<8x64xf32>
    %251 = arith.mulf %249, %250 : vector<8x64xf32>
    %252 = vector.extract_strided_slice %223 {offsets = [0, 8], sizes = [8, 56], strides = [1, 1]} : vector<8x64xf32> to vector<8x56xf32>
    %cst_74 = arith.constant 0.000000e+00 : f32
    %253 = vector.broadcast %cst_74 : f32 to vector<8x8xf32>
    %254 = tpu.concatenate %252, %253 in 1 : vector<8x56xf32>, vector<8x8xf32> -> vector<8x64xf32>
    %255 = vector.extract_strided_slice %223 {offsets = [0, 9], sizes = [8, 55], strides = [1, 1]} : vector<8x64xf32> to vector<8x55xf32>
    %cst_75 = arith.constant 0.000000e+00 : f32
    %256 = vector.broadcast %cst_75 : f32 to vector<8x9xf32>
    %257 = tpu.concatenate %255, %256 in 1 : vector<8x55xf32>, vector<8x9xf32> -> vector<8x64xf32>
    %258 = vector.broadcast %49 : vector<1x64xf32> to vector<8x64xf32>
    %259 = arith.mulf %257, %258 : vector<8x64xf32>
    %260 = tpu.concatenate %228, %231, %236, %241, %223, %246, %251, %254, %259 in 0 : vector<8x64xf32>, vector<8x64xf32>, vector<8x64xf32>, vector<8x64xf32>, vector<8x64xf32>, vector<8x64xf32>, vector<8x64xf32>, vector<8x64xf32>, vector<8x64xf32> -> vector<72x64xf32>
    %261 = arith.truncf %260 : vector<72x64xf32> to vector<72x64xbf16>
    %c0_76 = arith.constant 0 : index
    %c0_77 = arith.constant 0 : index
    %262 = vector.load %arg12[%c0_76, %c0_77] : memref<32x72xbf16, #tpu.memory_space<vmem>>, vector<32x72xbf16>
    %cst_78 = arith.constant dense<0.000000e+00> : vector<32x64xf32>
    %263 = tpu.matmul %262, %261, %cst_78 {dimension_numbers = #tpu.dot_dimension_numbers<[1], [0], [0], [1], [0, 0, 1, 1], [], []>} : vector<32x72xbf16>, vector<72x64xbf16>, vector<32x64xf32> -> vector<32x64xf32>
    %c0_79 = arith.constant 0 : index
    %c0_80 = arith.constant 0 : index
    %264 = vector.load %arg13[%c0_79, %c0_80] : memref<32x1xf32, #tpu.memory_space<vmem>>, vector<32x1xf32>
    %265 = vector.broadcast %264 : vector<32x1xf32> to vector<32x64xf32>
    %266 = arith.addf %263, %265 : vector<32x64xf32>
    %cst_81 = arith.constant 0.000000e+00 : f32
    %267 = vector.broadcast %cst_81 : f32 to vector<32x64xf32>
    %268 = arith.maximumf %266, %267 : vector<32x64xf32>
    %c0_82 = arith.constant 0 : index
    %c0_83 = arith.constant 0 : index
    %269 = vector.load %arg14[%c0_82, %c0_83] : memref<8x32xbf16, #tpu.memory_space<vmem>>, vector<8x32xbf16>
    %270 = arith.truncf %268 : vector<32x64xf32> to vector<32x64xbf16>
    %cst_84 = arith.constant dense<0.000000e+00> : vector<8x64xf32>
    %271 = tpu.matmul %269, %270, %cst_84 {dimension_numbers = #tpu.dot_dimension_numbers<[1], [0], [0], [1], [0, 0, 1, 1], [], []>} : vector<8x32xbf16>, vector<32x64xbf16>, vector<8x64xf32> -> vector<8x64xf32>
    %c0_85 = arith.constant 0 : index
    %c0_86 = arith.constant 0 : index
    %272 = vector.load %arg15[%c0_85, %c0_86] : memref<8x1xf32, #tpu.memory_space<vmem>>, vector<8x1xf32>
    %273 = vector.broadcast %272 : vector<8x1xf32> to vector<8x64xf32>
    %274 = arith.addf %271, %273 : vector<8x64xf32>
    %cst_87 = arith.constant 0.000000e+00 : f32
    %275 = vector.broadcast %cst_87 : f32 to vector<8x64xf32>
    %276 = arith.maximumf %274, %275 : vector<8x64xf32>
    %cst_88 = arith.constant 0.000000e+00 : f32
    %277 = vector.broadcast %cst_88 : f32 to vector<8x9xf32>
    %278 = vector.extract_strided_slice %276 {offsets = [0, 0], sizes = [8, 55], strides = [1, 1]} : vector<8x64xf32> to vector<8x55xf32>
    %279 = tpu.concatenate %277, %278 in 1 : vector<8x9xf32>, vector<8x55xf32> -> vector<8x64xf32>
    %280 = vector.broadcast %45 : vector<1x64xf32> to vector<8x64xf32>
    %281 = arith.mulf %279, %280 : vector<8x64xf32>
    %cst_89 = arith.constant 0.000000e+00 : f32
    %282 = vector.broadcast %cst_89 : f32 to vector<8x8xf32>
    %283 = vector.extract_strided_slice %276 {offsets = [0, 0], sizes = [8, 56], strides = [1, 1]} : vector<8x64xf32> to vector<8x56xf32>
    %284 = tpu.concatenate %282, %283 in 1 : vector<8x8xf32>, vector<8x56xf32> -> vector<8x64xf32>
    %cst_90 = arith.constant 0.000000e+00 : f32
    %285 = vector.broadcast %cst_90 : f32 to vector<8x7xf32>
    %286 = vector.extract_strided_slice %276 {offsets = [0, 0], sizes = [8, 57], strides = [1, 1]} : vector<8x64xf32> to vector<8x57xf32>
    %287 = tpu.concatenate %285, %286 in 1 : vector<8x7xf32>, vector<8x57xf32> -> vector<8x64xf32>
    %288 = vector.broadcast %49 : vector<1x64xf32> to vector<8x64xf32>
    %289 = arith.mulf %287, %288 : vector<8x64xf32>
    %cst_91 = arith.constant 0.000000e+00 : f32
    %290 = vector.broadcast %cst_91 : f32 to vector<8x1xf32>
    %291 = vector.extract_strided_slice %276 {offsets = [0, 0], sizes = [8, 63], strides = [1, 1]} : vector<8x64xf32> to vector<8x63xf32>
    %292 = tpu.concatenate %290, %291 in 1 : vector<8x1xf32>, vector<8x63xf32> -> vector<8x64xf32>
    %293 = vector.broadcast %45 : vector<1x64xf32> to vector<8x64xf32>
    %294 = arith.mulf %292, %293 : vector<8x64xf32>
    %295 = vector.extract_strided_slice %276 {offsets = [0, 1], sizes = [8, 63], strides = [1, 1]} : vector<8x64xf32> to vector<8x63xf32>
    %cst_92 = arith.constant 0.000000e+00 : f32
    %296 = vector.broadcast %cst_92 : f32 to vector<8x1xf32>
    %297 = tpu.concatenate %295, %296 in 1 : vector<8x63xf32>, vector<8x1xf32> -> vector<8x64xf32>
    %298 = vector.broadcast %49 : vector<1x64xf32> to vector<8x64xf32>
    %299 = arith.mulf %297, %298 : vector<8x64xf32>
    %300 = vector.extract_strided_slice %276 {offsets = [0, 7], sizes = [8, 57], strides = [1, 1]} : vector<8x64xf32> to vector<8x57xf32>
    %cst_93 = arith.constant 0.000000e+00 : f32
    %301 = vector.broadcast %cst_93 : f32 to vector<8x7xf32>
    %302 = tpu.concatenate %300, %301 in 1 : vector<8x57xf32>, vector<8x7xf32> -> vector<8x64xf32>
    %303 = vector.broadcast %45 : vector<1x64xf32> to vector<8x64xf32>
    %304 = arith.mulf %302, %303 : vector<8x64xf32>
    %305 = vector.extract_strided_slice %276 {offsets = [0, 8], sizes = [8, 56], strides = [1, 1]} : vector<8x64xf32> to vector<8x56xf32>
    %cst_94 = arith.constant 0.000000e+00 : f32
    %306 = vector.broadcast %cst_94 : f32 to vector<8x8xf32>
    %307 = tpu.concatenate %305, %306 in 1 : vector<8x56xf32>, vector<8x8xf32> -> vector<8x64xf32>
    %308 = vector.extract_strided_slice %276 {offsets = [0, 9], sizes = [8, 55], strides = [1, 1]} : vector<8x64xf32> to vector<8x55xf32>
    %cst_95 = arith.constant 0.000000e+00 : f32
    %309 = vector.broadcast %cst_95 : f32 to vector<8x9xf32>
    %310 = tpu.concatenate %308, %309 in 1 : vector<8x55xf32>, vector<8x9xf32> -> vector<8x64xf32>
    %311 = vector.broadcast %49 : vector<1x64xf32> to vector<8x64xf32>
    %312 = arith.mulf %310, %311 : vector<8x64xf32>
    %313 = tpu.concatenate %281, %284, %289, %294, %276, %299, %304, %307, %312 in 0 : vector<8x64xf32>, vector<8x64xf32>, vector<8x64xf32>, vector<8x64xf32>, vector<8x64xf32>, vector<8x64xf32>, vector<8x64xf32>, vector<8x64xf32>, vector<8x64xf32> -> vector<72x64xf32>
    %314 = arith.truncf %313 : vector<72x64xf32> to vector<72x64xbf16>
    %c0_96 = arith.constant 0 : index
    %c0_97 = arith.constant 0 : index
    %315 = vector.load %arg16[%c0_96, %c0_97] : memref<32x72xbf16, #tpu.memory_space<vmem>>, vector<32x72xbf16>
    %cst_98 = arith.constant dense<0.000000e+00> : vector<32x64xf32>
    %316 = tpu.matmul %315, %314, %cst_98 {dimension_numbers = #tpu.dot_dimension_numbers<[1], [0], [0], [1], [0, 0, 1, 1], [], []>} : vector<32x72xbf16>, vector<72x64xbf16>, vector<32x64xf32> -> vector<32x64xf32>
    %c0_99 = arith.constant 0 : index
    %c0_100 = arith.constant 0 : index
    %317 = vector.load %arg17[%c0_99, %c0_100] : memref<32x1xf32, #tpu.memory_space<vmem>>, vector<32x1xf32>
    %318 = vector.broadcast %317 : vector<32x1xf32> to vector<32x64xf32>
    %319 = arith.addf %316, %318 : vector<32x64xf32>
    %cst_101 = arith.constant 0.000000e+00 : f32
    %320 = vector.broadcast %cst_101 : f32 to vector<32x64xf32>
    %321 = arith.maximumf %319, %320 : vector<32x64xf32>
    %cst_102 = arith.constant 0.000000e+00 : f32
    %322 = vector.broadcast %cst_102 : f32 to vector<32x9xf32>
    %323 = vector.extract_strided_slice %321 {offsets = [0, 0], sizes = [32, 55], strides = [1, 1]} : vector<32x64xf32> to vector<32x55xf32>
    %324 = tpu.concatenate %322, %323 in 1 : vector<32x9xf32>, vector<32x55xf32> -> vector<32x64xf32>
    %325 = vector.broadcast %45 : vector<1x64xf32> to vector<32x64xf32>
    %326 = arith.mulf %324, %325 : vector<32x64xf32>
    %327 = arith.maximumf %321, %326 : vector<32x64xf32>
    %cst_103 = arith.constant 0.000000e+00 : f32
    %328 = vector.broadcast %cst_103 : f32 to vector<32x8xf32>
    %329 = vector.extract_strided_slice %321 {offsets = [0, 0], sizes = [32, 56], strides = [1, 1]} : vector<32x64xf32> to vector<32x56xf32>
    %330 = tpu.concatenate %328, %329 in 1 : vector<32x8xf32>, vector<32x56xf32> -> vector<32x64xf32>
    %331 = arith.maximumf %327, %330 : vector<32x64xf32>
    %cst_104 = arith.constant 0.000000e+00 : f32
    %332 = vector.broadcast %cst_104 : f32 to vector<32x7xf32>
    %333 = vector.extract_strided_slice %321 {offsets = [0, 0], sizes = [32, 57], strides = [1, 1]} : vector<32x64xf32> to vector<32x57xf32>
    %334 = tpu.concatenate %332, %333 in 1 : vector<32x7xf32>, vector<32x57xf32> -> vector<32x64xf32>
    %335 = vector.broadcast %49 : vector<1x64xf32> to vector<32x64xf32>
    %336 = arith.mulf %334, %335 : vector<32x64xf32>
    %337 = arith.maximumf %331, %336 : vector<32x64xf32>
    %cst_105 = arith.constant 0.000000e+00 : f32
    %338 = vector.broadcast %cst_105 : f32 to vector<32x1xf32>
    %339 = vector.extract_strided_slice %321 {offsets = [0, 0], sizes = [32, 63], strides = [1, 1]} : vector<32x64xf32> to vector<32x63xf32>
    %340 = tpu.concatenate %338, %339 in 1 : vector<32x1xf32>, vector<32x63xf32> -> vector<32x64xf32>
    %341 = vector.broadcast %45 : vector<1x64xf32> to vector<32x64xf32>
    %342 = arith.mulf %340, %341 : vector<32x64xf32>
    %343 = arith.maximumf %337, %342 : vector<32x64xf32>
    %344 = vector.extract_strided_slice %321 {offsets = [0, 1], sizes = [32, 63], strides = [1, 1]} : vector<32x64xf32> to vector<32x63xf32>
    %cst_106 = arith.constant 0.000000e+00 : f32
    %345 = vector.broadcast %cst_106 : f32 to vector<32x1xf32>
    %346 = tpu.concatenate %344, %345 in 1 : vector<32x63xf32>, vector<32x1xf32> -> vector<32x64xf32>
    %347 = vector.broadcast %49 : vector<1x64xf32> to vector<32x64xf32>
    %348 = arith.mulf %346, %347 : vector<32x64xf32>
    %349 = arith.maximumf %343, %348 : vector<32x64xf32>
    %350 = vector.extract_strided_slice %321 {offsets = [0, 7], sizes = [32, 57], strides = [1, 1]} : vector<32x64xf32> to vector<32x57xf32>
    %cst_107 = arith.constant 0.000000e+00 : f32
    %351 = vector.broadcast %cst_107 : f32 to vector<32x7xf32>
    %352 = tpu.concatenate %350, %351 in 1 : vector<32x57xf32>, vector<32x7xf32> -> vector<32x64xf32>
    %353 = vector.broadcast %45 : vector<1x64xf32> to vector<32x64xf32>
    %354 = arith.mulf %352, %353 : vector<32x64xf32>
    %355 = arith.maximumf %349, %354 : vector<32x64xf32>
    %356 = vector.extract_strided_slice %321 {offsets = [0, 8], sizes = [32, 56], strides = [1, 1]} : vector<32x64xf32> to vector<32x56xf32>
    %cst_108 = arith.constant 0.000000e+00 : f32
    %357 = vector.broadcast %cst_108 : f32 to vector<32x8xf32>
    %358 = tpu.concatenate %356, %357 in 1 : vector<32x56xf32>, vector<32x8xf32> -> vector<32x64xf32>
    %359 = arith.maximumf %355, %358 : vector<32x64xf32>
    %360 = vector.extract_strided_slice %321 {offsets = [0, 9], sizes = [32, 55], strides = [1, 1]} : vector<32x64xf32> to vector<32x55xf32>
    %cst_109 = arith.constant 0.000000e+00 : f32
    %361 = vector.broadcast %cst_109 : f32 to vector<32x9xf32>
    %362 = tpu.concatenate %360, %361 in 1 : vector<32x55xf32>, vector<32x9xf32> -> vector<32x64xf32>
    %363 = vector.broadcast %49 : vector<1x64xf32> to vector<32x64xf32>
    %364 = arith.mulf %362, %363 : vector<32x64xf32>
    %365 = arith.maximumf %359, %364 : vector<32x64xf32>
    %c0_110 = arith.constant 0 : index
    %c0_111 = arith.constant 0 : index
    %366 = vector.load %arg18[%c0_110, %c0_111] : memref<16x32xbf16, #tpu.memory_space<vmem>>, vector<16x32xbf16>
    %367 = arith.truncf %365 : vector<32x64xf32> to vector<32x64xbf16>
    %cst_112 = arith.constant dense<0.000000e+00> : vector<16x64xf32>
    %368 = tpu.matmul %366, %367, %cst_112 {dimension_numbers = #tpu.dot_dimension_numbers<[1], [0], [0], [1], [0, 0, 1, 1], [], []>} : vector<16x32xbf16>, vector<32x64xbf16>, vector<16x64xf32> -> vector<16x64xf32>
    %c0_113 = arith.constant 0 : index
    %c0_114 = arith.constant 0 : index
    %369 = vector.load %arg19[%c0_113, %c0_114] : memref<16x1xf32, #tpu.memory_space<vmem>>, vector<16x1xf32>
    %370 = vector.broadcast %369 : vector<16x1xf32> to vector<16x64xf32>
    %371 = arith.addf %368, %370 : vector<16x64xf32>
    %cst_115 = arith.constant 0.000000e+00 : f32
    %372 = vector.broadcast %cst_115 : f32 to vector<16x64xf32>
    %373 = arith.maximumf %371, %372 : vector<16x64xf32>
    %c0_116 = arith.constant 0 : index
    %c0_117 = arith.constant 0 : index
    %374 = vector.load %arg20[%c0_116, %c0_117] : memref<32x16xbf16, #tpu.memory_space<vmem>>, vector<32x16xbf16>
    %375 = arith.truncf %373 : vector<16x64xf32> to vector<16x64xbf16>
    %cst_118 = arith.constant dense<0.000000e+00> : vector<32x64xf32>
    %376 = tpu.matmul %374, %375, %cst_118 {dimension_numbers = #tpu.dot_dimension_numbers<[1], [0], [0], [1], [0, 0, 1, 1], [], []>} : vector<32x16xbf16>, vector<16x64xbf16>, vector<32x64xf32> -> vector<32x64xf32>
    %c0_119 = arith.constant 0 : index
    %c0_120 = arith.constant 0 : index
    %377 = vector.load %arg21[%c0_119, %c0_120] : memref<32x1xf32, #tpu.memory_space<vmem>>, vector<32x1xf32>
    %378 = vector.broadcast %377 : vector<32x1xf32> to vector<32x64xf32>
    %379 = arith.addf %376, %378 : vector<32x64xf32>
    %380 = arith.negf %379 : vector<32x64xf32>
    %381 = math.exp %380 : vector<32x64xf32>
    %cst_121 = arith.constant 1.000000e+00 : f32
    %382 = vector.broadcast %cst_121 : f32 to vector<32x64xf32>
    %383 = arith.addf %382, %381 : vector<32x64xf32>
    %384 = arith.divf %382, %383 : vector<32x64xf32>
    %385 = arith.mulf %321, %384 : vector<32x64xf32>
    %cst_122 = arith.constant dense<0.000000e+00> : vector<32xf32>
    %386 = vector.multi_reduction <add>, %385, %cst_122 [1] : vector<32x64xf32> to vector<32xf32>
    %387 = vector.shape_cast %386 : vector<32xf32> to vector<32x1xf32>
    %cst_123 = arith.constant 6.400000e+01 : f32
    %388 = vector.broadcast %cst_123 : f32 to vector<32x1xf32>
    %389 = arith.divf %387, %388 : vector<32x1xf32>
    %c0_124 = arith.constant 0 : index
    %c0_125 = arith.constant 0 : index
    %390 = vector.load %arg29[%c0_124, %c0_125] : memref<32x4xf32, #tpu.memory_space<vmem>>, vector<32x4xf32>
    %391 = vector.broadcast %389 : vector<32x1xf32> to vector<32x4xf32>
    %392 = arith.mulf %390, %391 : vector<32x4xf32>
    %cst_126 = arith.constant dense<0.000000e+00> : vector<4xf32>
    %393 = vector.multi_reduction <add>, %392, %cst_126 [0] : vector<32x4xf32> to vector<4xf32>
    %394 = vector.shape_cast %393 : vector<4xf32> to vector<1x4xf32>
    %c0_127 = arith.constant 0 : index
    %c0_128 = arith.constant 0 : index
    %395 = vector.load %arg30[%c0_127, %c0_128] : memref<1x4xf32, #tpu.memory_space<vmem>>, vector<1x4xf32>
    %396 = arith.addf %394, %395 : vector<1x4xf32>
    %c0_129 = arith.constant 0 : index
    %c0_130 = arith.constant 0 : index
    %c0_131 = arith.constant 0 : index
    %397 = vector.load %arg34[%c0_129, %c0_130, %c0_131] : memref<1x1x4xf32, #tpu.memory_space<vmem>>, vector<1x1x4xf32>
    %398 = vector.shape_cast %397 : vector<1x1x4xf32> to vector<1x4xf32>
    %399 = vector.shape_cast %396 : vector<1x4xf32> to vector<1x1x4xf32>
    tpu.vector_store %arg34[%c0_129, %c0_130, %c0_131], %399 {strides = array<i32>} : memref<1x1x4xf32, #tpu.memory_space<vmem>>, vector<1x1x4xf32>,
    %c0_132 = arith.constant 0 : index
    %c0_133 = arith.constant 0 : index
    %400 = vector.load %arg22[%c0_132, %c0_133] : memref<8x32xbf16, #tpu.memory_space<vmem>>, vector<8x32xbf16>
    %401 = arith.truncf %385 : vector<32x64xf32> to vector<32x64xbf16>
    %cst_134 = arith.constant dense<0.000000e+00> : vector<8x64xf32>
    %402 = tpu.matmul %400, %401, %cst_134 {dimension_numbers = #tpu.dot_dimension_numbers<[1], [0], [0], [1], [0, 0, 1, 1], [], []>} : vector<8x32xbf16>, vector<32x64xbf16>, vector<8x64xf32> -> vector<8x64xf32>
    %c0_135 = arith.constant 0 : index
    %c0_136 = arith.constant 0 : index
    %403 = vector.load %arg23[%c0_135, %c0_136] : memref<8x1xf32, #tpu.memory_space<vmem>>, vector<8x1xf32>
    %404 = vector.broadcast %403 : vector<8x1xf32> to vector<8x64xf32>
    %405 = arith.addf %402, %404 : vector<8x64xf32>
    %cst_137 = arith.constant 0.000000e+00 : f32
    %406 = vector.broadcast %cst_137 : f32 to vector<8x64xf32>
    %407 = arith.maximumf %405, %406 : vector<8x64xf32>
    %408 = arith.truncf %407 : vector<8x64xf32> to vector<8x64xbf16>
    %c0_138 = arith.constant 0 : index
    %c0_139 = arith.constant 0 : index
    %409 = vector.load %arg32[%c0_138, %c0_139] : memref<64x256xbf16, #tpu.memory_space<vmem>>, vector<64x256xbf16>
    %cst_140 = arith.constant dense<0.000000e+00> : vector<8x256xf32>
    %410 = tpu.matmul %408, %409, %cst_140 {dimension_numbers = #tpu.dot_dimension_numbers<[1], [0], [0], [1], [0, 0, 1, 1], [], []>} : vector<8x64xbf16>, vector<64x256xbf16>, vector<8x256xf32> -> vector<8x256xf32>
    %cst_141 = arith.constant 0.000000e+00 : f32
    %411 = vector.broadcast %cst_141 : f32 to vector<8x17xf32>
    %412 = vector.extract_strided_slice %410 {offsets = [0, 0], sizes = [8, 239], strides = [1, 1]} : vector<8x256xf32> to vector<8x239xf32>
    %413 = tpu.concatenate %411, %412 in 1 : vector<8x17xf32>, vector<8x239xf32> -> vector<8x256xf32>
    %414 = vector.broadcast %20 : vector<1x256xf32> to vector<8x256xf32>
    %415 = arith.mulf %413, %414 : vector<8x256xf32>
    %cst_142 = arith.constant 0.000000e+00 : f32
    %416 = vector.broadcast %cst_142 : f32 to vector<8x16xf32>
    %417 = vector.extract_strided_slice %410 {offsets = [0, 0], sizes = [8, 240], strides = [1, 1]} : vector<8x256xf32> to vector<8x240xf32>
    %418 = tpu.concatenate %416, %417 in 1 : vector<8x16xf32>, vector<8x240xf32> -> vector<8x256xf32>
    %cst_143 = arith.constant 0.000000e+00 : f32
    %419 = vector.broadcast %cst_143 : f32 to vector<8x15xf32>
    %420 = vector.extract_strided_slice %410 {offsets = [0, 0], sizes = [8, 241], strides = [1, 1]} : vector<8x256xf32> to vector<8x241xf32>
    %421 = tpu.concatenate %419, %420 in 1 : vector<8x15xf32>, vector<8x241xf32> -> vector<8x256xf32>
    %422 = vector.broadcast %24 : vector<1x256xf32> to vector<8x256xf32>
    %423 = arith.mulf %421, %422 : vector<8x256xf32>
    %cst_144 = arith.constant 0.000000e+00 : f32
    %424 = vector.broadcast %cst_144 : f32 to vector<8x1xf32>
    %425 = vector.extract_strided_slice %410 {offsets = [0, 0], sizes = [8, 255], strides = [1, 1]} : vector<8x256xf32> to vector<8x255xf32>
    %426 = tpu.concatenate %424, %425 in 1 : vector<8x1xf32>, vector<8x255xf32> -> vector<8x256xf32>
    %427 = vector.broadcast %20 : vector<1x256xf32> to vector<8x256xf32>
    %428 = arith.mulf %426, %427 : vector<8x256xf32>
    %429 = vector.extract_strided_slice %410 {offsets = [0, 1], sizes = [8, 255], strides = [1, 1]} : vector<8x256xf32> to vector<8x255xf32>
    %cst_145 = arith.constant 0.000000e+00 : f32
    %430 = vector.broadcast %cst_145 : f32 to vector<8x1xf32>
    %431 = tpu.concatenate %429, %430 in 1 : vector<8x255xf32>, vector<8x1xf32> -> vector<8x256xf32>
    %432 = vector.broadcast %24 : vector<1x256xf32> to vector<8x256xf32>
    %433 = arith.mulf %431, %432 : vector<8x256xf32>
    %434 = vector.extract_strided_slice %410 {offsets = [0, 15], sizes = [8, 241], strides = [1, 1]} : vector<8x256xf32> to vector<8x241xf32>
    %cst_146 = arith.constant 0.000000e+00 : f32
    %435 = vector.broadcast %cst_146 : f32 to vector<8x15xf32>
    %436 = tpu.concatenate %434, %435 in 1 : vector<8x241xf32>, vector<8x15xf32> -> vector<8x256xf32>
    %437 = vector.broadcast %20 : vector<1x256xf32> to vector<8x256xf32>
    %438 = arith.mulf %436, %437 : vector<8x256xf32>
    %439 = vector.extract_strided_slice %410 {offsets = [0, 16], sizes = [8, 240], strides = [1, 1]} : vector<8x256xf32> to vector<8x240xf32>
    %cst_147 = arith.constant 0.000000e+00 : f32
    %440 = vector.broadcast %cst_147 : f32 to vector<8x16xf32>
    %441 = tpu.concatenate %439, %440 in 1 : vector<8x240xf32>, vector<8x16xf32> -> vector<8x256xf32>
    %442 = vector.extract_strided_slice %410 {offsets = [0, 17], sizes = [8, 239], strides = [1, 1]} : vector<8x256xf32> to vector<8x239xf32>
    %cst_148 = arith.constant 0.000000e+00 : f32
    %443 = vector.broadcast %cst_148 : f32 to vector<8x17xf32>
    %444 = tpu.concatenate %442, %443 in 1 : vector<8x239xf32>, vector<8x17xf32> -> vector<8x256xf32>
    %445 = vector.broadcast %24 : vector<1x256xf32> to vector<8x256xf32>
    %446 = arith.mulf %444, %445 : vector<8x256xf32>
    %447 = tpu.concatenate %415, %418, %423, %428, %410, %433, %438, %441, %446 in 0 : vector<8x256xf32>, vector<8x256xf32>, vector<8x256xf32>, vector<8x256xf32>, vector<8x256xf32>, vector<8x256xf32>, vector<8x256xf32>, vector<8x256xf32>, vector<8x256xf32> -> vector<72x256xf32>
    %448 = arith.truncf %447 : vector<72x256xf32> to vector<72x256xbf16>
    %c0_149 = arith.constant 0 : index
    %c0_150 = arith.constant 0 : index
    %449 = vector.load %arg24[%c0_149, %c0_150] : memref<16x72xbf16, #tpu.memory_space<vmem>>, vector<16x72xbf16>
    %cst_151 = arith.constant dense<0.000000e+00> : vector<16x256xf32>
    %450 = tpu.matmul %449, %448, %cst_151 {dimension_numbers = #tpu.dot_dimension_numbers<[1], [0], [0], [1], [0, 0, 1, 1], [], []>} : vector<16x72xbf16>, vector<72x256xbf16>, vector<16x256xf32> -> vector<16x256xf32>
    %c0_152 = arith.constant 0 : index
    %c0_153 = arith.constant 0 : index
    %451 = vector.load %arg25[%c0_152, %c0_153] : memref<16x1xf32, #tpu.memory_space<vmem>>, vector<16x1xf32>
    %452 = vector.broadcast %451 : vector<16x1xf32> to vector<16x256xf32>
    %453 = arith.addf %450, %452 : vector<16x256xf32>
    %cst_154 = arith.constant 0.000000e+00 : f32
    %454 = vector.broadcast %cst_154 : f32 to vector<16x256xf32>
    %455 = arith.maximumf %453, %454 : vector<16x256xf32>
    %456 = arith.addf %168, %455 : vector<16x256xf32>
    %c0_155 = arith.constant 0 : index
    %c0_156 = arith.constant 0 : index
    %457 = vector.load %arg26[%c0_155, %c0_156] : memref<4x1xf32, #tpu.memory_space<vmem>>, vector<4x1xf32>
    %458 = vector.broadcast %457 : vector<4x1xf32> to vector<4x256xf32>
    %459 = arith.mulf %51, %458 : vector<4x256xf32>
    %cst_157 = arith.constant dense<0.000000e+00> : vector<256xf32>
    %460 = vector.multi_reduction <add>, %459, %cst_157 [0] : vector<4x256xf32> to vector<256xf32>
    %461 = vector.shape_cast %460 : vector<256xf32> to vector<1x256xf32>
    %c0_158 = arith.constant 0 : index
    %c0_159 = arith.constant 0 : index
    %462 = vector.load %arg27[%c0_158, %c0_159] : memref<16x1xf32, #tpu.memory_space<vmem>>, vector<16x1xf32>
    %463 = vector.broadcast %462 : vector<16x1xf32> to vector<16x256xf32>
    %464 = arith.mulf %456, %463 : vector<16x256xf32>
    %cst_160 = arith.constant dense<0.000000e+00> : vector<256xf32>
    %465 = vector.multi_reduction <add>, %464, %cst_160 [0] : vector<16x256xf32> to vector<256xf32>
    %466 = vector.shape_cast %465 : vector<256xf32> to vector<1x256xf32>
    %467 = arith.addf %461, %466 : vector<1x256xf32>
    %c0_161 = arith.constant 0 : index
    %c0_162 = arith.constant 0 : index
    %468 = vector.load %arg28[%c0_161, %c0_162] : memref<1x1xf32, #tpu.memory_space<vmem>>, vector<1x1xf32>
    %469 = vector.broadcast %468 : vector<1x1xf32> to vector<1x256xf32>
    %470 = arith.addf %467, %469 : vector<1x256xf32>
    %c0_163 = arith.constant 0 : index
    %c0_164 = arith.constant 0 : index
    %c0_165 = arith.constant 0 : index
    %471 = vector.load %arg33[%c0_163, %c0_164, %c0_165] : memref<1x1x256xf32, #tpu.memory_space<vmem>>, vector<1x1x256xf32>
    %472 = vector.shape_cast %471 : vector<1x1x256xf32> to vector<1x256xf32>
    %473 = vector.shape_cast %470 : vector<1x256xf32> to vector<1x1x256xf32>
    tpu.vector_store %arg33[%c0_163, %c0_164, %c0_165], %473 {strides = array<i32>} : memref<1x1x256xf32, #tpu.memory_space<vmem>>, vector<1x1x256xf32>,
    return
  }
  func.func @transform_0(%arg0: i32) -> (i32, i32, i32) {
    %c0_i32 = arith.constant 0 : i32
    %c0_i32_0 = arith.constant 0 : i32
    %c0_i32_1 = arith.constant 0 : i32
    return %arg0, %c0_i32, %c0_i32_0 : i32, i32, i32
  }
  func.func @transform_1(%arg0: i32) -> (i32, i32) {
    %c0_i32 = arith.constant 0 : i32
    %c0_i32_0 = arith.constant 0 : i32
    %c0_i32_1 = arith.constant 0 : i32
    return %c0_i32, %c0_i32_0 : i32, i32
  }
  func.func @transform_2(%arg0: i32) -> (i32, i32) {
    %c0_i32 = arith.constant 0 : i32
    %c0_i32_0 = arith.constant 0 : i32
    %c0_i32_1 = arith.constant 0 : i32
    return %c0_i32, %c0_i32_0 : i32, i32
  }
  func.func @transform_3(%arg0: i32) -> (i32, i32) {
    %c0_i32 = arith.constant 0 : i32
    %c0_i32_0 = arith.constant 0 : i32
    %c0_i32_1 = arith.constant 0 : i32
    return %c0_i32, %c0_i32_0 : i32, i32
  }
  func.func @transform_4(%arg0: i32) -> (i32, i32) {
    %c0_i32 = arith.constant 0 : i32
    %c0_i32_0 = arith.constant 0 : i32
    %c0_i32_1 = arith.constant 0 : i32
    return %c0_i32, %c0_i32_0 : i32, i32
  }
  func.func @transform_5(%arg0: i32) -> (i32, i32) {
    %c0_i32 = arith.constant 0 : i32
    %c0_i32_0 = arith.constant 0 : i32
    %c0_i32_1 = arith.constant 0 : i32
    return %c0_i32, %c0_i32_0 : i32, i32
  }
  func.func @transform_6(%arg0: i32) -> (i32, i32) {
    %c0_i32 = arith.constant 0 : i32
    %c0_i32_0 = arith.constant 0 : i32
    %c0_i32_1 = arith.constant 0 : i32
    return %c0_i32, %c0_i32_0 : i32, i32
  }
  func.func @transform_7(%arg0: i32) -> (i32, i32) {
    %c0_i32 = arith.constant 0 : i32
    %c0_i32_0 = arith.constant 0 : i32
    %c0_i32_1 = arith.constant 0 : i32
    return %c0_i32, %c0_i32_0 : i32, i32
  }
  func.func @transform_8(%arg0: i32) -> (i32, i32) {
    %c0_i32 = arith.constant 0 : i32
    %c0_i32_0 = arith.constant 0 : i32
    %c0_i32_1 = arith.constant 0 : i32
    return %c0_i32, %c0_i32_0 : i32, i32
  }
  func.func @transform_9(%arg0: i32) -> (i32, i32) {
    %c0_i32 = arith.constant 0 : i32
    %c0_i32_0 = arith.constant 0 : i32
    %c0_i32_1 = arith.constant 0 : i32
    return %c0_i32, %c0_i32_0 : i32, i32
  }
  func.func @transform_10(%arg0: i32) -> (i32, i32) {
    %c0_i32 = arith.constant 0 : i32
    %c0_i32_0 = arith.constant 0 : i32
    %c0_i32_1 = arith.constant 0 : i32
    return %c0_i32, %c0_i32_0 : i32, i32
  }
  func.func @transform_11(%arg0: i32) -> (i32, i32) {
    %c0_i32 = arith.constant 0 : i32
    %c0_i32_0 = arith.constant 0 : i32
    %c0_i32_1 = arith.constant 0 : i32
    return %c0_i32, %c0_i32_0 : i32, i32
  }
  func.func @transform_12(%arg0: i32) -> (i32, i32) {
    %c0_i32 = arith.constant 0 : i32
    %c0_i32_0 = arith.constant 0 : i32
    %c0_i32_1 = arith.constant 0 : i32
    return %c0_i32, %c0_i32_0 : i32, i32
  }
  func.func @transform_13(%arg0: i32) -> (i32, i32) {
    %c0_i32 = arith.constant 0 : i32
    %c0_i32_0 = arith.constant 0 : i32
    %c0_i32_1 = arith.constant 0 : i32
    return %c0_i32, %c0_i32_0 : i32, i32
  }
  func.func @transform_14(%arg0: i32) -> (i32, i32) {
    %c0_i32 = arith.constant 0 : i32
    %c0_i32_0 = arith.constant 0 : i32
    %c0_i32_1 = arith.constant 0 : i32
    return %c0_i32, %c0_i32_0 : i32, i32
  }
  func.func @transform_15(%arg0: i32) -> (i32, i32) {
    %c0_i32 = arith.constant 0 : i32
    %c0_i32_0 = arith.constant 0 : i32
    %c0_i32_1 = arith.constant 0 : i32
    return %c0_i32, %c0_i32_0 : i32, i32
  }
  func.func @transform_16(%arg0: i32) -> (i32, i32) {
    %c0_i32 = arith.constant 0 : i32
    %c0_i32_0 = arith.constant 0 : i32
    %c0_i32_1 = arith.constant 0 : i32
    return %c0_i32, %c0_i32_0 : i32, i32
  }
  func.func @transform_17(%arg0: i32) -> (i32, i32) {
    %c0_i32 = arith.constant 0 : i32
    %c0_i32_0 = arith.constant 0 : i32
    %c0_i32_1 = arith.constant 0 : i32
    return %c0_i32, %c0_i32_0 : i32, i32
  }
  func.func @transform_18(%arg0: i32) -> (i32, i32) {
    %c0_i32 = arith.constant 0 : i32
    %c0_i32_0 = arith.constant 0 : i32
    %c0_i32_1 = arith.constant 0 : i32
    return %c0_i32, %c0_i32_0 : i32, i32
  }
  func.func @transform_19(%arg0: i32) -> (i32, i32) {
    %c0_i32 = arith.constant 0 : i32
    %c0_i32_0 = arith.constant 0 : i32
    %c0_i32_1 = arith.constant 0 : i32
    return %c0_i32, %c0_i32_0 : i32, i32
  }
  func.func @transform_20(%arg0: i32) -> (i32, i32) {
    %c0_i32 = arith.constant 0 : i32
    %c0_i32_0 = arith.constant 0 : i32
    %c0_i32_1 = arith.constant 0 : i32
    return %c0_i32, %c0_i32_0 : i32, i32
  }
  func.func @transform_21(%arg0: i32) -> (i32, i32) {
    %c0_i32 = arith.constant 0 : i32
    %c0_i32_0 = arith.constant 0 : i32
    %c0_i32_1 = arith.constant 0 : i32
    return %c0_i32, %c0_i32_0 : i32, i32
  }
  func.func @transform_22(%arg0: i32) -> (i32, i32) {
    %c0_i32 = arith.constant 0 : i32
    %c0_i32_0 = arith.constant 0 : i32
    %c0_i32_1 = arith.constant 0 : i32
    return %c0_i32, %c0_i32_0 : i32, i32
  }
  func.func @transform_23(%arg0: i32) -> (i32, i32) {
    %c0_i32 = arith.constant 0 : i32
    %c0_i32_0 = arith.constant 0 : i32
    %c0_i32_1 = arith.constant 0 : i32
    return %c0_i32, %c0_i32_0 : i32, i32
  }
  func.func @transform_24(%arg0: i32) -> (i32, i32) {
    %c0_i32 = arith.constant 0 : i32
    %c0_i32_0 = arith.constant 0 : i32
    %c0_i32_1 = arith.constant 0 : i32
    return %c0_i32, %c0_i32_0 : i32, i32
  }
  func.func @transform_25(%arg0: i32) -> (i32, i32) {
    %c0_i32 = arith.constant 0 : i32
    %c0_i32_0 = arith.constant 0 : i32
    %c0_i32_1 = arith.constant 0 : i32
    return %c0_i32, %c0_i32_0 : i32, i32
  }
  func.func @transform_26(%arg0: i32) -> (i32, i32) {
    %c0_i32 = arith.constant 0 : i32
    %c0_i32_0 = arith.constant 0 : i32
    %c0_i32_1 = arith.constant 0 : i32
    return %c0_i32, %c0_i32_0 : i32, i32
  }
  func.func @transform_27(%arg0: i32) -> (i32, i32) {
    %c0_i32 = arith.constant 0 : i32
    %c0_i32_0 = arith.constant 0 : i32
    %c0_i32_1 = arith.constant 0 : i32
    return %c0_i32, %c0_i32_0 : i32, i32
  }
  func.func @transform_28(%arg0: i32) -> (i32, i32) {
    %c0_i32 = arith.constant 0 : i32
    %c0_i32_0 = arith.constant 0 : i32
    %c0_i32_1 = arith.constant 0 : i32
    return %c0_i32, %c0_i32_0 : i32, i32
  }
  func.func @transform_29(%arg0: i32) -> (i32, i32) {
    %c0_i32 = arith.constant 0 : i32
    %c0_i32_0 = arith.constant 0 : i32
    %c0_i32_1 = arith.constant 0 : i32
    return %c0_i32, %c0_i32_0 : i32, i32
  }
  func.func @transform_30(%arg0: i32) -> (i32, i32) {
    %c0_i32 = arith.constant 0 : i32
    %c0_i32_0 = arith.constant 0 : i32
    %c0_i32_1 = arith.constant 0 : i32
    return %c0_i32, %c0_i32_0 : i32, i32
  }
  func.func @transform_31(%arg0: i32) -> (i32, i32) {
    %c0_i32 = arith.constant 0 : i32
    %c0_i32_0 = arith.constant 0 : i32
    %c0_i32_1 = arith.constant 0 : i32
    return %c0_i32, %c0_i32_0 : i32, i32
  }
  func.func @transform_32(%arg0: i32) -> (i32, i32, i32) {
    %c0_i32 = arith.constant 0 : i32
    %c0_i32_0 = arith.constant 0 : i32
    %c0_i32_1 = arith.constant 0 : i32
    return %arg0, %c0_i32, %c0_i32_0 : i32, i32, i32
  }
  func.func @transform_33(%arg0: i32) -> (i32, i32, i32) {
    %c0_i32 = arith.constant 0 : i32
    %c0_i32_0 = arith.constant 0 : i32
    %c0_i32_1 = arith.constant 0 : i32
    return %arg0, %c0_i32, %c0_i32_0 : i32, i32, i32
  }
}

</mosaic_0001>

<bundles_post_ra>
// kernel: forward.1
= control target key start
LH: loop header
LB: loop body
LE: loop exit
PB: predicated region body
PF: predicated region fallthrough
CT: control target
= control target key end

     0   :  { %s3950_s6 = smov 1   ;;  %s3951_s10 = smov 2   ;;  %s5066_s0 = inlined_call_operand.smem [shape: u32[34], index: -1, kind: input, shape index: {}] }
   0x1   :  { %s4012_s5 = sld [smem:[%s5066_s0]]   ;;  %s3952_s14 = smov 3  }
   0x2   :  { %s4017_s9 = sld [smem:[%s5066_s0 + %s3950_s6]]   ;;  %s3953_s18 = smov 4  }
   0x3   :  { %s4022_s13 = sld [smem:[%s5066_s0 + %s3951_s10]]   ;;  %s3954_s22 = smov 5  }
   0x4   :  { %s4027_s17 = sld [smem:[%s5066_s0 + %s3952_s14]]   ;;  %s3955_s26 = smov 6  }
   0x5   :  { %s4032_s21 = sld [smem:[%s5066_s0 + %s3953_s18]]   ;;  %s3956_s30 = smov 7  }
   0x6   :  { %s4037_s25 = sld [smem:[%s5066_s0 + %s3954_s22]]   ;;  %s3957_s4 = smov 8  }
   0x7   :  { %5116 = sst [smem:[#allocation6_spill]] %s4012_s5  ;;  %s3958_s10 = smov 9  }
   0x8   :  { %5117 = sst [smem:[#allocation7_spill]] %s4017_s9  ;;  %s3959_s15 = smov 10  }
   0x9   :  { %5118 = sst [smem:[#allocation8_spill]] %s4022_s13  ;;  %s3960_s20 = smov 11  }
   0xa   :  { %5119 = sst [smem:[#allocation9_spill]] %s4027_s17  ;;  %s3962_s1 = smov 13  }
   0xb   :  { %5120 = sst [smem:[#allocation10_spill]] %s4032_s21  ;;  %s3963_s7 = smov 14  }
   0xc   :  { %s4042_s29 = sld [smem:[%s5066_s0 + %s3955_s26]]   ;;  %s3961_s26 = smov 12  }
   0xd   :  { %s4047_s3 = sld [smem:[%s5066_s0 + %s3956_s30]]   ;;  %s3965_s22 = smov 16  }
   0xe   :  { %s4052_s8 = sld [smem:[%s5066_s0 + %s3957_s4]]   ;;  %s3966_s28 = smov 17  }
   0xf   :  { %s4057_s14 = sld [smem:[%s5066_s0 + %s3958_s10]]   ;;  %s3977_s23 = smov 28  }
  0x10   :  { %s4062_s19 = sld [smem:[%s5066_s0 + %s3959_s15]]   ;;  %s3964_s15 = smov 15  }
  0x11   :  { %s4067_s24 = sld [smem:[%s5066_s0 + %s3960_s20]]   ;;  %s3979_s10 = smov 30  }
  0x12   :  { %s4072_s30 = sld [smem:[%s5066_s0 + %s3961_s26]]   ;;  %s3980_s16 = smov 31  }
  0x13   :  { %5121 = sst [smem:[#allocation11_spill]] %s4047_s3 }
  0x14   :  { %5122 = sst [smem:[#allocation12_spill]] %s4052_s8 }
  0x15   :  { %5123 = sst [smem:[#allocation13_spill]] %s4057_s14 }
  0x16   :  { %5124 = sst [smem:[#allocation14_spill]] %s4062_s19 }
  0x17   :  { %5125 = sst [smem:[#allocation15_spill]] %s4067_s24 }
  0x18   :  { %s4077_s6 = sld [smem:[%s5066_s0 + %s3962_s1]]   ;;  %s3978_s1 = smov 29  }
  0x19   :  { %s4082_s12 = sld [smem:[%s5066_s0 + %s3963_s7]]   ;;  %s3967_s7 = smov 18  }
  0x1a   :  { %s4087_s20 = sld [smem:[%s5066_s0 + %s3964_s15]]   ;;  %s3968_s15 = smov 19  }
  0x1b   :  { %s4092_s27 = sld [smem:[%s5066_s0 + %s3965_s22]]   ;;  %s3969_s22 = smov 20  }
  0x1c   :  { %s4097_s4 = sld [smem:[%s5066_s0 + %s3966_s28]]   ;;  %s3970_s28 = smov 21  }
  0x1e   :  { %5126 = sst [smem:[#allocation16_spill]] %s4077_s6 }
  0x1f   :  { %5127 = sst [smem:[#allocation17_spill]] %s4082_s12 }
  0x20   :  { %5128 = sst [smem:[#allocation18_spill]] %s4087_s20 }
  0x21   :  { %5129 = sst [smem:[#allocation19_spill]] %s4092_s27 }
  0x22   :  { %5130 = sst [smem:[#allocation20_spill]] %s4097_s4 }
  0x23   :  { %s4102_s6 = sld [smem:[%s5066_s0 + %s3967_s7]]   ;;  %s3971_s7 = smov 22  }
  0x24   :  { %s4107_s20 = sld [smem:[%s5066_s0 + %s3968_s15]]   ;;  %s3972_s15 = smov 23  }
  0x25   :  { %s4112_s27 = sld [smem:[%s5066_s0 + %s3969_s22]]   ;;  %s3973_s22 = smov 24  }
  0x26   :  { %s4117_s4 = sld [smem:[%s5066_s0 + %s3970_s28]]   ;;  %s3974_s28 = smov 25  }
  0x27   :  { %s4165_s12 = sld [smem:[%s5066_s0 + %s3980_s16]]  }
  0x29   :  { %5131 = sst [smem:[#allocation21_spill]] %s4102_s6 }
  0x2a   :  { %5132 = sst [smem:[#allocation22_spill]] %s4107_s20 }
  0x2b   :  { %5133 = sst [smem:[#allocation23_spill]] %s4112_s27 }
  0x2c   :  { %5134 = sst [smem:[#allocation24_spill]] %s4117_s4 }
  0x2d   :  { %s4122_s6 = sld [smem:[%s5066_s0 + %s3971_s7]]   ;;  %s3975_s7 = smov 26  }
  0x2e   :  { %s4127_s20 = sld [smem:[%s5066_s0 + %s3972_s15]]   ;;  %s3976_s15 = smov 27  }
  0x2f   :  { %s4132_s27 = sld [smem:[%s5066_s0 + %s3973_s22]]  }
  0x30   :  { %s4137_s4 = sld [smem:[%s5066_s0 + %s3974_s28]]  }
  0x33   :  { %5135 = sst [smem:[#allocation25_spill]] %s4122_s6 }
  0x34   :  { %5136 = sst [smem:[#allocation26_spill]] %s4127_s20 }
  0x35   :  { %5137 = sst [smem:[#allocation27_spill]] %s4132_s27 }
  0x36   :  { %5138 = sst [smem:[#allocation28_spill]] %s4137_s4 }
  0x37   :  { %s4142_s6 = sld [smem:[%s5066_s0 + %s3975_s7]]  }
  0x38   :  { %s3415_s20 = sld [smem:[%s5066_s0 + %s3976_s15]]  }
  0x39   :  { %s4150_s27 = sld [smem:[%s5066_s0 + %s3977_s23]]   ;;  %s3981_s23 = smov 32  }
  0x3a   :  { %s4155_s4 = sld [smem:[%s5066_s0 + %s3978_s1]]   ;;  %s3982_s1 = smov 33  }
  0x3d   :  { %5139 = sst [smem:[#allocation29_spill]] %s4142_s6 }
  0x3e   :  { %s4160_s6 = sld [smem:[%s5066_s0 + %s3979_s10]]   ;;  %v73_v0 = vstv %s3415_s20 }
  0x3f   :  { %5140 = sst [smem:[#allocation30_spill]] %s4150_s27  ;;  %74 = vst [vmem:[#allocation2] sm:$0x1] %v73_v0 }
  0x40   :  { %5141 = sst [smem:[#allocation31_spill]] %s4155_s4 }
  0x41   :  { %s4170_s27 = sld [smem:[%s5066_s0 + %s3981_s23]]  }
  0x42   :  { %s4175_s4 = sld [smem:[%s5066_s0 + %s3982_s1]]  }
  0x44   :  { %5142 = sst [smem:[#allocation32_spill]] %s4160_s6 }
  0x45   :  { %75 = vsyncpa [#allocation4], 0 }
  0x46   :  { %77 = vsyncpa [#allocation4 + $0x1], 0  ;;  %s4177_s10 = smov 0   ;;  %s4179_s7 = smov 0  }
  0x47   :  { %s4181_s11 = smov 0   ;;  %s4183_s16 = smov 0  }
  0x48 LB: > { %s5143_s24 = sld [smem:[#allocation15_spill]]  ;;  %s5144_s13 = sld [smem:[#allocation8_spill]]  ;;  %s3948_s16 = sphi %s4183_s16, %s5208_s16   ;;  %s3944_s11 = sphi %s4181_s11, %s5205_s11   ;;  %s3940_s7 = sphi %s4179_s7, %s5207_s7   ;;  %s3936_s10 = sphi %s4177_s10, %s5206_s10  }
  0x49   : > { %s5145_s8 = sld [smem:[#allocation12_spill]]  ;;  %s5146_s6 = sld [smem:[#allocation32_spill]] }
  0x4a   : > { %5147 = sst [smem:[#allocation33_spill]] %s3944_s11  ;;  %s4198_s0 = sadd.s32 4294967295, %s3948_s16  }
  0x4b   : > { %s3423_s20 = sadd.s32 4294967294, %s3948_s16   ;;  %s4202_s15 = sadd.s32 1, %s3948_s16  }
  0x4c   : > { %s793_s18 = sadd.s32 1, %s3944_s11  ;;  %s790_s23 = ssub.s32 %s3948_s16, %s4202_s15 }
  0x4d   : > { %p803_p0 = scmp.ne.s32.totalorder %s3944_s11, %s3940_s7  ;;  %p791_p1 = scmp.eq.s32.totalorder %s790_s23, 0 }
  0x4e   : > { %p804_p2 = scmp.eq.s32.totalorder %s4198_s0, 1  ;;  %p809_p3 = scmp.ne.s32.totalorder %s3940_s7, %s3936_s10 }
  0x4f   : > { %p810_p4 = scmp.eq.s32.totalorder %s3423_s20, 1  ;;  %p3426_p7 = scmp.ge.s32.totalorder %s3948_s16, 1 }
  0x50   : > { %s4213_s22 = scalar_select %p791_p1, %s3944_s11, %s793_s18  }
  0x51   : > { %p4215_p5 = por %p804_p2, %p803_p0  ;;  %p4219_p6 = por %p810_p4, %p809_p3 }
  0x52   : > { %5148 = sst [smem:[#allocation34_spill]] %s4213_s22  ;;  %p929_p8 = scmp.lt.s32.totalorder %s3948_s16, 3 }
  0x54   : > { %p930_p9 = pnand %p3426_p7, %p929_p8 }
  0x55   : > { %s5151_s5 = sld [smem:[#allocation6_spill]] (!%p930_p9)  ;;  %p1016_p10 = scmp.lt.s32.totalorder (!%p930_p9), %s4198_s0, 1  ;;  %v3990_v5 = vmov (!%p930_p9), 0   ;;  %v1208_v6 = vld [vmem:[%s5144_s13] sm:$0xff] (!%p930_p9)  ;;  %v1209_v7 = vld [vmem:[%s5144_s13 + $0x8] sm:$0xff] (!%p930_p9)  ;;  %v1026_v8 = vlaneseq (!%p930_p9)  ;;  %vm1120_vm2 = vcmask (!%p930_p9), 7168  }
  0x56   : > { %933 = sbr.rel (%p930_p9) target bundleno = 4368 (0x1110), region = 148  ;;  %s5086_s18 = smov (!%p930_p9), 17   ;;  %1268 = vmatprep.mubr.bf16.mxu0 (!%p930_p9), %v3990_v5  ;;  %3741 = vset.pattern.permute.xlu0 (!%p930_p9), %v3990_v5  ;;  %vm1090_vm3 = vcmask (!%p930_p9), 138240   ;;  %vm5103_vm5 = vcmask (!%p930_p9), 121856   ;;  %v3992_v17 = vmov (!%p930_p9), 0.0   ;;  %vm1101_vm7 = vcmask (!%p930_p9), 130048  }
  0x57   : > { %s5078_s23 = smov (!%p930_p9), 1   ;;  %s5082_s22 = smov (!%p930_p9), 15   ;;  %3742 = vset.pattern.permute.xlu1 (!%p930_p9), %v3990_v5  ;;  %1515 = vmatprep.mubr.bf16.mxu1 (!%p930_p9), %v3990_v5  ;;  %v4277_v9 = vand.u32 (!%p930_p9), 127, %v1026_v8  ;;  %vm5102_vm8 = vcmask (!%p930_p9), 1039360   ;;  %vm1191_vm9 = vcmask (!%p930_p9), 1043456   ;;  %vm5101_vm10 = vcmask (!%p930_p9), 924672  }
  0x58   : > { %s5088_s11 = smov (!%p930_p9), 113   ;;  %vm5100_vm11 = vcmask (!%p930_p9), 916480   ;;  %vm5099_vm12 = vcmask (!%p930_p9), 908288   ;;  %s5152_s9 = sld [smem:[#allocation7_spill]] (!%p930_p9)  ;;  %vm1229_vm13 = vcmask (!%p930_p9), 1041408   ;;  %vm1225_vm14 = vcmask (!%p930_p9), 293888  }
  0x59   : > { %v1028_v10 = vadd.s32 (!%p930_p9), 128, %v4277_v9  ;;  %v1033_v14 = vand.u32 (!%p930_p9), 15, %v4277_v9  ;;  %s5155_s21 = sld [smem:[#allocation10_spill]] (!%p930_p9)  ;;  %s5159_s17 = sld [smem:[#allocation9_spill]] (!%p930_p9)  ;;  %vm1547_vm15 = vcmask (!%p930_p9), 64512  }
  0x5a   : > { %s5160_s3 = sld [smem:[#allocation11_spill]] (!%p930_p9)  ;;  %s5163_s19 = sld [smem:[#allocation14_spill]] (!%p930_p9) }
  0x5b   : > { %v1040_v13 = vand.u32 (!%p930_p9), 15, %v1028_v10  ;;  %vm1053_vm1 = vcmp.ne.s32.totalorder (!%p930_p9), %v1033_v14, 0  ;;  %vm1059_vm4 = vcmp.ne.s32.totalorder (!%p930_p9), %v1033_v14, 15  ;;  %s5164_s14 = sld [smem:[#allocation13_spill]] (!%p930_p9)  ;;  %s5110_s13 = smov (!%p930_p9), 121  }
  0x5c   : > { %v4286_v20 = vsel (!%p930_p9), %vm1053_vm1, 1.0, %v3992_v17  ;;  %v4290_v24 = vsel (!%p930_p9), %vm1059_vm4, 1.0, %v3992_v17  ;;  %vm2198_vm1 = vcmask (!%p930_p9), 588800  }
  0x5d   : > { %s4227_s28 = scalar_select %p1016_p10, %s4198_s0, 1  ;;  %vm1054_vm0 = vcmp.ne.s32.totalorder %v1040_v13, 0  ;;  %vm1060_vm6 = vcmp.ne.s32.totalorder %v1040_v13, 15 }
  0x5e   : > { %v4282_v18 = vsel %vm1054_vm0, 1.0, %v3992_v17  ;;  %v4296_v30 = vsel %vm1060_vm6, 1.0, %v3992_v17  ;;  %vm3993_vm0 = vmmov 0   ;;  %vm2114_vm6 = vcmask 72704  }
  0x5f   : > { %s3522_s2 = sshll.u32 %s4227_s28, 3 }
  0x60   : > { %s4231_s20 = scalar_lea.vmem %s5151_s5, %s3522_s2  ;;  %s5076_s2 = smov 16  }
  0x61   : > { %v4234_v1 = vld [vmem:[%s4231_s20] sm:$0xff]  ;;  %s5090_s5 = smov 127  }
  0x62   : > { %1086 = vrot.lane.b32.xlu1 %v4234_v1, %s5086_s18  ;;  %1116 = vrot.lane.b32.xlu0 %v4234_v1, %s5078_s23  ;;  %v4242_v2 = vcombine.high %v4234_v1, %v4234_v1 }
  0x64   : > { %v3731_v3 = vpack.i.bf16 %v4242_v2, %v4234_v1  ;;  %v3736_v4 = vpack.i.bf16 %v4234_v1, %v4242_v2 }
  0x66   : > { %1105 = vrot.lane.b32.xlu1 %v4234_v1, %s5082_s22  ;;  %1118 = vrot.lane.b32.xlu0 %v4242_v2, %s5078_s23  ;;  %s5084_s23 = smov 111  }
  0x6a   : > { %1088 = vrot.lane.b32.xlu1 %v4242_v2, %s5086_s18  ;;  %3732 = vrot.lane.b32.xlu0 %v3731_v3, %s5076_s2  ;;  %s5080_s2 = smov 112  }
  0x6e   : > { %1129 = vrot.lane.b32.xlu1 %v4242_v2, %s5090_s5  ;;  %1107 = vrot.lane.b32.xlu0 %v4242_v2, %s5082_s22 }
  0x72   : > { %1140 = vrot.lane.b32.xlu1 %v4242_v2, %s5088_s11  ;;  %1127 = vrot.lane.b32.xlu0 %v4234_v1, %s5090_s5 }
  0x76   : > { %1138 = vrot.lane.b32.xlu1 %v4234_v1, %s5088_s11  ;;  %3737 = vrot.lane.b32.xlu0 %v3736_v4, %s5080_s2  ;;  %s5153_s2 = smov 1  }
  0x7a   : > { %1159 = vrot.lane.b32.xlu1 %v4242_v2, %s5084_s23  ;;  %1157 = vrot.lane.b32.xlu0 %v4234_v1, %s5084_s23 }
  0x7e   : > { %1212 = vperm.xlu0 %3741, %v1208_v6   ;;  %1217 = vperm.xlu1 %3742, %v1209_v7  }
  0xd4   : > { %v1087_v11 = vpop.permute.xlu1 %1086  ;;  %v1117_v12 = vpop.permute.xlu0 %1116 }
  0xd5   : > { %v1124_v21 = vsel %vm1120_vm2, 0.0, %v1117_v12  ;;  %v1094_v27 = vsel %vm1090_vm3, 0.0, %v1087_v11 }
  0xd6   : > { %v1125_v31 = vmul.f32 %v4286_v20, %v1124_v21  ;;  %v1095_v39 = vmul.f32 %v4286_v20, %v1094_v27 }
  0xd8   : > { %v1106_v15 = vpop.permute.xlu1 %1105  ;;  %v1119_v16 = vpop.permute.xlu0 %1118  ;;  %v1175_v46 = vrot.slane %v1125_v31, 4 }
  0xd9   : > { %v1121_v19 = vsel %vm1120_vm2, %v1117_v12, %v1119_v16  ;;  %v1113_v28 = vsel %vm5103_vm5, 0.0, %v1106_v15 }
  0xda   : > { %v1126_v29 = vmul.f32 %v4282_v18, %v1121_v19  ;;  %v1114_v40 = vmul.f32 %v4290_v24, %v1113_v28 }
  0xdc   : > { %v1089_v22 = vpop.permute.xlu1 %1088  ;;  %v3733_v23 = vpop.permute.xlu0 %3732  ;;  %v1176_v43 = vrot.slane %v1126_v29, 4  ;;  %v1194_v55 = vsel %vm1191_vm9, %v1114_v40, %v1175_v46 }
  0xdd   : > { %v3735_v25 = vunpack.i.h.bf16 %v3733_v23  ;;  %v3734_v26 = vunpack.i.l.bf16 %v3733_v23  ;;  %v1091_v32 = vsel %vm1090_vm3, %v1087_v11, %v1089_v22 }
  0xde   : > { %v1096_v44 = vmul.f32 %v4282_v18, %v1091_v32  ;;  %v3814_v32 = vld [vmem:[%s5152_s9] sm:$0xff]   ;;  %s5158_s9 = smov 111  }
  0xdf   : > { %v1104_v33 = vsel %vm1101_vm7, 0.0, %v3734_v26  ;;  %v1102_v34 = vsel %vm1101_vm7, %v3734_v26, %v3735_v25 }
  0xe0   : > { %v1169_v35 = vrot.slane %v1104_v33, 4  ;;  %v1130_v36 = vpop.permute.xlu1 %1129  ;;  %v1108_v37 = vpop.permute.xlu0 %1107  ;;  %v1170_v38 = vrot.slane %v1102_v34, 4 }
  0xe1   : > { %v1135_v41 = vsel %vm5102_vm8, %v1130_v36, 0.0  ;;  %v1110_v42 = vsel %vm5103_vm5, %v1106_v15, %v1108_v37 }
  0xe2   : > { %v1115_v45 = vmul.f32 %v4296_v30, %v1110_v42  ;;  %v1192_v47 = vsel %vm1191_vm9, %v1095_v39, %v1169_v35  ;;  %v1137_v48 = vmul.f32 %v4296_v30, %v1135_v41  ;;  %v1193_v51 = vsel %vm1191_vm9, %v1096_v44, %v1170_v38 }
  0xe3   : > { %v1200_v57 = vpack.c.bf16 %v1194_v55, %v1192_v47 }
  0xe4   : > { %v1141_v49 = vpop.permute.xlu1 %1140  ;;  %v1128_v50 = vpop.permute.xlu0 %1127  ;;  %v1195_v52 = vsel %vm1191_vm9, %v1115_v45, %v1176_v43  ;;  %v1183_v58 = vrot.slane %v1137_v48, 4 }
  0xe5   : > { %v1132_v53 = vsel %vm5102_vm8, %v1128_v50, %v1130_v36  ;;  %v1201_v54 = vpack.c.bf16 %v1195_v52, %v1193_v51  ;;  %v1146_v59 = vsel %vm5101_vm10, %v1141_v49, 0.0  ;;  %v1474_v50 = vld [vmem:[%s5155_s21] sm:$0xff]  ;;  %v1531_v52 = vld [vmem:[%s4042_s29 + $0x8] sm:$0xff]  ;;  %s5177_s21 = smov 119  }
  0xe6   : > { %v1136_v56 = vmul.f32 %v4290_v24, %v1132_v53  ;;  %v1148_v7 = vmul.f32 %v4282_v18, %v1146_v59  ;;  %v1197_v19 = vsel %vm1191_vm9, %v4242_v2, %v1183_v58  ;;  %v1530_v51 = vld [vmem:[%s4042_s29] sm:$0xff] }
  0xe7   : > { %1236 = vmatprep.subr.bf16.mxu0 %v1201_v54  ;;  %v1632_v53 = vld [vmem:[%s5145_s8] sm:$0xff]  ;;  %v1633_v54 = vld [vmem:[%s5145_s8 + $0x8] sm:$0xff]  ;;  %s5114_s8 = smov 7  }
  0xe8   : > { %v1139_v60 = vpop.permute.xlu1 %1138  ;;  %v3738_v61 = vpop.permute.xlu0 %3737  ;;  %1237 = vmatpush1.bf16.msra.mxu0 %v1200_v57  ;;  %v1182_v62 = vrot.slane %v1136_v56, 4 }
  0xe9   : > { %v1143_v63 = vsel %vm5101_vm10, %v1139_v60, %v1141_v49  ;;  %v3740_v0 = vunpack.i.h.bf16 %v3738_v61  ;;  %v3739_v3 = vunpack.i.l.bf16 %v3738_v61 }
  0xea   : > { %v1147_v10 = vmul.f32 %v4286_v20, %v1143_v63  ;;  %v1196_v21 = vsel %vm1191_vm9, %v4234_v1, %v1182_v62 }
  0xeb   : > { %v1154_v4 = vsel %vm5100_vm11, %v3740_v0, %v3739_v3  ;;  %v1156_v6 = vsel %vm5100_vm11, %v3739_v3, 0.0 }
  0xec   : > { %v1187_v11 = vrot.slane %v1154_v4, 4  ;;  %v1188_v12 = vrot.slane %v1156_v6, 4  ;;  %v1160_v13 = vpop.permute.xlu1 %1159  ;;  %v1158_v14 = vpop.permute.xlu0 %1157 }
  0xed   : > { %v1165_v15 = vsel %vm5099_vm12, %v1160_v13, 0.0  ;;  %v1162_v16 = vsel %vm5099_vm12, %v1158_v14, %v1160_v13 }
  0xee   : > { %v1167_v22 = vmul.f32 %v4296_v30, %v1165_v15  ;;  %v1166_v23 = vmul.f32 %v4290_v24, %v1162_v16  ;;  %v1199_v25 = vsel %vm1191_vm9, %v1148_v7, %v1188_v12  ;;  %v1198_v26 = vsel %vm1191_vm9, %v1147_v10, %v1187_v11 }
  0xef   : > { %v1203_v27 = vpack.c.bf16 %v1199_v25, %v1197_v19  ;;  %v1202_v28 = vpack.c.bf16 %v1198_v26, %v1196_v21 }
  0xf0   : > { %v1205_v29 = vpack.c.bf16 %v1167_v22, %v1167_v22  ;;  %v1204_v31 = vpack.c.bf16 %v1166_v23, %v1166_v23 }
  0xf1   : > { %1238 = vmatprep.subr.bf16.mxu0 %v1203_v27 }
  0xf2   : > { %1239 = vmatpush1.bf16.msra.mxu0 %v1202_v28  ;;  %v1231_v2 = vsel %vm1229_vm13, %v1204_v31, 0 }
  0xf3   : > { %3437 = vmatprep.subr.msk.bf16.mxu0 %vm1229_vm13, %v1205_v29 }
  0xf6   : > { %1241 = vmatpush1.bf16.msra.mxu0 %v1231_v2 }
  0xf7   : > { %3573 = vmatprep.subr.bf16.mxu0 %v3992_v17 }
  0xf9   : > { %3438 = vmatmul.mubr.msk.bf16.vlgmr.msra.gmra.mrb[0].mxu0 %vm1225_vm14, %v3814_v32  ;;  %vm3468_vm14 = vmneg %vm1547_vm15 }
  0xfa   : > { %3575 = vmatprep.mubr.msk.bf16.mxu0 %vm3993_vm0, %v3992_v17 }
  0xfd   : > { %v1213_v1 = vpop.permute.xlu0 %1212  ;;  %v1218_v41 = vpop.permute.xlu1 %1217 }
 0x1cc   : > { %v1270_v33 = vpop.f32.mrb[0].mxu0 }
 0x1cd   : > { %v1271_v34 = vadd.f32 %v1270_v33, %v1213_v1  ;;  %v1272_v35 = vpop.f32.mrb[1].mxu0 }
 0x1ce   : > { %v1273_v36 = vadd.f32 %v1272_v35, %v1213_v1  ;;  %v1274_v37 = vpop.f32.mrb[2].mxu0 }
 0x1cf   : > { %v4333_v38 = vmax.f32 %v1271_v34, 0.0  ;;  %v1276_v39 = vpop.f32.mrb[3].mxu0  ;;  %v1275_v42 = vadd.f32 %v1274_v37, %v1218_v41 }
 0x1d0   : > { %v4335_v40 = vmax.f32 %v1273_v36, 0.0  ;;  %v1277_v45 = vadd.f32 %v1276_v39, %v1218_v41 }
 0x1d1   : > { %1287 = vrot.lane.b32.xlu1 %v4333_v38, %s5086_s18  ;;  %v4353_v43 = vmax.f32 %v1275_v42, 0.0 }
 0x1d2   : > { %1289 = vrot.lane.b32.xlu0 %v4335_v40, %s5086_s18  ;;  %v3743_v44 = vpack.i.bf16 %v4335_v40, %v4333_v38  ;;  %v4364_v46 = vmax.f32 %v1277_v45, 0.0 }
 0x1d3   : > { %v3753_v49 = vpack.i.bf16 %v4353_v43, %v4333_v38 }
 0x1d4   : > { %v3748_v47 = vpack.i.bf16 %v4364_v46, %v4353_v43  ;;  %v3758_v48 = vpack.i.bf16 %v4364_v46, %v4335_v40 }
 0x1d5   : > { %1331 = vrot.lane.b32.xlu1 %v4333_v38, %s5082_s22 }
 0x1d6   : > { %1333 = vrot.lane.b32.xlu0 %v4335_v40, %s5082_s22  ;;  %s5154_s22 = smov 16  }
 0x1d9   : > { %1355 = vrot.lane.b32.xlu1 %v4333_v38, %s5153_s2 }
 0x1da   : > { %1357 = vrot.lane.b32.xlu0 %v4335_v40, %s5153_s2 }
 0x1dd   : > { %1379 = vrot.lane.b32.xlu1 %v4333_v38, %s5090_s5 }
 0x1de   : > { %1449 = vrot.lane.b32.xlu0 %v4335_v40, %s5084_s23  ;;  %s5156_s23 = smov 15  }
 0x1e1   : > { %1403 = vrot.lane.b32.xlu1 %v4333_v38, %s5088_s11 }
 0x1e2   : > { %1383 = vrot.lane.b32.xlu0 %v4353_v43, %s5090_s5 }
 0x1e5   : > { %3744 = vrot.lane.b32.xlu1 %v3743_v44, %s5154_s22 }
 0x1e6   : > { %1407 = vrot.lane.b32.xlu0 %v4353_v43, %s5088_s11 }
 0x1e9   : > { %1381 = vrot.lane.b32.xlu1 %v4335_v40, %s5090_s5 }
 0x1ea   : > { %1293 = vrot.lane.b32.xlu0 %v4364_v46, %s5086_s18 }
 0x1ed   : > { %1405 = vrot.lane.b32.xlu1 %v4335_v40, %s5088_s11 }
 0x1ee   : > { %3749 = vrot.lane.b32.xlu0 %v3748_v47, %s5154_s22 }
 0x1f1   : > { %1291 = vrot.lane.b32.xlu1 %v4353_v43, %s5086_s18  ;;  %s5157_s18 = smov 112  }
 0x1f2   : > { %1337 = vrot.lane.b32.xlu0 %v4364_v46, %s5156_s23 }
 0x1f5   : > { %1335 = vrot.lane.b32.xlu1 %v4353_v43, %s5156_s23 }
 0x1f6   : > { %1361 = vrot.lane.b32.xlu0 %v4364_v46, %s5153_s2 }
 0x1f9   : > { %1359 = vrot.lane.b32.xlu1 %v4353_v43, %s5153_s2 }
 0x1fa   : > { %1385 = vrot.lane.b32.xlu0 %v4364_v46, %s5090_s5 }
 0x1fd   : > { %3759 = vrot.lane.b32.xlu1 %v3758_v48, %s5157_s18 }
 0x1fe   : > { %1409 = vrot.lane.b32.xlu0 %v4364_v46, %s5088_s11  ;;  %s5161_s11 = smov 17  }
 0x201   : > { %1453 = vrot.lane.b32.xlu1 %v4364_v46, %s5158_s9 }
 0x202   : > { %3754 = vrot.lane.b32.xlu0 %v3753_v49, %s5157_s18 }
 0x205   : > { %1447 = vrot.lane.b32.xlu1 %v4333_v38, %s5158_s9 }
 0x206   : > { %1451 = vrot.lane.b32.xlu0 %v4353_v43, %s5158_s9 }
 0x209   : > { %1477 = vperm.xlu1 %3742, %v1474_v50  }
 0x20a   : > { %1534 = vperm.xlu0 %3741, %v1530_v51  }
 0x20d   : > { %1539 = vperm.xlu1 %3742, %v1531_v52  }
 0x20e   : > { %1636 = vperm.xlu0 %3741, %v1632_v53  }
 0x211   : > { %1641 = vperm.xlu1 %3742, %v1633_v54  }
 0x243   : > { %v1288_v55 = vpop.permute.xlu1 %1287 }
 0x244   : > { %v1290_v56 = vpop.permute.xlu0 %1289  ;;  %v1301_v7 = vsel %vm1090_vm3, 0.0, %v1288_v55 }
 0x245   : > { %v1295_v6 = vsel %vm1090_vm3, %v1288_v55, %v1290_v56  ;;  %v1303_v15 = vmul.f32 %v4286_v20, %v1301_v7 }
 0x246   : > { %v1304_v13 = vmul.f32 %v4282_v18, %v1295_v6 }
 0x247   : > { %v1332_v57 = vpop.permute.xlu1 %1331  ;;  %v1307_v26 = vmax.f32 %v4333_v38, %v1303_v15 }
 0x248   : > { %v1334_v58 = vpop.permute.xlu0 %1333  ;;  %v1308_v21 = vmax.f32 %v4335_v40, %v1304_v13  ;;  %v1345_v27 = vsel %vm5103_vm5, 0.0, %v1332_v57 }
 0x249   : > { %v1339_v22 = vsel %vm5103_vm5, %v1332_v57, %v1334_v58  ;;  %v1347_v39 = vmul.f32 %v4290_v24, %v1345_v27 }
 0x24a   : > { %v1348_v29 = vmul.f32 %v4296_v30, %v1339_v22 }
 0x24b   : > { %v1356_v59 = vpop.permute.xlu1 %1355 }
 0x24c   : > { %v1358_v60 = vpop.permute.xlu0 %1357  ;;  %v1369_v31 = vsel %vm1120_vm2, 0.0, %v1356_v59 }
 0x24d   : > { %v1363_v2 = vsel %vm1120_vm2, %v1356_v59, %v1358_v60  ;;  %v1371_v44 = vmul.f32 %v4286_v20, %v1369_v31 }
 0x24e   : > { %v1372_v45 = vmul.f32 %v4282_v18, %v1363_v2 }
 0x24f   : > { %v1380_v61 = vpop.permute.xlu1 %1379 }
 0x250   : > { %v4406_v62 = vpop.permute.xlu0 %1449 }
 0x253   : > { %v4408_v63 = vpop.permute.xlu1 %1403 }
 0x254   : > { %v4410_v0 = vpop.permute.xlu0 %1383 }
 0x257   : > { %v3745_v3 = vpop.permute.xlu1 %3744 }
 0x258   : > { %v4412_v4 = vpop.permute.xlu0 %1407  ;;  %v3747_v10 = vunpack.i.h.bf16 %v3745_v3  ;;  %v3746_v11 = vunpack.i.l.bf16 %v3745_v3 }
 0x25a   : > { %v1319_v16 = vsel %vm1101_vm7, %v3746_v11, %v3747_v10  ;;  %v1325_v23 = vsel %vm1101_vm7, 0.0, %v3746_v11 }
 0x25b   : > { %v1382_v12 = vpop.permute.xlu1 %1381  ;;  %v1328_v28 = vmax.f32 %v1308_v21, %v1319_v16  ;;  %v1327_v32 = vmax.f32 %v1307_v26, %v1325_v23 }
 0x25c   : > { %v1294_v14 = vpop.permute.xlu0 %1293  ;;  %v1393_v49 = vsel %vm5102_vm8, %v1382_v12, 0.0  ;;  %v1387_v10 = vsel %vm5102_vm8, %v1380_v61, %v1382_v12 }
 0x25d   : > { %v1352_v47 = vmax.f32 %v1328_v28, %v1348_v29  ;;  %v1351_v48 = vmax.f32 %v1327_v32, %v1347_v39  ;;  %v1396_v11 = vmul.f32 %v4296_v30, %v1393_v49  ;;  %v1395_v12 = vmul.f32 %v4290_v24, %v1387_v10 }
 0x25f   : > { %v1406_v19 = vpop.permute.xlu1 %1405  ;;  %v1376_v6 = vmax.f32 %v1352_v47, %v1372_v45  ;;  %v1375_v7 = vmax.f32 %v1351_v48, %v1371_v44  ;;  %v1461_v47 = vsel %vm5099_vm12, %v4406_v62, 0.0 }
 0x260   : > { %v3750_v25 = vpop.permute.xlu0 %3749  ;;  %v1417_v13 = vsel %vm5101_vm10, %v1406_v19, 0.0  ;;  %v1411_v2 = vsel %vm5101_vm10, %v4408_v63, %v1406_v19 }
 0x261   : > { %v3752_v33 = vunpack.i.h.bf16 %v3750_v25  ;;  %v3751_v34 = vunpack.i.l.bf16 %v3750_v25  ;;  %v1400_v28 = vmax.f32 %v1376_v6, %v1396_v11  ;;  %v1420_v29 = vmul.f32 %v4282_v18, %v1417_v13 }
 0x262   : > { %v1419_v44 = vmul.f32 %v4286_v20, %v1411_v2 }
 0x263   : > { %v1292_v1 = vpop.permute.xlu1 %1291  ;;  %v1320_v53 = vsel %vm1101_vm7, %v3751_v34, %v3752_v33  ;;  %v1326_v54 = vsel %vm1101_vm7, 0.0, %v3751_v34  ;;  %v1424_v63 = vmax.f32 %v1400_v28, %v1420_v29  ;;  %v1471_v28 = vld [vmem:[%s5159_s17] sm:$0xf]  ;;  %s5106_s17 = smov 120  }
 0x264   : > { %v1296_v35 = vsel %vm1090_vm3, %v1292_v1, %v1294_v14  ;;  %v1302_v36 = vsel %vm1090_vm3, 0.0, %v1292_v1  ;;  %v1338_v37 = vpop.permute.xlu0 %1337 }
 0x265   : > { %v1305_v41 = vmul.f32 %v4286_v20, %v1302_v36  ;;  %v1306_v42 = vmul.f32 %v4282_v18, %v1296_v35  ;;  %v1399_v35 = vmax.f32 %v1375_v7, %v1395_v12 }
 0x267   : > { %v1309_v50 = vmax.f32 %v4353_v43, %v1305_v41  ;;  %v1310_v51 = vmax.f32 %v4364_v46, %v1306_v42  ;;  %v1336_v52 = vpop.permute.xlu1 %1335 }
 0x268   : > { %v1340_v55 = vsel %vm5103_vm5, %v1336_v52, %v1338_v37  ;;  %v1346_v56 = vsel %vm5103_vm5, 0.0, %v1336_v52  ;;  %v1362_v57 = vpop.permute.xlu0 %1361 }
 0x269   : > { %v1329_v58 = vmax.f32 %v1309_v50, %v1326_v54  ;;  %v1330_v59 = vmax.f32 %v1310_v51, %v1320_v53  ;;  %v1349_v60 = vmul.f32 %v4290_v24, %v1346_v56  ;;  %v1350_v3 = vmul.f32 %v4296_v30, %v1340_v55 }
 0x26b   : > { %v1360_v14 = vpop.permute.xlu1 %1359  ;;  %v1353_v15 = vmax.f32 %v1329_v58, %v1349_v60  ;;  %v1354_v16 = vmax.f32 %v1330_v59, %v1350_v3  ;;  %v1423_v58 = vmax.f32 %v1399_v35, %v1419_v44  ;;  %v1464_v60 = vmul.f32 %v4296_v30, %v1461_v47 }
 0x26c   : > { %v1364_v21 = vsel %vm1120_vm2, %v1360_v14, %v1362_v57  ;;  %v1370_v22 = vsel %vm1120_vm2, 0.0, %v1360_v14  ;;  %v1386_v23 = vpop.permute.xlu0 %1385 }
 0x26d   : > { %v1373_v25 = vmul.f32 %v4286_v20, %v1370_v22  ;;  %v1374_v26 = vmul.f32 %v4282_v18, %v1364_v21  ;;  %v1388_v27 = vsel %vm5102_vm8, %v4410_v0, %v1386_v23  ;;  %v1394_v61 = vsel %vm5102_vm8, %v1386_v23, 0.0 }
 0x26e   : > { %v1398_v31 = vmul.f32 %v4296_v30, %v1394_v61  ;;  %v1397_v33 = vmul.f32 %v4290_v24, %v1388_v27 }
 0x26f   : > { %v1377_v32 = vmax.f32 %v1353_v15, %v1373_v25  ;;  %v1378_v1 = vmax.f32 %v1354_v16, %v1374_v26  ;;  %v3760_v34 = vpop.permute.xlu1 %3759 }
 0x270   : > { %v3761_v36 = vunpack.i.l.bf16 %v3760_v34  ;;  %v1410_v0 = vpop.permute.xlu0 %1409  ;;  %v3762_v39 = vunpack.i.h.bf16 %v3760_v34 }
 0x271   : > { %v1402_v37 = vmax.f32 %v1378_v1, %v1398_v31  ;;  %v1412_v41 = vsel %vm5101_vm10, %v4412_v4, %v1410_v0  ;;  %v1418_v42 = vsel %vm5101_vm10, %v1410_v0, 0.0  ;;  %v1401_v48 = vmax.f32 %v1377_v32, %v1397_v33 }
 0x272   : > { %v1422_v45 = vmul.f32 %v4282_v18, %v1418_v42  ;;  %v1441_v19 = vsel %vm5100_vm11, %v3761_v36, 0.0  ;;  %v1421_v49 = vmul.f32 %v4286_v20, %v1412_v41  ;;  %v1442_v56 = vsel %vm5100_vm11, %v3762_v39, 0.0 }
 0x273   : > { %v1454_v50 = vpop.permute.xlu1 %1453  ;;  %v1444_v53 = vmax.f32 %v1424_v63, %v1441_v19 }
 0x274   : > { %v1462_v51 = vsel %vm5099_vm12, %v1454_v50, 0.0  ;;  %v3755_v52 = vpop.permute.xlu0 %3754  ;;  %v1426_v4 = vmax.f32 %v1402_v37, %v1422_v45  ;;  %v1425_v3 = vmax.f32 %v1401_v48, %v1421_v49 }
 0x275   : > { %v3757_v54 = vunpack.i.h.bf16 %v3755_v52  ;;  %v3756_v55 = vunpack.i.l.bf16 %v3755_v52  ;;  %v1466_v57 = vmul.f32 %v4296_v30, %v1462_v51  ;;  %v1468_v14 = vmax.f32 %v1444_v53, %v1464_v60 }
 0x276   : > { %v1446_v59 = vmax.f32 %v1426_v4, %v1442_v56 }
 0x277   : > { %v1448_v6 = vpop.permute.xlu1 %1447  ;;  %v1435_v7 = vsel %vm5100_vm11, %v3756_v55, %v3761_v36  ;;  %v1436_v10 = vsel %vm5100_vm11, %v3757_v54, %v3762_v39  ;;  %v3815_v39 = vld [vmem:[%s4037_s25] sm:$0xff]  }
 0x278   : > { %v1455_v11 = vsel %vm5099_vm12, %v1448_v6, %v4406_v62  ;;  %v1452_v13 = vpop.permute.xlu0 %1451  ;;  %v1470_v15 = vmax.f32 %v1446_v59, %v1466_v57  ;;  %v1443_v16 = vmax.f32 %v1423_v58, %v1435_v7  ;;  %v1445_v26 = vmax.f32 %v1425_v3, %v1436_v10 }
 0x279   : > { %v1463_v21 = vmul.f32 %v4290_v24, %v1455_v11  ;;  %v1456_v22 = vsel %vm5099_vm12, %v1452_v13, %v1454_v50 }
 0x27a   : > { %v1465_v23 = vmul.f32 %v4290_v24, %v1456_v22  ;;  %v1473_v25 = vpack.c.bf16 %v1470_v15, %v1468_v14 }
 0x27b   : > { %v1467_v27 = vmax.f32 %v1443_v16, %v1463_v21 }
 0x27c   : > { %1483 = vmatprep.subr.bf16.mxu1 %v1473_v25  ;;  %v1469_v61 = vmax.f32 %v1445_v26, %v1465_v23  ;;  %v3816_v23 = vld [vmem:[%s5160_s3] sm:$0xff]   ;;  %s5162_s3 = smov 113  }
 0x27e   : > { %v1472_v12 = vpack.c.bf16 %v1469_v61, %v1467_v27 }
 0x280   : > { %1484 = vmatpush1.bf16.msra.mxu1 %v1472_v12 }
 0x283   : > { %3439 = vmatmul.mubr.msk.bf16.vlgmr.msra.gmra.mrb[0].mxu1 %vm1101_vm7, %v1471_v28 }
 0x284   : > { %1589 = vmatprep.mubr.bf16.mxu1 %v3990_v5 }
 0x288   : > { %v1478_v62 = vpop.permute.xlu1 %1477 }
 0x289   : > { %v1535_v41 = vpop.permute.xlu0 %1534 }
 0x28c   : > { %v1540_v63 = vpop.permute.xlu1 %1539 }
 0x28d   : > { %v1637_v25 = vpop.permute.xlu0 %1636 }
 0x356   : > { %v1517_v29 = vpop.f32.mrb[0].mxu1 }
 0x357   : > { %v1518_v31 = vadd.f32 %v1517_v29, %v1478_v62  ;;  %v1519_v2 = vpop.f32.mrb[1].mxu1  ;;  %v3817_v29 = vld [vmem:[%s5146_s6 + $0x40] sm:$0xff]  }
 0x358   : > { %v1520_v32 = vadd.f32 %v1519_v2, %v1478_v62  ;;  %v1521_v1 = vpop.f32.mrb[2].mxu1  ;;  %v3818_v2 = vld [vmem:[%s5146_s6] sm:$0xff]  }
 0x359   : > { %v1524_v33 = vmax.f32 %v1518_v31, 0.0  ;;  %v1522_v34 = vpop.f32.mrb[3].mxu1  ;;  %v3819_v1 = vld [vmem:[%s5146_s6 + $0x48] sm:$0xff]  }
 0x35a   : > { %v1525_v35 = vmax.f32 %v1520_v32, 0.0  ;;  %v3820_v34 = vld [vmem:[%s5146_s6 + $0x8] sm:$0xff]  }
 0x35b   : > { %v1528_v36 = vpack.c.bf16 %v1524_v33, %v1524_v33 }
 0x35c   : > { %v1529_v0 = vpack.c.bf16 %v1525_v35, %v1525_v35  ;;  %v3821_v35 = vld [vmem:[%s5146_s6 + $0x50] sm:$0xff]  }
 0x35d   : > { %v1552_v37 = vsel %vm1191_vm9, %v1528_v36, 0 }
 0x35e   : > { %3441 = vmatprep.subr.msk.bf16.mxu1 %vm1191_vm9, %v1529_v0  ;;  %v3822_v0 = vld [vmem:[%s5146_s6 + $0x10] sm:$0xff]  }
 0x35f   : > { %1558 = vmatpush1.bf16.msra.mxu1 %v1552_v37  ;;  %v3823_v37 = vld [vmem:[%s5146_s6 + $0x58] sm:$0xff]  }
 0x362   : > { %3442 = vmatmul.mubr.msk.bf16.vlgmr.msra.gmra.mrb[4].mxu1 %vm1547_vm15, %v3815_v39 }
 0x363   : > { %1684 = vmatprep.mubr.bf16.mxu1 %v3990_v5 }
 0x435   : > { %v1591_v42 = vpop.f32.mrb[4].mxu1 }
 0x436   : > { %v1592_v44 = vadd.f32 %v1591_v42, %v1535_v41  ;;  %v1593_v45 = vpop.f32.mrb[5].mxu1  ;;  %v3825_v42 = vld [vmem:[%s5146_s6 + $0x60] sm:$0xff]  }
 0x437   : > { %v1594_v19 = vadd.f32 %v1593_v45, %v1535_v41  ;;  %v1595_v47 = vpop.f32.mrb[6].mxu1  ;;  %v3824_v41 = vld [vmem:[%s5146_s6 + $0x18] sm:$0xff]   ;;  %v3827_v45 = vld [vmem:[%s5146_s6 + $0x68] sm:$0xff]  }
 0x438   : > { %v3443_v48 = vmul.f32 -1.442695, %v1592_v44  ;;  %v1596_v49 = vadd.f32 %v1595_v47, %v1540_v63  ;;  %v1597_v50 = vpop.f32.mrb[7].mxu1  ;;  %v3826_v44 = vld [vmem:[%s5146_s6 + $0x20] sm:$0xff]   ;;  %v3830_v47 = vld [vmem:[%s5146_s6 + $0x30] sm:$0xff]  }
 0x439   : > { %v3444_v51 = vmul.f32 -1.442695, %v1594_v19  ;;  %v1598_v52 = vadd.f32 %v1597_v50, %v1540_v63  ;;  %v3828_v63 = vld [vmem:[%s5146_s6 + $0x28] sm:$0xff]   ;;  %v3829_v19 = vld [vmem:[%s5146_s6 + $0x70] sm:$0xff]   ;;  %v3832_v50 = vld [vmem:[%s5146_s6 + $0x38] sm:$0xff]  }
 0x43a   : > { %3853 = vpow2.f32 %v3443_v48  ;;  %v3445_v4 = vmul.f32 -1.442695, %v1596_v49  ;;  %v3831_v49 = vld [vmem:[%s5146_s6 + $0x78] sm:$0xff]   ;;  %s5097_s6 = smov 9  }
 0x43b   : > { %3855 = vpow2.f32 %v3444_v51  ;;  %v3446_v53 = vmul.f32 -1.442695, %v1598_v52  ;;  %v2060_v52 = vld [vmem:[%s5163_s19] sm:$0xff]  ;;  %s5176_s19 = smov 121  }
 0x43c   : > { %3857 = vpow2.f32 %v3445_v4 }
 0x43d   : > { %3859 = vpow2.f32 %v3446_v53 }
 0x444   : > { %v3854_v54 = vpop.eup %3853 }
 0x445   : > { %v3856_v55 = vpop.eup %3855  ;;  %v1612_v56 = vadd.f32 1.0, %v3854_v54 }
 0x446   : > { %v3858_v57 = vpop.eup %3857  ;;  %v1613_v58 = vadd.f32 1.0, %v3856_v55 }
 0x447   : > { %v3860_v59 = vpop.eup %3859  ;;  %3861 = vrcp.f32 %v1612_v56  ;;  %v1614_v60 = vadd.f32 1.0, %v3858_v57 }
 0x448   : > { %3863 = vrcp.f32 %v1613_v58  ;;  %v1615_v3 = vadd.f32 1.0, %v3860_v59 }
 0x449   : > { %3865 = vrcp.f32 %v1614_v60 }
 0x44a   : > { %3867 = vrcp.f32 %v1615_v3 }
 0x451   : > { %v3862_v6 = vpop.eup %3861 }
 0x452   : > { %v3864_v7 = vpop.eup %3863  ;;  %v1624_v13 = vmul.f32 %v3862_v6, %v4333_v38 }
 0x453   : > { %v3866_v10 = vpop.eup %3865  ;;  %v1625_v15 = vmul.f32 %v3864_v7, %v4335_v40 }
 0x454   : > { %v3868_v11 = vpop.eup %3867  ;;  %v1626_v14 = vmul.f32 %v3866_v10, %v4353_v43 }
 0x455   : > { %v1627_v16 = vmul.f32 %v3868_v11, %v4364_v46  ;;  %v1642_v46 = vpop.permute.xlu1 %1641 }
 0x456   : > { %v1630_v21 = vpack.c.bf16 %v1626_v14, %v1624_v13 }
 0x457   : > { %v1631_v22 = vpack.c.bf16 %v1627_v16, %v1625_v15 }
 0x459   : > { %1652 = vmatprep.subr.bf16.mxu1 %v1631_v22 }
 0x45a   : > { %1653 = vmatpush1.bf16.msra.mxu1 %v1630_v21 }
 0x45b   : > { %3523 = vmatprep.subr.bf16.mxu1 %v3817_v29 }
 0x45d   : > { %3448 = vmatmul.mubr.msk.bf16.vlgmr.msra.gmra.mrb[8].mxu1 %vm1101_vm7, %v3816_v23 }
 0x45e   : > { %3524 = vmatpush3.bf16.msra.mxu1 %v3818_v2 }
 0x45f   : > { %3525 = vmatprep.subr.bf16.mxu1 %v3819_v1 }
 0x462   : > { %3526 = vmatpush3.bf16.msra.mxu1 %v3820_v34 }
 0x463   : > { %3527 = vmatprep.subr.bf16.mxu1 %v3821_v35 }
 0x466   : > { %3528 = vmatpush3.bf16.msra.mxu1 %v3822_v0 }
 0x467   : > { %3529 = vmatprep.subr.bf16.mxu1 %v3823_v37 }
 0x46a   : > { %3530 = vmatpush3.bf16.msra.mxu1 %v3824_v41 }
 0x46b   : > { %3531 = vmatprep.subr.bf16.mxu1 %v3825_v42 }
 0x46e   : > { %3532 = vmatpush3.bf16.msra.mxu1 %v3826_v44 }
 0x46f   : > { %3533 = vmatprep.subr.bf16.mxu1 %v3827_v45 }
 0x472   : > { %3534 = vmatpush3.bf16.msra.mxu1 %v3828_v63 }
 0x473   : > { %3535 = vmatprep.subr.bf16.mxu1 %v3829_v19 }
 0x476   : > { %3536 = vmatpush3.bf16.msra.mxu1 %v3830_v47 }
 0x477   : > { %3537 = vmatprep.subr.bf16.mxu1 %v3831_v49 }
 0x47a   : > { %3538 = vmatpush3.bf16.msra.mxu1 %v3832_v50 }
 0x47b   : > { %3593 = vmatprep.subr.bf16.mxu1 %v3992_v17 }
 0x530   : > { %v1686_v26 = vpop.f32.mrb[8].mxu1 }
 0x531   : > { %v1687_v27 = vadd.f32 %v1686_v26, %v1637_v25  ;;  %v1688_v61 = vpop.f32.mrb[9].mxu1 }
 0x532   : > { %v1689_v12 = vadd.f32 %v1688_v61, %v1637_v25  ;;  %v1690_v38 = vpop.f32.mrb[10].mxu1 }
 0x533   : > { %v4493_v43 = vmax.f32 %v1687_v27, 0.0  ;;  %v1692_v40 = vpop.f32.mrb[11].mxu1  ;;  %v1691_v62 = vadd.f32 %v1690_v38, %v1642_v46 }
 0x534   : > { %v4495_v28 = vmax.f32 %v1689_v12, 0.0  ;;  %v1693_v33 = vadd.f32 %v1692_v40, %v1642_v46 }
 0x535   : > { %1703 = vrot.lane.b32.xlu0 %v4493_v43, %s5161_s11  ;;  %v4514_v31 = vmax.f32 %v1691_v62, 0.0 }
 0x536   : > { %1705 = vrot.lane.b32.xlu1 %v4495_v28, %s5161_s11  ;;  %v3763_v32 = vpack.i.bf16 %v4495_v28, %v4493_v43  ;;  %v4529_v36 = vmax.f32 %v1693_v33, 0.0 }
 0x537   : > { %v3773_v51 = vpack.i.bf16 %v4514_v31, %v4493_v43 }
 0x538   : > { %v3768_v39 = vpack.i.bf16 %v4529_v36, %v4514_v31  ;;  %v3778_v48 = vpack.i.bf16 %v4529_v36, %v4495_v28 }
 0x539   : > { %1747 = vrot.lane.b32.xlu0 %v4493_v43, %s5156_s23 }
 0x53a   : > { %1749 = vrot.lane.b32.xlu1 %v4495_v28, %s5156_s23 }
 0x53d   : > { %1771 = vrot.lane.b32.xlu0 %v4493_v43, %s5153_s2 }
 0x53e   : > { %1773 = vrot.lane.b32.xlu1 %v4495_v28, %s5153_s2 }
 0x541   : > { %1795 = vrot.lane.b32.xlu0 %v4493_v43, %s5090_s5 }
 0x542   : > { %1865 = vrot.lane.b32.xlu1 %v4495_v28, %s5158_s9 }
 0x545   : > { %1819 = vrot.lane.b32.xlu0 %v4493_v43, %s5162_s3 }
 0x546   : > { %1799 = vrot.lane.b32.xlu1 %v4514_v31, %s5090_s5 }
 0x549   : > { %3764 = vrot.lane.b32.xlu0 %v3763_v32, %s5154_s22 }
 0x54a   : > { %1823 = vrot.lane.b32.xlu1 %v4514_v31, %s5162_s3 }
 0x54d   : > { %1797 = vrot.lane.b32.xlu0 %v4495_v28, %s5090_s5 }
 0x54e   : > { %1709 = vrot.lane.b32.xlu1 %v4529_v36, %s5161_s11 }
 0x551   : > { %1821 = vrot.lane.b32.xlu0 %v4495_v28, %s5162_s3 }
 0x552   : > { %3769 = vrot.lane.b32.xlu1 %v3768_v39, %s5154_s22 }
 0x555   : > { %1707 = vrot.lane.b32.xlu0 %v4514_v31, %s5161_s11 }
 0x556   : > { %1753 = vrot.lane.b32.xlu1 %v4529_v36, %s5156_s23 }
 0x559   : > { %1751 = vrot.lane.b32.xlu0 %v4514_v31, %s5156_s23 }
 0x55a   : > { %1777 = vrot.lane.b32.xlu1 %v4529_v36, %s5153_s2 }
 0x55d   : > { %1775 = vrot.lane.b32.xlu0 %v4514_v31, %s5153_s2 }
 0x55e   : > { %1801 = vrot.lane.b32.xlu1 %v4529_v36, %s5090_s5  ;;  %s5095_s5 = smov 8  }
 0x561   : > { %3779 = vrot.lane.b32.xlu0 %v3778_v48, %s5157_s18 }
 0x562   : > { %1825 = vrot.lane.b32.xlu1 %v4529_v36, %s5162_s3 }
 0x565   : > { %1869 = vrot.lane.b32.xlu0 %v4529_v36, %s5158_s9 }
 0x566   : > { %3774 = vrot.lane.b32.xlu1 %v3773_v51, %s5157_s18 }
 0x569   : > { %1863 = vrot.lane.b32.xlu0 %v4493_v43, %s5158_s9 }
 0x56a   : > { %1867 = vrot.lane.b32.xlu1 %v4514_v31, %s5158_s9 }
 0x56d   : > { %2063 = vperm.xlu0 %3741, %v2060_v52  }
 0x5a7   : > { %v1704_v4 = vpop.permute.xlu0 %1703 }
 0x5a8   : > { %v1706_v53 = vpop.permute.xlu1 %1705  ;;  %v1717_v11 = vsel %vm1090_vm3, 0.0, %v1704_v4 }
 0x5a9   : > { %v1711_v10 = vsel %vm1090_vm3, %v1704_v4, %v1706_v53  ;;  %v1719_v22 = vmul.f32 %v4286_v20, %v1717_v11 }
 0x5aa   : > { %v1720_v16 = vmul.f32 %v4282_v18, %v1711_v10 }
 0x5ab   : > { %v1748_v54 = vpop.permute.xlu0 %1747  ;;  %v1723_v38 = vmax.f32 %v4493_v43, %v1719_v22 }
 0x5ac   : > { %v1750_v55 = vpop.permute.xlu1 %1749  ;;  %v1724_v26 = vmax.f32 %v4495_v28, %v1720_v16  ;;  %v1761_v40 = vsel %vm5103_vm5, 0.0, %v1748_v54 }
 0x5ad   : > { %v1755_v27 = vsel %vm5103_vm5, %v1748_v54, %v1750_v55  ;;  %v1763_v39 = vmul.f32 %v4290_v24, %v1761_v40 }
 0x5ae   : > { %v1764_v62 = vmul.f32 %v4296_v30, %v1755_v27 }
 0x5af   : > { %v1772_v56 = vpop.permute.xlu0 %1771 }
 0x5b0   : > { %v1774_v57 = vpop.permute.xlu1 %1773  ;;  %v1785_v29 = vsel %vm1120_vm2, 0.0, %v1772_v56 }
 0x5b1   : > { %v1779_v2 = vsel %vm1120_vm2, %v1772_v56, %v1774_v57  ;;  %v1787_v44 = vmul.f32 %v4286_v20, %v1785_v29 }
 0x5b2   : > { %v1788_v45 = vmul.f32 %v4282_v18, %v1779_v2 }
 0x5b3   : > { %v1796_v58 = vpop.permute.xlu0 %1795 }
 0x5b4   : > { %v4579_v59 = vpop.permute.xlu1 %1865 }
 0x5b7   : > { %v4581_v60 = vpop.permute.xlu0 %1819 }
 0x5b8   : > { %v4583_v3 = vpop.permute.xlu1 %1799 }
 0x5bb   : > { %v3765_v6 = vpop.permute.xlu0 %3764 }
 0x5bc   : > { %v4585_v7 = vpop.permute.xlu1 %1823  ;;  %v3767_v13 = vunpack.i.h.bf16 %v3765_v6  ;;  %v3766_v14 = vunpack.i.l.bf16 %v3765_v6 }
 0x5be   : > { %v1735_v23 = vsel %vm1101_vm7, %v3766_v14, %v3767_v13  ;;  %v1741_v61 = vsel %vm1101_vm7, 0.0, %v3766_v14 }
 0x5bf   : > { %v1798_v15 = vpop.permute.xlu0 %1797  ;;  %v1744_v46 = vmax.f32 %v1724_v26, %v1735_v23  ;;  %v1743_v32 = vmax.f32 %v1723_v38, %v1741_v61 }
 0x5c0   : > { %v1710_v21 = vpop.permute.xlu1 %1709  ;;  %v1809_v47 = vsel %vm5102_vm8, %v1798_v15, 0.0  ;;  %v1803_v13 = vsel %vm5102_vm8, %v1796_v58, %v1798_v15 }
 0x5c1   : > { %v1768_v63 = vmax.f32 %v1744_v46, %v1764_v62  ;;  %v1767_v19 = vmax.f32 %v1743_v32, %v1763_v39  ;;  %v1812_v14 = vmul.f32 %v4296_v30, %v1809_v47  ;;  %v1811_v15 = vmul.f32 %v4290_v24, %v1803_v13 }
 0x5c3   : > { %v1822_v25 = vpop.permute.xlu0 %1821  ;;  %v1792_v10 = vmax.f32 %v1768_v63, %v1788_v45  ;;  %v1791_v11 = vmax.f32 %v1767_v19, %v1787_v44  ;;  %v1877_v63 = vsel %vm5099_vm12, %v4579_v59, 0.0 }
 0x5c4   : > { %v3770_v12 = vpop.permute.xlu1 %3769  ;;  %v1833_v16 = vsel %vm5101_vm10, %v1822_v25, 0.0  ;;  %v1827_v2 = vsel %vm5101_vm10, %v4581_v60, %v1822_v25 }
 0x5c5   : > { %v3772_v33 = vunpack.i.h.bf16 %v3770_v12  ;;  %v3771_v34 = vunpack.i.l.bf16 %v3770_v12  ;;  %v1816_v46 = vmax.f32 %v1792_v10, %v1812_v14  ;;  %v1836_v62 = vmul.f32 %v4282_v18, %v1833_v16 }
 0x5c6   : > { %v1835_v44 = vmul.f32 %v4286_v20, %v1827_v2 }
 0x5c7   : > { %v1708_v1 = vpop.permute.xlu0 %1707  ;;  %v1736_v51 = vsel %vm1101_vm7, %v3771_v34, %v3772_v33  ;;  %v1742_v52 = vsel %vm1101_vm7, 0.0, %v3771_v34  ;;  %v1840_v45 = vmax.f32 %v1816_v46, %v1836_v62 }
 0x5c8   : > { %v1712_v35 = vsel %vm1090_vm3, %v1708_v1, %v1710_v21  ;;  %v1718_v0 = vsel %vm1090_vm3, 0.0, %v1708_v1  ;;  %v1754_v37 = vpop.permute.xlu1 %1753 }
 0x5c9   : > { %v1721_v41 = vmul.f32 %v4286_v20, %v1718_v0  ;;  %v1722_v42 = vmul.f32 %v4282_v18, %v1712_v35  ;;  %v1815_v35 = vmax.f32 %v1791_v11, %v1811_v15 }
 0x5cb   : > { %v1725_v48 = vmax.f32 %v4514_v31, %v1721_v41  ;;  %v1726_v49 = vmax.f32 %v4529_v36, %v1722_v42  ;;  %v1752_v50 = vpop.permute.xlu0 %1751 }
 0x5cc   : > { %v1756_v4 = vsel %vm5103_vm5, %v1752_v50, %v1754_v37  ;;  %v1762_v53 = vsel %vm5103_vm5, 0.0, %v1752_v50  ;;  %v1778_v54 = vpop.permute.xlu1 %1777 }
 0x5cd   : > { %v1745_v55 = vmax.f32 %v1725_v48, %v1742_v52  ;;  %v1746_v56 = vmax.f32 %v1726_v49, %v1736_v51  ;;  %v1765_v57 = vmul.f32 %v4290_v24, %v1762_v53  ;;  %v1766_v6 = vmul.f32 %v4296_v30, %v1756_v4 }
 0x5cf   : > { %v1776_v21 = vpop.permute.xlu0 %1775  ;;  %v1769_v22 = vmax.f32 %v1745_v55, %v1765_v57  ;;  %v1770_v23 = vmax.f32 %v1746_v56, %v1766_v6  ;;  %v1880_v55 = vmul.f32 %v4296_v30, %v1877_v63  ;;  %v1839_v56 = vmax.f32 %v1815_v35, %v1835_v44  ;;  %v2165_v44 = vld [vmem:[%s4072_s30 + $0x8] sm:$0xff] }
 0x5d0   : > { %v1780_v26 = vsel %vm1120_vm2, %v1776_v21, %v1778_v54  ;;  %v1786_v27 = vsel %vm1120_vm2, 0.0, %v1776_v21  ;;  %v1802_v61 = vpop.permute.xlu1 %1801 }
 0x5d1   : > { %v1789_v12 = vmul.f32 %v4286_v20, %v1786_v27  ;;  %v1790_v38 = vmul.f32 %v4282_v18, %v1780_v26  ;;  %v1804_v40 = vsel %vm5102_vm8, %v4583_v3, %v1802_v61  ;;  %v1810_v58 = vsel %vm5102_vm8, %v1802_v61, 0.0 }
 0x5d2   : > { %v1814_v29 = vmul.f32 %v4296_v30, %v1810_v58  ;;  %v1813_v33 = vmul.f32 %v4290_v24, %v1804_v40  ;;  %vm2147_vm8 = vcmask 457728  }
 0x5d3   : > { %v1793_v32 = vmax.f32 %v1769_v22, %v1789_v12  ;;  %v1794_v1 = vmax.f32 %v1770_v23, %v1790_v38  ;;  %v3780_v34 = vpop.permute.xlu0 %3779 }
 0x5d4   : > { %v3781_v0 = vunpack.i.l.bf16 %v3780_v34  ;;  %v1826_v3 = vpop.permute.xlu1 %1825  ;;  %v3782_v39 = vunpack.i.h.bf16 %v3780_v34 }
 0x5d5   : > { %v1818_v37 = vmax.f32 %v1794_v1, %v1814_v29  ;;  %v1828_v41 = vsel %vm5101_vm10, %v4585_v7, %v1826_v3  ;;  %v1834_v42 = vsel %vm5101_vm10, %v1826_v3, 0.0  ;;  %v1817_v19 = vmax.f32 %v1793_v32, %v1813_v33  ;;  %v2058_v33 = vld [vmem:[%s5164_s14] sm:$0xf]  ;;  %s5166_s14 = sld [smem:[#allocation17_spill]] }
 0x5d6   : > { %v1857_v60 = vsel %vm5100_vm11, %v3781_v0, 0.0  ;;  %v1838_v25 = vmul.f32 %v4282_v18, %v1834_v42  ;;  %v1837_v47 = vmul.f32 %v4286_v20, %v1828_v41  ;;  %v1858_v52 = vsel %vm5100_vm11, %v3782_v39, 0.0  ;;  %v3833_v42 = vld [vmem:[%s5143_s24] sm:$0xff]  }
 0x5d7   : > { %v1870_v48 = vpop.permute.xlu0 %1869  ;;  %v1860_v49 = vmax.f32 %v1840_v45, %v1857_v60  ;;  %v2164_v45 = vld [vmem:[%s4072_s30] sm:$0xff]  ;;  %v2167_v60 = vld [vmem:[%s4072_s30 + $0x18] sm:$0xff] }
 0x5d8   : > { %v1842_v50 = vmax.f32 %v1818_v37, %v1838_v25  ;;  %v1878_v7 = vsel %vm5099_vm12, %v1870_v48, 0.0  ;;  %v3775_v51 = vpop.permute.xlu1 %3774  ;;  %v1841_v6 = vmax.f32 %v1817_v19, %v1837_v47  ;;  %v2166_v25 = vld [vmem:[%s4072_s30 + $0x10] sm:$0xff]  ;;  %v1069_v19 = vand.u32 7, %v4277_v9 }
 0x5d9   : > { %v1882_v4 = vmul.f32 %v4296_v30, %v1878_v7  ;;  %v3777_v53 = vunpack.i.h.bf16 %v3775_v51  ;;  %v3776_v54 = vunpack.i.l.bf16 %v3775_v51  ;;  %v1884_v23 = vmax.f32 %v1860_v49, %v1880_v55 }
 0x5da   : > { %v1862_v57 = vmax.f32 %v1842_v50, %v1858_v52  ;;  %vm1077_vm4 = vcmp.ne.s32.totalorder %v1069_v19, 0  ;;  %vm1080_vm13 = vcmp.ne.s32.totalorder %v1069_v19, 7 }
 0x5db   : > { %v1851_v10 = vsel %vm5100_vm11, %v3776_v54, %v3781_v0  ;;  %v1852_v11 = vsel %vm5100_vm11, %v3777_v53, %v3782_v39  ;;  %v1864_v13 = vpop.permute.xlu0 %1863  ;;  %v2264_v63 = vld [vmem:[%s5166_s14] sm:$0xff]  ;;  %v4685_v47 = vsel %vm1077_vm4, 1.0, %v3992_v17  ;;  %v4691_v51 = vsel %vm1080_vm13, 1.0, %v3992_v17  ;;  %s5171_s14 = sld [smem:[#allocation16_spill]] }
 0x5dc   : > { %v1886_v14 = vmax.f32 %v1862_v57, %v1882_v4  ;;  %v1859_v16 = vmax.f32 %v1839_v56, %v1851_v10  ;;  %v1871_v21 = vsel %vm5099_vm12, %v1864_v13, %v4579_v59  ;;  %v1868_v22 = vpop.permute.xlu1 %1867  ;;  %v1861_v61 = vmax.f32 %v1841_v6, %v1852_v11 }
 0x5dd   : > { %v1879_v26 = vmul.f32 %v4290_v24, %v1871_v21  ;;  %v1872_v27 = vsel %vm5099_vm12, %v1868_v22, %v1870_v48  ;;  %vm2124_vm12 = vcmask 56320   ;;  %vm5104_vm11 = vmmov 1  }
 0x5de   : > { %v1881_v12 = vmul.f32 %v4290_v24, %v1872_v27  ;;  %v1888_v38 = vpack.c.bf16 %v1886_v14, %v1884_v23  ;;  %vm4694_vm10 = vmpackc.low %vm3468_vm14, %vm5104_vm11  ;;  %vm2141_vm4 = vcmask 465920   ;;  %vm2135_vm13 = vcmask 515072  }
 0x5df   : > { %v1883_v40 = vmax.f32 %v1859_v16, %v1879_v26  ;;  %vm2152_vm14 = vcmask 449536   ;;  %vm4714_vm5 = vmpackc.low %vm2147_vm8, %vm5104_vm11  ;;  %vm2270_vm11 = vcmask 261120  }
 0x5e0   : > { %v1885_v58 = vmax.f32 %v1861_v61, %v1881_v12  ;;  %2049 = vmatprep.mubr.bf16.mxu1 %v1888_v38 }
 0x5e2   : > { %v1887_v15 = vpack.c.bf16 %v1885_v58, %v1883_v40 }
 0x5e4   : > { %2050 = vmatmul.mubr.bf16.vlgmr.msra.gmra.mrb[12].mxu1 %v1887_v15  ;;  %v3834_v15 = vld [vmem:[%s5143_s24 + $0x8] sm:$0xff]   ;;  %s5178_s24 = smov 120  }
 0x5e5   : > { %3597 = vmatprep.mubr.msk.bf16.mxu1 %vm3993_vm0, %v3992_v17 }
 0x5ec   : > { %v2064_v34 = vpop.permute.xlu0 %2063 }
 0x6b7   : > { %v3539_v59 = vpop.f32.mrb[12].mxu1 }
 0x6b8   : > { %v3540_v46 = vpop.f32.mrb[13].mxu1 }
 0x6b9   : > { %v3541_v62 = vadd.f32 %v3540_v46, %v3539_v59  ;;  %v3542_v29 = vpop.f32.mrb[14].mxu1 }
 0x6ba   : > { %v3543_v2 = vpop.f32.mrb[15].mxu1 }
 0x6bb   : > { %v3544_v32 = vadd.f32 %v3543_v2, %v3542_v29 }
 0x6bd   : > { %v2059_v1 = vpack.c.bf16 %v3544_v32, %v3541_v62 }
 0x6bf   : > { %3574 = vmatpush3.bf16.msra.mxu0 %v2059_v1 }
 0x6c2   : > { %3576 = vmatmul.mubr.msk.bf16.vlgmr.msra.gmra.mrb[4].mxu0 %vm1101_vm7, %v2058_v33 }
 0x6c3   : > { %3589 = vmatprep.mubr.msk.bf16.mxu0 %vm2198_vm1, %v3833_v42 }
 0x795   : > { %v2103_v35 = vpop.f32.mrb[4].mxu0 }
 0x796   : > { %v2104_v0 = vadd.f32 %v2103_v35, %v2064_v34  ;;  %v3577_v3 = vpop.f32.mrb[5].mxu0 }
 0x797   : > { %v2106_v37 = vpop.f32.mrb[6].mxu0 }
 0x798   : > { %v4658_v39 = vmax.f32 %v2104_v0, 0.0  ;;  %v3578_v41 = vpop.f32.mrb[7].mxu0 }
 0x79a   : > { %2117 = vrot.lane.b32.xlu0 %v4658_v39, %s5095_s5  ;;  %2111 = vrot.lane.b32.xlu1 %v4658_v39, %s5097_s6  ;;  %s5165_s5 = smov 127   ;;  %s5108_s6 = smov 119  }
 0x79e   : > { %2127 = vrot.lane.b32.xlu0 %v4658_v39, %s5153_s2  ;;  %2121 = vrot.lane.b32.xlu1 %v4658_v39, %s5114_s8 }
 0x7a2   : > { %2138 = vrot.lane.b32.xlu0 %v4658_v39, %s5110_s13  ;;  %2132 = vrot.lane.b32.xlu1 %v4658_v39, %s5165_s5  ;;  %s5175_s13 = smov 9  }
 0x7a6   : > { %2149 = vrot.lane.b32.xlu0 %v4658_v39, %s5108_s6  ;;  %2144 = vrot.lane.b32.xlu1 %v4658_v39, %s5106_s17  ;;  %s5172_s17 = sld [smem:[#allocation18_spill]]  ;;  %s5173_s6 = sld [smem:[#allocation19_spill]] }
 0x7aa   : > { %2175 = vperm.xlu0 %3741, %v2165_v44   ;;  %2170 = vperm.xlu1 %3742, %v2164_v45  }
 0x7ae   : > { %2185 = vperm.xlu0 %3741, %v2167_v60   ;;  %2180 = vperm.xlu1 %3742, %v2166_v25   ;;  %v2261_v60 = vld [vmem:[%s5171_s14] sm:$0xf]  ;;  %s5174_s14 = smov 8  }
 0x7b2   : > { %2267 = vperm.xlu1 %3742, %v2264_v63  }
 0x80c   : > { %v2118_v48 = vpop.permute.xlu0 %2117  ;;  %v2112_v49 = vpop.permute.xlu1 %2111 }
 0x80d   : > { %v2115_v50 = vsel %vm2114_vm6, 0.0, %v2112_v49 }
 0x80e   : > { %v2116_v7 = vmul.f32 %v4685_v47, %v2115_v50 }
 0x810   : > { %v3470_v52 = vpack.c.bf16 %v2118_v48, %v2116_v7  ;;  %v2128_v4 = vpop.permute.xlu0 %2127  ;;  %v2122_v53 = vpop.permute.xlu1 %2121 }
 0x811   : > { %v2130_v54 = vsel %vm1120_vm2, 0.0, %v2128_v4  ;;  %v2125_v55 = vsel %vm2124_vm12, 0.0, %v2122_v53  ;;  %v2364_v4 = vld [vmem:[%s5173_s6 + $0x8] sm:$0xff]  ;;  %v2363_v53 = vld [vmem:[%s5173_s6] sm:$0xff] }
 0x812   : > { %v2131_v56 = vmul.f32 %v4685_v47, %v2130_v54  ;;  %v2126_v57 = vmul.f32 %v4691_v51, %v2125_v55  ;;  %3579 = vmatprep.subr.msk.bf16.mxu0 %vm4694_vm10, %v3470_v52  ;;  %v2366_v54 = vld [vmem:[%s5173_s6 + $0x18] sm:$0xff]  ;;  %v2365_v55 = vld [vmem:[%s5173_s6 + $0x10] sm:$0xff]  ;;  %s5179_s6 = sld [smem:[#allocation21_spill]] }
 0x813   : > { %3580 = vmatpush3.bf16.msk.msra.mxu0 %vm4694_vm10, %v3470_v52  ;;  %v3835_v52 = vld [vmem:[%s5172_s17] sm:$0xff]  }
 0x814   : > { %v2156_v6 = vpack.c.bf16 %v2131_v56, %v2126_v57  ;;  %v2139_v10 = vpop.permute.xlu0 %2138  ;;  %v2133_v11 = vpop.permute.xlu1 %2132 }
 0x815   : > { %v2142_v13 = vsel %vm2141_vm4, %v2139_v10, 0.0  ;;  %v2136_v14 = vsel %vm2135_vm13, %v2133_v11, 0.0 }
 0x816   : > { %v2143_v16 = vmul.f32 %v4685_v47, %v2142_v13  ;;  %v2137_v21 = vmul.f32 %v4691_v51, %v2136_v14  ;;  %3581 = vmatprep.subr.bf16.mxu0 %v2156_v6 }
 0x817   : > { %3582 = vmatpush3.bf16.msra.mxu0 %v2156_v6 }
 0x818   : > { %v2157_v22 = vpack.c.bf16 %v2137_v21, %v4658_v39  ;;  %v2150_v23 = vpop.permute.xlu0 %2149  ;;  %v2145_v26 = vpop.permute.xlu1 %2144 }
 0x819   : > { %v2153_v27 = vsel %vm2152_vm14, %v2150_v23, 0.0  ;;  %v3473_v61 = vpack.c.bf16 %v2145_v26, %v2143_v16 }
 0x81a   : > { %v2154_v38 = vmul.f32 %v4691_v51, %v2153_v27  ;;  %3583 = vmatprep.subr.bf16.mxu0 %v2157_v22 }
 0x81b   : > { %3584 = vmatpush3.bf16.msra.mxu0 %v2157_v22 }
 0x81c   : > { %3585 = vmatprep.subr.msk.bf16.mxu0 %vm4714_vm5, %v3473_v61  ;;  %v2159_v40 = vpack.c.bf16 %v2154_v38, %v2154_v38 }
 0x81e   : > { %v2206_v58 = vsel %vm1191_vm9, %v2159_v40, 0 }
 0x81f   : > { %3586 = vmatpush3.bf16.msk.msra.mxu0 %vm4714_vm5, %v3473_v61 }
 0x820   : > { %3637 = vmatprep.subr.msk.bf16.mxu0 %vm1191_vm9, %v2159_v40 }
 0x823   : > { %3588 = vmatpush3.bf16.msra.mxu0 %v2206_v58 }
 0x826   : > { %3590 = vmatmul.mubr.msk.bf16.vlgmr.msra.gmra.mrb[8].mxu0 %vm2198_vm1, %v3834_v15 }
 0x827   : > { %3611 = vmatprep.mubr.msk.bf16.mxu0 %vm2198_vm1, %v3835_v52  ;;  %v2652_v52 = vld [vmem:[%s5179_s6 + $0x8] sm:$0xff] }
 0x829   : > { %v2171_v59 = vpop.permute.xlu1 %2170  ;;  %v2176_v46 = vpop.permute.xlu0 %2175 }
 0x82d   : > { %v2181_v62 = vpop.permute.xlu1 %2180  ;;  %v2186_v1 = vpop.permute.xlu0 %2185 }
 0x831   : > { %v2268_v25 = vpop.permute.xlu1 %2267 }
 0x8f9   : > { %v3591_v29 = vpop.f32.mrb[8].mxu0 }
 0x8fa   : > { %v2251_v2 = vadd.f32 %v3591_v29, %v2181_v62  ;;  %v2242_v32 = vpop.f32.mrb[9].mxu0 }
 0x8fb   : > { %v2243_v33 = vadd.f32 %v2242_v32, %v2171_v59  ;;  %v3592_v34 = vpop.f32.mrb[10].mxu0 }
 0x8fc   : > { %v2254_v35 = vadd.f32 %v3592_v34, %v2186_v1  ;;  %v2245_v0 = vpop.f32.mrb[11].mxu0  ;;  %v2259_v37 = vmax.f32 %v2251_v2, 0.0 }
 0x8fd   : > { %v2246_v3 = vadd.f32 %v2245_v0, %v2176_v46  ;;  %v2257_v41 = vmax.f32 %v2243_v33, 0.0  ;;  %v3836_v33 = vld [vmem:[%s5172_s17 + $0x8] sm:$0xff]   ;;  %s5181_s17 = smov 7  }
 0x8fe   : > { %v2260_v39 = vmax.f32 %v2254_v35, 0.0 }
 0x8ff   : > { %v2258_v42 = vmax.f32 %v2246_v3, 0.0 }
 0x900   : > { %v2263_v44 = vpack.c.bf16 %v2260_v39, %v2259_v37 }
 0x901   : > { %v2262_v45 = vpack.c.bf16 %v2258_v42, %v2257_v41 }
 0x903   : > { %3594 = vmatpush3.bf16.msra.mxu1 %v2262_v45 }
 0x904   : > { %3595 = vmatprep.subr.bf16.mxu1 %v3992_v17 }
 0x907   : > { %3596 = vmatpush3.bf16.msra.mxu1 %v2263_v44 }
 0x908   : > { %3615 = vmatprep.subr.bf16.mxu1 %v3992_v17 }
 0x90a   : > { %3598 = vmatmul.mubr.msk.bf16.vlgmr.msra.gmra.mrb[16].mxu1 %vm2270_vm11, %v2261_v60 }
 0x90b   : > { %3619 = vmatprep.mubr.msk.bf16.mxu1 %vm3993_vm0, %v3992_v17 }
 0x9dd   : > { %v2308_v63 = vpop.f32.mrb[16].mxu1 }
 0x9de   : > { %v2309_v19 = vadd.f32 %v2308_v63, %v2268_v25  ;;  %v3599_v48 = vpop.f32.mrb[17].mxu1 }
 0x9df   : > { %v2311_v49 = vpop.f32.mrb[18].mxu1 }
 0x9e0   : > { %v2314_v50 = vmax.f32 %v2309_v19, 0.0  ;;  %v3600_v7 = vpop.f32.mrb[19].mxu1 }
 0x9e1   : > { %v2651_v7 = vld [vmem:[%s5179_s6] sm:$0xff] }
 0x9e2   : > { %2321 = vrot.lane.b32.xlu1 %v2314_v50, %s5174_s14  ;;  %2316 = vrot.lane.b32.xlu0 %v2314_v50, %s5175_s13 }
 0x9e6   : > { %2330 = vrot.lane.b32.xlu1 %v2314_v50, %s5153_s2  ;;  %2325 = vrot.lane.b32.xlu0 %v2314_v50, %s5114_s8 }
 0x9ea   : > { %2340 = vrot.lane.b32.xlu1 %v2314_v50, %s5176_s19  ;;  %2335 = vrot.lane.b32.xlu0 %v2314_v50, %s5165_s5 }
 0x9ee   : > { %2349 = vrot.lane.b32.xlu1 %v2314_v50, %s5177_s21  ;;  %2345 = vrot.lane.b32.xlu0 %v2314_v50, %s5178_s24 }
 0x9f2   : > { %2374 = vperm.xlu1 %3742, %v2364_v4   ;;  %2369 = vperm.xlu0 %3741, %v2363_v53  }
 0x9f6   : > { %2384 = vperm.xlu1 %3742, %v2366_v54   ;;  %2379 = vperm.xlu0 %3741, %v2365_v55  }
 0xa54   : > { %v2322_v56 = vpop.permute.xlu1 %2321  ;;  %v2317_v57 = vpop.permute.xlu0 %2316 }
 0xa55   : > { %v2319_v6 = vsel %vm2114_vm6, 0.0, %v2317_v57 }
 0xa56   : > { %v2320_v10 = vmul.f32 %v4685_v47, %v2319_v6 }
 0xa58   : > { %v3482_v11 = vpack.c.bf16 %v2322_v56, %v2320_v10  ;;  %v2331_v13 = vpop.permute.xlu1 %2330  ;;  %v2326_v14 = vpop.permute.xlu0 %2325 }
 0xa59   : > { %v2333_v16 = vsel %vm1120_vm2, 0.0, %v2331_v13  ;;  %v2328_v21 = vsel %vm2124_vm12, 0.0, %v2326_v14 }
 0xa5a   : > { %v2334_v22 = vmul.f32 %v4685_v47, %v2333_v16  ;;  %v2329_v23 = vmul.f32 %v4691_v51, %v2328_v21  ;;  %3601 = vmatprep.subr.msk.bf16.mxu0 %vm4694_vm10, %v3482_v11 }
 0xa5b   : > { %3602 = vmatpush3.bf16.msk.msra.mxu0 %vm4694_vm10, %v3482_v11  ;;  %vm5190_vm10 = vcmask 121856  }
 0xa5c   : > { %v2355_v26 = vpack.c.bf16 %v2334_v22, %v2329_v23  ;;  %v2341_v27 = vpop.permute.xlu1 %2340  ;;  %v2336_v61 = vpop.permute.xlu0 %2335 }
 0xa5d   : > { %v2343_v38 = vsel %vm2141_vm4, %v2341_v27, 0.0  ;;  %v2338_v40 = vsel %vm2135_vm13, %v2336_v61, 0.0 }
 0xa5e   : > { %v2344_v58 = vmul.f32 %v4685_v47, %v2343_v38  ;;  %v2339_v15 = vmul.f32 %v4691_v51, %v2338_v40  ;;  %3603 = vmatprep.subr.bf16.mxu0 %v2355_v26 }
 0xa5f   : > { %3604 = vmatpush3.bf16.msra.mxu0 %v2355_v26 }
 0xa60   : > { %v2356_v59 = vpack.c.bf16 %v2339_v15, %v2314_v50  ;;  %v2350_v46 = vpop.permute.xlu1 %2349  ;;  %v2346_v62 = vpop.permute.xlu0 %2345 }
 0xa61   : > { %v2352_v9 = vsel %vm2152_vm14, %v2350_v46, 0.0  ;;  %v3485_v29 = vpack.c.bf16 %v2346_v62, %v2344_v58 }
 0xa62   : > { %v2353_v2 = vmul.f32 %v4691_v51, %v2352_v9  ;;  %3605 = vmatprep.subr.bf16.mxu0 %v2356_v59 }
 0xa63   : > { %3606 = vmatpush3.bf16.msra.mxu0 %v2356_v59 }
 0xa64   : > { %3607 = vmatprep.subr.msk.bf16.mxu0 %vm4714_vm5, %v3485_v29  ;;  %v2358_v32 = vpack.c.bf16 %v2353_v2, %v2353_v2 }
 0xa66   : > { %v2404_v1 = vsel %vm1191_vm9, %v2358_v32, 0 }
 0xa67   : > { %3608 = vmatpush3.bf16.msk.msra.mxu0 %vm4714_vm5, %v3485_v29  ;;  %vm2836_vm5 = vcmask 523264  }
 0xa68   : > { %3638 = vmatprep.subr.msk.bf16.mxu0 %vm1191_vm9, %v2358_v32 }
 0xa6b   : > { %3610 = vmatpush3.bf16.msra.mxu0 %v2404_v1 }
 0xa6c   : > { %3629 = vmatprep.subr.bf16.mxu0 %v3992_v17 }
 0xa6e   : > { %3612 = vmatmul.mubr.msk.bf16.vlgmr.msra.gmra.mrb[12].mxu0 %vm2198_vm1, %v3836_v33 }
 0xa6f   : > { %3633 = vmatprep.mubr.msk.bf16.mxu0 %vm3993_vm0, %v3992_v17 }
 0xa71   : > { %v2370_v34 = vpop.permute.xlu0 %2369  ;;  %v2375_v3 = vpop.permute.xlu1 %2374 }
 0xa75   : > { %v2380_v35 = vpop.permute.xlu0 %2379  ;;  %v2385_v60 = vpop.permute.xlu1 %2384 }
 0xb41   : > { %v3613_v0 = vpop.f32.mrb[12].mxu0 }
 0xb42   : > { %v2449_v37 = vadd.f32 %v3613_v0, %v2380_v35  ;;  %v2440_v12 = vpop.f32.mrb[13].mxu0 }
 0xb43   : > { %v2441_v39 = vadd.f32 %v2440_v12, %v2370_v34  ;;  %v3614_v41 = vpop.f32.mrb[14].mxu0 }
 0xb44   : > { %v4774_v42 = vmax.f32 %v2449_v37, 0.0  ;;  %v2443_v44 = vpop.f32.mrb[15].mxu0  ;;  %v2452_v25 = vadd.f32 %v3614_v41, %v2385_v60 }
 0xb45   : > { %v4776_v45 = vmax.f32 %v2441_v39, 0.0  ;;  %v2444_v48 = vadd.f32 %v2443_v44, %v2375_v3 }
 0xb46   : > { %2467 = vrot.lane.b32.xlu0 %v4774_v42, %s5175_s13  ;;  %v4786_v63 = vmax.f32 %v2452_v25, 0.0 }
 0xb47   : > { %2507 = vrot.lane.b32.xlu1 %v4776_v45, %s5114_s8  ;;  %v4809_v49 = vmax.f32 %v2444_v48, 0.0 }
 0xb48   : > { %v3783_v19 = vpack.i.bf16 %v4786_v63, %v4774_v42 }
 0xb49   : > { %v3788_v50 = vpack.i.bf16 %v4809_v49, %v4776_v45 }
 0xb4a   : > { %2511 = vrot.lane.b32.xlu0 %v4774_v42, %s5114_s8 }
 0xb4b   : > { %2531 = vrot.lane.b32.xlu1 %v4776_v45, %s5153_s2 }
 0xb4e   : > { %2535 = vrot.lane.b32.xlu0 %v4774_v42, %s5153_s2 }
 0xb4f   : > { %2469 = vrot.lane.b32.xlu1 %v4786_v63, %s5175_s13 }
 0xb52   : > { %2559 = vrot.lane.b32.xlu0 %v4774_v42, %s5165_s5 }
 0xb53   : > { %3784 = vrot.lane.b32.xlu1 %v3783_v19, %s5174_s14 }
 0xb56   : > { %2583 = vrot.lane.b32.xlu0 %v4774_v42, %s5176_s19 }
 0xb57   : > { %2513 = vrot.lane.b32.xlu1 %v4786_v63, %s5114_s8  ;;  %s5180_s8 = sld [smem:[#allocation23_spill]] }
 0xb5a   : > { %2463 = vrot.lane.b32.xlu0 %v4776_v45, %s5175_s13 }
 0xb5b   : > { %2537 = vrot.lane.b32.xlu1 %v4786_v63, %s5153_s2 }
 0xb5d   : > { %v2719_v4 = vld [vmem:[%s5180_s8] sm:$0xff]  ;;  %v2720_v53 = vld [vmem:[%s5180_s8 + $0x8] sm:$0xff]  ;;  %v2721_v54 = vld [vmem:[%s5180_s8 + $0x10] sm:$0xff] }
 0xb5e   : > { %2555 = vrot.lane.b32.xlu0 %v4776_v45, %s5165_s5  ;;  %v2722_v55 = vld [vmem:[%s5180_s8 + $0x18] sm:$0xff] }
 0xb5f   : > { %2561 = vrot.lane.b32.xlu1 %v4786_v63, %s5165_s5 }
 0xb62   : > { %2579 = vrot.lane.b32.xlu0 %v4776_v45, %s5176_s19 }
 0xb63   : > { %2585 = vrot.lane.b32.xlu1 %v4786_v63, %s5176_s19 }
 0xb66   : > { %3789 = vrot.lane.b32.xlu0 %v3788_v50, %s5174_s14  ;;  %s3519_s14 = sshll.u32 %s4198_s0, 4 }
 0xb67   : > { %2465 = vrot.lane.b32.xlu1 %v4809_v49, %s5175_s13  ;;  %s5182_s13 = sld [smem:[#allocation25_spill]] }
 0xb6a   : > { %2509 = vrot.lane.b32.xlu0 %v4809_v49, %s5181_s17  ;;  %s5183_s17 = sld [smem:[#allocation20_spill]] }
 0xb6b   : > { %2623 = vrot.lane.b32.xlu1 %v4776_v45, %s5177_s21 }
 0xb6d   : > { %v2883_v56 = vld [vmem:[%s5182_s13] sm:$0xff] }
 0xb6e   : > { %2533 = vrot.lane.b32.xlu0 %v4809_v49, %s5153_s2 }
 0xb6f   : > { %2557 = vrot.lane.b32.xlu1 %v4809_v49, %s5165_s5 }
 0xb72   : > { %3799 = vrot.lane.b32.xlu0 %v3788_v50, %s5178_s24 }
 0xb73   : > { %2581 = vrot.lane.b32.xlu1 %v4809_v49, %s5176_s19  ;;  %s5185_s19 = sld [smem:[#allocation24_spill]] }
 0xb76   : > { %2625 = vrot.lane.b32.xlu0 %v4809_v49, %s5177_s21 }
 0xb77   : > { %3794 = vrot.lane.b32.xlu1 %v3783_v19, %s5178_s24  ;;  %s5186_s24 = sld [smem:[#allocation27_spill]] }
 0xb7a   : > { %2627 = vrot.lane.b32.xlu0 %v4774_v42, %s5177_s21 }
 0xb7b   : > { %2629 = vrot.lane.b32.xlu1 %v4786_v63, %s5177_s21  ;;  %s5184_s21 = sld [smem:[#allocation22_spill]] }
 0xb7e   : > { %2655 = vperm.xlu0 %3741, %v2651_v7  }
 0xb7f   : > { %2660 = vperm.xlu1 %3742, %v2652_v52  }
 0xb82   : > { %2725 = vperm.xlu0 %3741, %v2719_v4  }
 0xb83   : > { %2730 = vperm.xlu1 %3742, %v2720_v53  }
 0xb86   : > { %2735 = vperm.xlu0 %3741, %v2721_v54  }
 0xb87   : > { %2740 = vperm.xlu1 %3742, %v2722_v55  }
 0xb8a   : > { %2886 = vperm.xlu0 %3741, %v2883_v56  }
 0xbb8   : > { %v2468_v57 = vpop.permute.xlu0 %2467 }
 0xbb9   : > { %v2508_v6 = vpop.permute.xlu1 %2507  ;;  %v2477_v61 = vsel %vm2114_vm6, 0.0, %v2468_v57 }
 0xbba   : > { %v2481_v15 = vmul.f32 %v4685_v47, %v2477_v61  ;;  %v2519_v1 = vsel %vm2124_vm12, 0.0, %v2508_v6 }
 0xbbb   : > { %v2523_v41 = vmul.f32 %v4691_v51, %v2519_v1 }
 0xbbc   : > { %v2512_v10 = vpop.permute.xlu0 %2511  ;;  %v2485_v32 = vmax.f32 %v4774_v42, %v2481_v15 }
 0xbbd   : > { %v2532_v11 = vpop.permute.xlu1 %2531  ;;  %v2521_v33 = vsel %vm2124_vm12, 0.0, %v2512_v10 }
 0xbbe   : > { %v2543_v34 = vsel %vm1120_vm2, 0.0, %v2532_v11  ;;  %v2525_v19 = vmul.f32 %v4691_v51, %v2521_v33 }
 0xbbf   : > { %v2547_v48 = vmul.f32 %v4685_v47, %v2543_v34 }
 0xbc0   : > { %v2536_v13 = vpop.permute.xlu0 %2535 }
 0xbc1   : > { %v2470_v14 = vpop.permute.xlu1 %2469  ;;  %v2545_v52 = vsel %vm1120_vm2, 0.0, %v2536_v13 }
 0xbc2   : > { %v2478_v62 = vsel %vm2114_vm6, 0.0, %v2470_v14  ;;  %v2549_v61 = vmul.f32 %v4685_v47, %v2545_v52 }
 0xbc3   : > { %v2482_v35 = vmul.f32 %v4685_v47, %v2478_v62 }
 0xbc4   : > { %v2560_v16 = vpop.permute.xlu0 %2559 }
 0xbc5   : > { %v3785_v21 = vpop.permute.xlu1 %3784  ;;  %v2486_v4 = vmax.f32 %v4786_v63, %v2482_v35 }
 0xbc6   : > { %v3786_v58 = vunpack.i.l.bf16 %v3785_v21  ;;  %v3787_v0 = vunpack.i.h.bf16 %v3785_v21 }
 0xbc8   : > { %v4845_v22 = vpop.permute.xlu0 %2583  ;;  %v2501_v29 = vsel %vm1547_vm15, 0.0, %v3786_v58  ;;  %v2502_v53 = vsel %vm1547_vm15, 0.0, %v3787_v0  ;;  %v2569_v58 = vsel %vm2135_vm13, %v2560_v16, 0.0 }
 0xbc9   : > { %v2514_v23 = vpop.permute.xlu1 %2513  ;;  %v2505_v37 = vmax.f32 %v2485_v32, %v2501_v29 }
 0xbca   : > { %v2522_v57 = vsel %vm2124_vm12, 0.0, %v2514_v23 }
 0xbcb   : > { %v2529_v56 = vmax.f32 %v2505_v37, %v2525_v19  ;;  %v2526_v23 = vmul.f32 %v4691_v51, %v2522_v57 }
 0xbcc   : > { %v2464_v26 = vpop.permute.xlu0 %2463 }
 0xbcd   : > { %v2538_v27 = vpop.permute.xlu1 %2537  ;;  %v2475_v59 = vsel %vm2114_vm6, 0.0, %v2464_v26  ;;  %v2553_v32 = vmax.f32 %v2529_v56, %v2549_v61 }
 0xbce   : > { %v2479_v2 = vmul.f32 %v4685_v47, %v2475_v59  ;;  %v2506_v59 = vmax.f32 %v2486_v4, %v2502_v53  ;;  %v2546_v62 = vsel %vm1120_vm2, 0.0, %v2538_v27 }
 0xbcf   : > { %v2550_v37 = vmul.f32 %v4685_v47, %v2546_v62 }
 0xbd0   : > { %v2556_v38 = vpop.permute.xlu0 %2555  ;;  %v2483_v44 = vmax.f32 %v4776_v45, %v2479_v2 }
 0xbd1   : > { %v2562_v40 = vpop.permute.xlu1 %2561  ;;  %v2567_v14 = vsel %vm2135_vm13, %v2556_v38, 0.0 }
 0xbd2   : > { %v2571_v38 = vmul.f32 %v4691_v51, %v2567_v14  ;;  %v2570_v35 = vsel %vm2135_vm13, %v2562_v40, 0.0 }
 0xbd3   : > { %v2574_v40 = vmul.f32 %v4691_v51, %v2570_v35 }
 0xbd4   : > { %v2580_v46 = vpop.permute.xlu0 %2579 }
 0xbd5   : > { %v2586_v9 = vpop.permute.xlu1 %2585  ;;  %v2591_v0 = vsel %vm2141_vm4, %v2580_v46, 0.0 }
 0xbd6   : > { %v2595_v46 = vmul.f32 %v4685_v47, %v2591_v0  ;;  %v2594_v19 = vsel %vm2141_vm4, %v2586_v9, 0.0 }
 0xbd8   : > { %v3790_v3 = vpop.permute.xlu0 %3789 }
 0xbd9   : > { %v3791_v12 = vunpack.i.l.bf16 %v3790_v3  ;;  %v2466_v39 = vpop.permute.xlu1 %2465  ;;  %v3792_v60 = vunpack.i.h.bf16 %v3790_v3 }
 0xbda   : > { %v2476_v25 = vsel %vm2114_vm6, 0.0, %v2466_v39  ;;  %v2573_v39 = vmul.f32 %v4691_v51, %v2569_v58  ;;  %vm5197_vm6 = vcmask 916480  }
 0xbdb   : > { %v2499_v50 = vsel %vm1547_vm15, 0.0, %v3791_v12  ;;  %v2480_v7 = vmul.f32 %v4685_v47, %v2476_v25  ;;  %v2500_v21 = vsel %vm1547_vm15, 0.0, %v3792_v60 }
 0xbdc   : > { %v2503_v54 = vmax.f32 %v2483_v44, %v2499_v50  ;;  %v2510_v55 = vpop.permute.xlu0 %2509  ;;  %v2530_v44 = vmax.f32 %v2506_v59, %v2526_v23 }
 0xbdd   : > { %v2484_v6 = vmax.f32 %v4809_v49, %v2480_v7  ;;  %v2520_v10 = vsel %vm2124_vm12, 0.0, %v2510_v55  ;;  %v2624_v11 = vpop.permute.xlu1 %2623  ;;  %v2577_v7 = vmax.f32 %v2553_v32, %v2573_v39  ;;  %vm5192_vm12 = vmmov 1  }
 0xbde   : > { %v2527_v26 = vmax.f32 %v2503_v54, %v2523_v41  ;;  %v2524_v13 = vmul.f32 %v4691_v51, %v2520_v10  ;;  %v2593_v41 = vsel %vm2141_vm4, %v4845_v22, 0.0  ;;  %v2554_v54 = vmax.f32 %v2530_v44, %v2550_v37 }
 0xbdf   : > { %v2504_v15 = vmax.f32 %v2484_v6, %v2500_v21  ;;  %v2597_v57 = vmul.f32 %v4685_v47, %v2593_v41  ;;  %v2598_v6 = vmul.f32 %v4685_v47, %v2594_v19  ;;  %v2635_v10 = vsel %vm2152_vm14, %v2624_v11, 0.0 }
 0xbe0   : > { %v2551_v29 = vmax.f32 %v2527_v26, %v2547_v48  ;;  %v2534_v2 = vpop.permute.xlu0 %2533  ;;  %v2578_v14 = vmax.f32 %v2554_v54, %v2574_v40 }
 0xbe1   : > { %v2528_v1 = vmax.f32 %v2504_v15, %v2524_v13  ;;  %v2544_v33 = vsel %vm1120_vm2, 0.0, %v2534_v2  ;;  %v2558_v34 = vpop.permute.xlu1 %2557  ;;  %v2601_v62 = vmax.f32 %v2577_v7, %v2597_v57  ;;  %v3845_v57 = vld [vmem:[%s4165_s12 + $0x14] ss:$8 sps:$4 sm:$0xff]  }
 0xbe2   : > { %v2548_v16 = vmul.f32 %v4685_v47, %v2544_v33  ;;  %v2568_v3 = vsel %vm2135_vm13, %v2558_v34, 0.0  ;;  %v2575_v12 = vmax.f32 %v2551_v29, %v2571_v38  ;;  %v2639_v29 = vmul.f32 %v4691_v51, %v2635_v10  ;;  %v3848_v10 = vld [vmem:[%s4165_s12 + $0x24] ss:$8 sps:$4 sm:$0xff]   ;;  %vm5198_vm13 = vmmov %vm5197_vm6 }
 0xbe3   : > { %v2572_v27 = vmul.f32 %v4691_v51, %v2568_v3 }
 0xbe4   : > { %v2552_v60 = vmax.f32 %v2528_v1, %v2548_v16  ;;  %v3800_v25 = vpop.permute.xlu0 %3799  ;;  %v2599_v55 = vmax.f32 %v2575_v12, %v2595_v46 }
 0xbe5   : > { %v3801_v48 = vunpack.i.l.bf16 %v3800_v25  ;;  %v2582_v50 = vpop.permute.xlu1 %2581  ;;  %v3802_v4 = vunpack.i.h.bf16 %v3800_v25  ;;  %v3838_v25 = vld [vmem:[%s5184_s21] sm:$0xff]  }
 0xbe6   : > { %v2576_v52 = vmax.f32 %v2552_v60, %v2572_v27  ;;  %v2592_v53 = vsel %vm2141_vm4, %v2582_v50, 0.0  ;;  %v3837_v60 = vld [vmem:[%s5183_s17] sm:$0xff]   ;;  %vm3514_vm4 = vmpackc.low %vm5197_vm6, %vm5192_vm12  ;;  %s5018_s17 = scalar_lea.hbm %s4175_s4, %s3519_s14 }
 0xbe7   : > { %v2615_v22 = vsel %vm2147_vm8, %v3801_v48, 0.0  ;;  %v2596_v56 = vmul.f32 %v4685_v47, %v2592_v53  ;;  %v2616_v58 = vsel %vm2147_vm8, %v3802_v4, 0.0  ;;  %v2602_v47 = vmax.f32 %v2578_v14, %v2598_v6  ;;  %v3843_v6 = vld [vmem:[%s4165_s12 + $0x10] ss:$8 sps:$4 sm:$0xff]  }
 0xbe8   : > { %v2626_v9 = vpop.permute.xlu0 %2625  ;;  %v2619_v21 = vmax.f32 %v2599_v55, %v2615_v22  ;;  %v3839_v55 = vld [vmem:[%s5184_s21 + $0x8] sm:$0xff]  }
 0xbe9   : > { %v2600_v26 = vmax.f32 %v2576_v52, %v2596_v56  ;;  %v2636_v13 = vsel %vm2152_vm14, %v2626_v9, 0.0  ;;  %v3795_v61 = vpop.permute.xlu1 %3794  ;;  %v3840_v22 = vld [vmem:[%s4165_s12] ss:$8 sps:$4 sm:$0xff]   ;;  %v3842_v56 = vld [vmem:[%s4165_s12 + $0x4] ss:$8 sps:$4 sm:$0xff]  }
 0xbea   : > { %v2640_v15 = vmul.f32 %v4691_v51, %v2636_v13  ;;  %v3797_v59 = vunpack.i.h.bf16 %v3795_v61  ;;  %v3796_v23 = vunpack.i.l.bf16 %v3795_v61  ;;  %v2643_v1 = vmax.f32 %v2619_v21, %v2639_v29  ;;  %v3846_v9 = vld [vmem:[%s4165_s12 + $0x20] ss:$8 sps:$4 sm:$0xff]  }
 0xbeb   : > { %v2620_v2 = vmax.f32 %v2600_v26, %v2616_v58 }
 0xbec   : > { %v2618_v11 = vsel %vm2147_vm8, %v3797_v59, 0.0  ;;  %v2617_v32 = vsel %vm2147_vm8, %v3796_v23, 0.0  ;;  %v2628_v38 = vpop.permute.xlu0 %2627  ;;  %vm3510_vm8 = vmneg %vm1101_vm7 }
 0xbed   : > { %v2644_v33 = vmax.f32 %v2620_v2, %v2640_v15  ;;  %v2621_v34 = vmax.f32 %v2601_v62, %v2617_v32  ;;  %v2637_v35 = vsel %vm2152_vm14, %v2628_v38, 0.0  ;;  %v2630_v0 = vpop.permute.xlu1 %2629  ;;  %v2622_v27 = vmax.f32 %v2602_v47, %v2618_v11  ;;  %vm3511_vm15 = vmpackc.low %vm3510_vm8, %vm5192_vm12 }
 0xbee   : > { %v2641_v16 = vmul.f32 %v4691_v51, %v2637_v35  ;;  %v2638_v3 = vsel %vm2152_vm14, %v2630_v0, 0.0  ;;  %vm5200_vm14 = vcmask 908288   ;;  %vm2862_vm8 = vcmask 31744  }
 0xbef   : > { %v2649_v37 = vpack.c.bf16 %v2644_v33, %v2643_v1  ;;  %v2642_v12 = vmul.f32 %v4691_v51, %v2638_v3 }
 0xbf0   : > { %v2645_v39 = vmax.f32 %v2621_v34, %v2641_v16 }
 0xbf1   : > { %v2646_v41 = vmax.f32 %v2622_v27, %v2642_v12  ;;  %3616 = vmatpush3.bf16.msra.mxu1 %v2649_v37 }
 0xbf2   : > { %3617 = vmatprep.subr.bf16.mxu1 %v3992_v17 }
 0xbf3   : > { %v2650_v44 = vpack.c.bf16 %v2646_v41, %v2645_v39 }
 0xbf5   : > { %3618 = vmatpush3.bf16.msra.mxu1 %v2650_v44 }
 0xbf8   : > { %3620 = vmatmul.mubr.msk.bf16.vlgmr.msra.gmra.mrb[20].mxu1 %vm2270_vm11, %v3837_v60 }
 0xbf9   : > { %3625 = vmatprep.mubr.msk.bf16.mxu1 %vm1101_vm7, %v3838_v25 }
 0xbfd   : > { %v2656_v40 = vpop.permute.xlu0 %2655 }
 0xbfe   : > { %v2661_v48 = vpop.permute.xlu1 %2660 }
 0xc01   : > { %v2726_v14 = vpop.permute.xlu0 %2725 }
 0xc02   : > { %v2731_v21 = vpop.permute.xlu1 %2730 }
 0xc05   : > { %v2736_v26 = vpop.permute.xlu0 %2735 }
 0xc06   : > { %v2741_v15 = vpop.permute.xlu1 %2740 }
 0xccb   : > { %v2705_v46 = vpop.f32.mrb[20].mxu1 }
 0xccc   : > { %v2706_v19 = vadd.f32 %v2705_v46, %v2656_v40  ;;  %v3621_v51 = vpop.f32.mrb[21].mxu1 }
 0xccd   : > { %v2708_v50 = vpop.f32.mrb[22].mxu1  ;;  %v2880_v51 = vld [vmem:[%s5185_s19] sm:$0xf] }
 0xcce   : > { %v2709_v7 = vadd.f32 %v2708_v50, %v2661_v48  ;;  %v3622_v52 = vpop.f32.mrb[23].mxu1  ;;  %v2712_v4 = vmax.f32 %v2706_v19, 0.0  ;;  %v3851_v48 = vld [vmem:[%s4165_s12 + $0x34] ss:$8 sps:$4 sm:$0xff]   ;;  %v3849_v50 = vld [vmem:[%s4165_s12 + $0x30] ss:$8 sps:$4 sm:$0xff]  }
 0xcd0   : > { %v2713_v53 = vmax.f32 %v2709_v7, 0.0 }
 0xcd2   : > { %v2718_v54 = vpack.c.bf16 %v2713_v53, %v2712_v4 }
 0xcd4   : > { %3623 = vmatprep.subr.bf16.mxu1 %v2718_v54 }
 0xcd5   : > { %3624 = vmatpush3.bf16.msra.mxu1 %v2718_v54 }
 0xcd6   : > { %2985 = vmatprep.subr.bf16.mxu1 %v3842_v56 }
 0xcd8   : > { %3626 = vmatmul.mubr.msk.bf16.vlgmr.msra.gmra.mrb[24].mxu1 %vm1101_vm7, %v3839_v55 }
 0xcd9   : > { %3017 = vmatprep.mubr.bf16.mxu1 %v3990_v5  ;;  %2986 = vmatpush1.bf16.msra.mxu1 %v3840_v22 }
 0xcda   : > { %2987 = vmatprep.subr.bf16.mxu1 %v3845_v57 }
 0xcdd   : > { %2988 = vmatpush1.bf16.msra.mxu1 %v3843_v6 }
 0xcde   : > { %2989 = vmatprep.subr.bf16.mxu1 %v3848_v10 }
 0xce1   : > { %2990 = vmatpush1.bf16.msra.mxu1 %v3846_v9  ;;  %v3116_v9 = vld [vmem:[%s5186_s24] sm:$0xff] }
 0xce2   : > { %2991 = vmatprep.subr.bf16.mxu1 %v3851_v48 }
 0xce5   : > { %2992 = vmatpush1.bf16.msra.mxu1 %v3849_v50 }
 0xdab   : > { %v3627_v13 = vpop.f32.mrb[24].mxu1 }
 0xdac   : > { %v2802_v61 = vadd.f32 %v3627_v13, %v2736_v26  ;;  %v2793_v58 = vpop.f32.mrb[25].mxu1  ;;  %v3256_v13 = vld [vmem:[#allocation2] sm:$0x1] }
 0xdad   : > { %v2794_v59 = vadd.f32 %v2793_v58, %v2726_v14  ;;  %v3628_v23 = vpop.f32.mrb[26].mxu1  ;;  %v3117_v14 = vld [vmem:[%s5186_s24 + $0x8] sm:$0xff] }
 0xdae   : > { %v3497_v62 = vmul.f32 -1.442695, %v2802_v61  ;;  %v2805_v29 = vadd.f32 %v3628_v23, %v2741_v15  ;;  %v2796_v2 = vpop.f32.mrb[27].mxu1 }
 0xdaf   : > { %v3495_v47 = vmul.f32 -1.442695, %v2794_v59  ;;  %v2797_v11 = vadd.f32 %v2796_v2, %v2731_v21 }
 0xdb0   : > { %3869 = vpow2.f32 %v3497_v62  ;;  %v3498_v32 = vmul.f32 -1.442695, %v2805_v29 }
 0xdb1   : > { %3871 = vpow2.f32 %v3495_v47  ;;  %v3496_v38 = vmul.f32 -1.442695, %v2797_v11 }
 0xdb2   : > { %3873 = vpow2.f32 %v3498_v32 }
 0xdb3   : > { %3875 = vpow2.f32 %v3496_v38 }
 0xdba   : > { %v3870_v1 = vpop.eup %3869 }
 0xdbb   : > { %v3872_v33 = vpop.eup %3871  ;;  %v2822_v34 = vadd.f32 1.0, %v3870_v1 }
 0xdbc   : > { %v3874_v35 = vpop.eup %3873  ;;  %v2820_v0 = vadd.f32 1.0, %v3872_v33 }
 0xdbd   : > { %v3876_v16 = vpop.eup %3875  ;;  %3877 = vrcp.f32 %v2822_v34  ;;  %v2823_v3 = vadd.f32 1.0, %v3874_v35 }
 0xdbe   : > { %3879 = vrcp.f32 %v2820_v0  ;;  %v2821_v37 = vadd.f32 1.0, %v3876_v16 }
 0xdbf   : > { %3881 = vrcp.f32 %v2823_v3 }
 0xdc0   : > { %3883 = vrcp.f32 %v2821_v37 }
 0xdc7   : > { %v3878_v27 = vpop.eup %3877 }
 0xdc8   : > { %v3880_v12 = vpop.eup %3879  ;;  %v2834_v44 = vmul.f32 %v3878_v27, %v4774_v42  ;;  %v2887_v42 = vpop.permute.xlu0 %2886 }
 0xdc9   : > { %v3882_v39 = vpop.eup %3881  ;;  %v2832_v25 = vmul.f32 %v3880_v12, %v4776_v45 }
 0xdca   : > { %v3884_v41 = vpop.eup %3883  ;;  %v2835_v60 = vmul.f32 %v3882_v39, %v4786_v63  ;;  %v2843_v10 = vsel %vm2836_vm5, %v2834_v44, 0.0 }
 0xdcb   : > { %v2833_v40 = vmul.f32 %v3884_v41, %v4809_v49  ;;  %v2837_v6 = vsel %vm2836_vm5, %v2832_v25, 0.0 }
 0xdcc   : > { %v2882_v46 = vpack.c.bf16 %v2835_v60, %v2834_v44  ;;  %v2846_v57 = vsel %vm2836_vm5, %v2835_v60, 0.0 }
 0xdcd   : > { %v2881_v19 = vpack.c.bf16 %v2833_v40, %v2832_v25  ;;  %v2840_v56 = vsel %vm2836_vm5, %v2833_v40, 0.0 }
 0xdcf   : > { %3630 = vmatpush3.bf16.msra.mxu0 %v2881_v19 }
 0xdd0   : > { %3631 = vmatprep.subr.bf16.mxu0 %v3992_v17 }
 0xdd3   : > { %3632 = vmatpush3.bf16.msra.mxu0 %v2882_v46 }
 0xdd6   : > { %3634 = vmatmul.mubr.msk.bf16.vlgmr.msra.gmra.mrb[16].mxu0 %vm2270_vm11, %v2880_v51  ;;  %vm5191_vm11 = vmmov %vm5190_vm10 }
 0xdd7   : > { %3174 = vmatprep.mubr.bf16.mxu0 %v3990_v5 }
 0xea9   : > { %v2926_v63 = vpop.f32.mrb[16].mxu0 }
 0xeaa   : > { %v2927_v45 = vadd.f32 %v2926_v63, %v2887_v42  ;;  %v3635_v7 = vpop.f32.mrb[17].mxu0 }
 0xeab   : > { %v2929_v49 = vpop.f32.mrb[18].mxu0 }
 0xeac   : > { %v2932_v52 = vmax.f32 %v2927_v45, 0.0  ;;  %v3636_v4 = vpop.f32.mrb[19].mxu0 }
 0xeae   : > { %v2933_v53 = vpack.c.bf16 %v2932_v52, %v2932_v52 }
 0xeb0   : > { %3508 = vmatmul.mubr.msk.bf16.vlgmr.msra.gmra.mrb[28].mxu1 %vm2836_vm5, %v2933_v53  ;;  %vm5202_vm5 = vmmov %vm5200_vm14 }
 0xf83   : > { %v4933_v17 = vpop.f32.mrb[28].mxu1 }
 0xf84   : > { %3046 = vrot.lane.b32.xlu0 %v4933_v17, %s5156_s23  ;;  %3028 = vrot.lane.b32.xlu1 %v4933_v17, %s5161_s11  ;;  %v4939_v5 = vpop.f32.mrb[29].mxu1 }
 0xf85   : > { %v3023_v54 = vpop.f32.mrb[30].mxu1  ;;  %v3803_v55 = vpack.i.bf16 %v4939_v5, %v4933_v17 }
 0xf86   : > { %v3024_v22 = vpop.f32.mrb[31].mxu1 }
 0xf88   : > { %3056 = vrot.lane.b32.xlu0 %v4933_v17, %s5153_s2  ;;  %3804 = vrot.lane.b32.xlu1 %v3803_v55, %s5154_s22  ;;  %s5187_s22 = sld [smem:[#allocation28_spill]] }
 0xf8c   : > { %3048 = vrot.lane.b32.xlu1 %v4939_v5, %s5156_s23  ;;  %3030 = vrot.lane.b32.xlu0 %v4939_v5, %s5161_s11  ;;  %s5188_s11 = sld [smem:[#allocation29_spill]] }
 0xf8e   : > { %v3193_v21 = vld [vmem:[%s5187_s22] sm:$0xf] }
 0xf90   : > { %3058 = vrot.lane.b32.xlu1 %v4939_v5, %s5153_s2  ;;  %3068 = vrot.lane.b32.xlu0 %v4939_v5, %s5165_s5 }
 0xf92   : > { %s5189_s23 = smov %s5188_s11  ;;  %v3224_v26 = vld [vmem:[%s5188_s11] sm:$0xff]  ;;  %s4001_s11 = smov [#allocation3]  }
 0xf93   : > { %v3225_v61 = vld [vmem:[%s5189_s23 + $0x8] sm:$0xff] }
 0xf94   : > { %3066 = vrot.lane.b32.xlu1 %v4933_v17, %s5165_s5  ;;  %3078 = vrot.lane.b32.xlu0 %v4939_v5, %s5162_s3  ;;  %s5199_s5 = sld [smem:[#allocation26_spill]] }
 0xf98   : > { %3076 = vrot.lane.b32.xlu1 %v4933_v17, %s5162_s3  ;;  %3809 = vrot.lane.b32.xlu0 %v3803_v55, %s5157_s18  ;;  %s5203_s3 = sld [smem:[#allocation31_spill]]  ;;  %s1014_s18 = sand.u32 1, %s3940_s7  }
 0xf99   : > { %s1015_s2 = scalar_lea.vmem [#allocation3], %s1014_s18  ;;  %s3296_s19 = scalar_lea.sflag [#allocation4], %s1014_s18 }
 0xf9a   : > { %s3311_s13 = sshll.u32 %s1015_s2, 4  ;;  %s3312_s13 = int_to_ptr.vmem [resolvable:$true] %s3311_s13 }
 0xf9b   : > { %s3886_s22 = scalar_lea.vmem %s3312_s13, 16 }
 0xf9c   : > { %3094 = vrot.lane.b32.xlu1 %v4933_v17, %s5158_s9  ;;  %3096 = vrot.lane.b32.xlu0 %v4939_v5, %s5158_s9  ;;  %s5201_s9 = sld [smem:[#allocation30_spill]]  ;;  %p3887_p11 = scmp.ne.s32.totalorder %s3312_s13, %s3886_s22 }
 0xf9e   : > { %p3888_p12 = pnand %p3887_p11, %p4215_p5 }
 0xfa0   : > { %p3889_p13 = pneg %p3888_p12 }
 0xfbb   : > { %2841 = vadd.xlane.f32.xlu0 %v2840_v56 }
 0xfbf   : > { %2847 = vadd.xlane.f32.xlu0 %v2846_v57 }
 0xfc0   : > { %2838 = vadd.xlane.f32.xlu1 %v2837_v6 }
 0xfc4   : > { %2844 = vadd.xlane.f32.xlu1 %v2843_v10 }
 0xfd5   : > { %3120 = vperm.xlu0 %3741, %v3116_v9   ;;  %3125 = vperm.xlu1 %3742, %v3117_v14  }
 0xfd9   : > { %3196 = vperm.xlu0 %3741, %v3193_v21   ;;  %3228 = vperm.xlu1 %3742, %v3224_v26  }
 0xfdd   : > { %3259 = vperm.xlu0 %3741, %v3256_v13   ;;  %3233 = vperm.xlu1 %3742, %v3225_v61   ;;  %v3852_v13 = vld [vmem:[%s5199_s5] sm:$0xff]   ;;  %s3890_s5 = sshll.u32 %s4001_s11, 4  ;;  %s3891_s5 = int_to_ptr.vmem [resolvable:$false] %s3890_s5 }
 0xfde   : > { %p3893_p0 = scmp.lt.s32.totalorder %s3312_s13, %s3891_s5 }
 0xff6   : > { %v3047_v58 = vpop.permute.xlu0 %3046  ;;  %v3029_v15 = vpop.permute.xlu1 %3028 }
 0xff7   : > { %v3035_v2 = vsel %vm1090_vm3, 0.0, %v3029_v15  ;;  %v3053_v0 = vsel %vm5191_vm11, 0.0, %v3047_v58 }
 0xff8   : > { %v3036_v33 = vmul.f32 %v4286_v20, %v3035_v2  ;;  %v3054_v40 = vmul.f32 %v4290_v24, %v3053_v0 }
 0xffa   : > { %v3057_v59 = vpop.permute.xlu0 %3056  ;;  %v3805_v23 = vpop.permute.xlu1 %3804 }
 0xffb   : > { %v3807_v62 = vunpack.i.h.bf16 %v3805_v23  ;;  %v3806_v29 = vunpack.i.l.bf16 %v3805_v23  ;;  %v3063_v38 = vsel %vm1120_vm2, 0.0, %v3057_v59 }
 0xffc   : > { %v3064_v27 = vmul.f32 %v4286_v20, %v3063_v38 }
 0xffd   : > { %v3042_v35 = vsel %vm1101_vm7, %v3806_v29, %v3807_v62  ;;  %v3512_v12 = vpack.c.bf16 %v3806_v29, %v3036_v33 }
 0xffe   : > { %v3049_v47 = vpop.permute.xlu1 %3048  ;;  %v3031_v11 = vpop.permute.xlu0 %3030  ;;  %v3106_v48 = vpack.c.bf16 %v3064_v27, %v3054_v40 }
 0xfff   : > { %v3032_v32 = vsel %vm1090_vm3, %v3029_v15, %v3031_v11  ;;  %v3050_v34 = vsel %vm5190_vm10, %v3047_v58, %v3049_v47  ;;  %vm5193_vm3 = vcmask 1039360   ;;  %v2855_v15 = vld [vmem:[%s5201_s9 + $0x8] sm:$0xff]  ;;  %v2857_v47 = vld [vmem:[%s5201_s9 + $0x18] sm:$0xff]  ;;  %v2856_v11 = vld [vmem:[%s5201_s9 + $0x10] sm:$0xff] }
0x1000   : > { %v3037_v1 = vmul.f32 %v4282_v18, %v3032_v32  ;;  %v3055_v44 = vmul.f32 %v4296_v30, %v3050_v34  ;;  %vm5194_vm7 = vmmov %vm5193_vm3 }
0x1002   : > { %v3059_v16 = vpop.permute.xlu1 %3058  ;;  %v3069_v3 = vpop.permute.xlu0 %3068  ;;  %v3105_v37 = vpack.c.bf16 %v3042_v35, %v3037_v1 }
0x1003   : > { %v3060_v39 = vsel %vm1120_vm2, %v3057_v59, %v3059_v16  ;;  %v3073_v41 = vsel %vm5193_vm3, %v3069_v3, 0.0  ;;  %vm5195_vm2 = vcmask 924672  }
0x1004   : > { %v3065_v60 = vmul.f32 %v4282_v18, %v3060_v39  ;;  %v3075_v25 = vmul.f32 %v4296_v30, %v3073_v41  ;;  %3142 = vmatprep.subr.bf16.mxu0 %v3105_v37  ;;  %vm5196_vm0 = vmmov %vm5195_vm2 }
0x1005   : > { %3513 = vmatpush1.bf16.msk.msra.mxu0 %vm3511_vm15, %v3512_v12 }
0x1006   : > { %v3067_v46 = vpop.permute.xlu1 %3066  ;;  %v3079_v19 = vpop.permute.xlu0 %3078  ;;  %v3107_v51 = vpack.c.bf16 %v3065_v60, %v3055_v44  ;;  %v3109_v45 = vpack.c.bf16 %v3075_v25, %v4939_v5  ;;  %v2876_v25 = vld [vmem:[%s5203_s3] sm:$0x1]  ;;  %s3892_s3 = scalar_lea.vmem %s3891_s5, 32 }
0x1007   : > { %v3070_v50 = vsel %vm5194_vm7, %v3067_v46, %v3069_v3  ;;  %v3083_v63 = vsel %vm5195_vm2, %v3079_v19, 0.0  ;;  %p3894_p1 = scmp.lt.s32.totalorder %s3892_s3, %s3886_s22 }
0x1008   : > { %v3074_v42 = vmul.f32 %v4290_v24, %v3070_v50  ;;  %3144 = vmatprep.subr.bf16.mxu0 %v3107_v51  ;;  %v3085_v4 = vmul.f32 %v4282_v18, %v3083_v63 }
0x1009   : > { %3145 = vmatpush1.bf16.msra.mxu0 %v3106_v48  ;;  %p3895_p2 = por %p3894_p1, %p3893_p0 }
0x100a   : > { %v3108_v7 = vpack.c.bf16 %v3074_v42, %v4933_v17  ;;  %v3077_v49 = vpop.permute.xlu1 %3076  ;;  %3146 = vmatprep.subr.bf16.mxu0 %v3109_v45  ;;  %v3810_v52 = vpop.permute.xlu0 %3809 }
0x100b   : > { %v3080_v53 = vsel %vm5196_vm0, %v3077_v49, %v3079_v19  ;;  %v3812_v54 = vunpack.i.h.bf16 %v3810_v52  ;;  %v3811_v55 = vunpack.i.l.bf16 %v3810_v52  ;;  %p3896_p3 = pnand %p3895_p2, %p3889_p13 }
0x100c   : > { %v3084_v22 = vmul.f32 %v4286_v20, %v3080_v53 }
0x100d   : > { %v3515_v56 = vpack.c.bf16 %v3812_v54, %v3085_v4  ;;  %v3090_v5 = vsel %vm5198_vm13, %v3811_v55, %v3812_v54  ;;  %3147 = vmatpush1.bf16.msra.mxu0 %v3108_v7 }
0x100e   : > { %v3110_v17 = vpack.c.bf16 %v3090_v5, %v3084_v22  ;;  %v3095_v57 = vpop.permute.xlu1 %3094  ;;  %v3097_v6 = vpop.permute.xlu0 %3096 }
0x100f   : > { %v3098_v18 = vsel %vm5200_vm14, %v3095_v57, %v3097_v6  ;;  %v3101_v10 = vsel %vm5202_vm5, %v3097_v6, 0.0  ;;  %3516 = vmatprep.subr.msk.bf16.mxu0 %vm3514_vm4, %v3515_v56 }
0x1010   : > { %v3102_v20 = vmul.f32 %v4290_v24, %v3098_v18  ;;  %v3103_v9 = vmul.f32 %v4296_v30, %v3101_v10  ;;  %v2854_v24 = vld [vmem:[%s5201_s9] sm:$0xff] }
0x1011   : > { %3149 = vmatpush1.bf16.msra.mxu0 %v3110_v17 }
0x1012   : > { %v3112_v14 = vpack.c.bf16 %v3102_v20, %v3102_v20  ;;  %v3113_v21 = vpack.c.bf16 %v3103_v9, %v3103_v9 }
0x1014   : > { %3517 = vmatprep.subr.msk.bf16.mxu0 %vm1191_vm9, %v3113_v21  ;;  %v3137_v26 = vsel %vm1191_vm9, %v3112_v14, 0 }
0x1015   : > { %3151 = vmatpush1.bf16.msra.mxu0 %v3137_v26 }
0x1018   : > { %3518 = vmatmul.mubr.msk.bf16.vlgmr.msra.gmra.mrb[20].mxu0 %vm2198_vm1, %v3852_v13  ;;  %vm2878_vm1 = vcmask 24576  }
0x1048   : > { %v2842_v61 = vpop.xlane.xlu0 %2841 }
0x1049   : > { %v2851_v58 = vmul.f32 0.015625, %v2842_v61 }
0x104b   : > { %v2859_v62 = vmul.f32 %v2855_v15, %v2851_v58 }
0x104c   : > { %v2848_v59 = vpop.xlane.xlu0 %2847 }
0x104d   : > { %v2839_v23 = vpop.xlane.xlu1 %2838  ;;  %v2853_v29 = vmul.f32 0.015625, %v2848_v59  ;;  %v2864_v33 = vsel %vm2862_vm8, %v2859_v62, 0.0 }
0x104e   : > { %v2850_v30 = vmul.f32 0.015625, %v2839_v23 }
0x104f   : > { %v2861_v34 = vmul.f32 %v2857_v47, %v2853_v29 }
0x1050   : > { %v2858_v2 = vmul.f32 %v2854_v24, %v2850_v30 }
0x1051   : > { %v2845_v32 = vpop.xlane.xlu1 %2844  ;;  %v2868_v37 = vsel %vm2862_vm8, %v2861_v34, 0.0 }
0x1052   : > { %v2863_v38 = vsel %vm2862_vm8, %v2858_v2, 0.0  ;;  %v2852_v1 = vmul.f32 0.015625, %v2845_v32 }
0x1053   : > { %v2865_v0 = vadd.f32 %v2864_v33, %v2863_v38 }
0x1054   : > { %v2860_v35 = vmul.f32 %v2856_v11, %v2852_v1 }
0x1056   : > { %v2866_v16 = vsel %vm2862_vm8, %v2860_v35, 0.0 }
0x1057   : > { %v2867_v3 = vadd.f32 %v2866_v16, %v2865_v0 }
0x1059   : > { %v2869_v27 = vadd.f32 %v2868_v37, %v2867_v3 }
0x105b   : > { %v2870_v12 = vrot.slane %v2869_v27, 4 }
0x105d   : > { %v2871_v39 = vadd.f32 %v2870_v12, %v2869_v27 }
0x105f   : > { %v2872_v41 = vrot.slane %v2871_v39, 2 }
0x1061   : > { %v2873_v44 = vadd.f32 %v2872_v41, %v2871_v39 }
0x1063   : > { %v2874_v60 = vrot.slane %v2873_v44, 1 }
0x1065   : > { %v2875_v40 = vadd.f32 %v2874_v60, %v2873_v44 }
0x1067   : > { %v2877_v46 = vadd.f32 %v2876_v25, %v2875_v40 }
0x1069   : > { %2879 = vst.msk [vmem:[%s1015_s2] sm:$0x1] %vm2878_vm1, %v2877_v46 }
0x106a   : > { %3899 = shalt.err (!%p3896_p3)
}
0x106b   : > { %s3900_s0 = scalar_lea.hbm %s5018_s17, 16  ;;  %s3904_s18 = scalar_lea.hbm %s4175_s4, 32 }
0x106c   : > { %p3901_p4 = scmp.ne.s32.totalorder %s5018_s17, %s3900_s0  ;;  %p3905_p9 = scmp.lt.u32.totalorder %s5018_s17, %s4175_s4 }
0x106d   : > { %p3906_p10 = scmp.lt.u32.totalorder %s3904_s18, %s3900_s0  ;;  %p3908_p12 = scmp.lt.u32.totalorder %s3900_s0, %s5018_s17 }
0x106e   : > { %p3902_p7 = pnand %p3901_p4, %p4215_p5 }
0x106f   : > { %p3907_p11 = por %p3906_p10, %p3905_p9 }
0x1070   : > { %p3903_p8 = pneg %p3902_p7 }
0x1071   : > { %p3909_p0 = por %p3908_p12, %p3907_p11 }
0x1073   : > { %p3910_p13 = pnand %p3909_p0, %p3903_p8 }
0x1075   : > { %3913 = shalt.err (!%p3910_p13)
}
0x1076   : > { %3639 = dma.vmem_to_hbm [thread:$0]  (%p4215_p5), %s3312_s13, 16, %s5018_s17, %s3296_s19   ;;  %v4002_v19 = vmov 839922192   ;;  %v3121_v48 = vpop.permute.xlu0 %3120  ;;  %v5034_v42 = vshrl.u32 %v1026_v8, 7  ;;  %v3885_v49 = vld [vmem:[%s4231_s20] sm:$0xff]  ;;  %v3126_v4 = vpop.permute.xlu1 %3125 }
0x1077   : > { %v3199_v51 = vunpack.c.l.s4 %v4002_v19  ;;  %v4003_v12 = vmov 1966171168   ;;  %s3429_s26 = sshll.u32 %s4227_s28, 1 }
0x1078   : > { %v3264_v44 = vsub.s32 0, %v5034_v42  ;;  %s1024_s20 = scalar_lea.vmem %s4170_s27, %s3429_s26 }
0x1079   : > { %v3200_v50 = vunpack.c.0.s8 %v3199_v51 }
0x107a   : > { %v3197_v45 = vpop.permute.xlu0 %3196  ;;  %v3229_v17 = vpop.permute.xlu1 %3228 }
0x107b   : > { %v3203_v63 = vsub.s32 %v3200_v50, %v5034_v42 }
0x107d   : > { %v3204_v7 = vrot.slane %v3197_v45, %v3203_v63 }
0x107e   : > { %v3234_v30 = vpop.permute.xlu1 %3233  ;;  %v3260_v25 = vpop.permute.xlu0 %3259 }
0x107f   : > { %v3206_v52 = vmul.f32 %v3885_v49, %v3204_v7  ;;  %v3265_v63 = vrot.slane %v3260_v25, %v3264_v44 }
0x1081   : > { %v3208_v53 = vcombine.high %v3206_v52, %v3206_v52  ;;  %v3210_v54 = vsel %vm1191_vm9, %v3206_v52, 0.0 }
0x1082   : > { %v3211_v18 = vrot.slane %v3210_v54, 4 }
0x1083   : > { %v3217_v22 = vsel %vm1191_vm9, %v3208_v53, 0.0  ;;  %vm3288_vm9 = vcmp.lt.s32.totalorder %v1026_v8, 256 }
0x1084   : > { %v3218_v14 = vrot.slane %v3217_v22, 4  ;;  %v3212_v59 = vadd.f32 %v3211_v18, %v3210_v54 }
0x1086   : > { %v3219_v23 = vadd.f32 %v3218_v14, %v3217_v22  ;;  %v3213_v32 = vrot.slane %v3212_v59, 2 }
0x1088   : > { %v3220_v1 = vrot.slane %v3219_v23, 2  ;;  %v3214_v35 = vadd.f32 %v3213_v32, %v3212_v59 }
0x108a   : > { %v3221_v0 = vadd.f32 %v3220_v1, %v3219_v23  ;;  %v3215_v37 = vrot.slane %v3214_v35, 1 }
0x108c   : > { %v3222_v39 = vrot.slane %v3221_v0, 1  ;;  %v3216_v46 = vadd.f32 %v3215_v37, %v3214_v35 }
0x10eb   : > { %v3176_v55 = vpop.f32.mrb[20].mxu0 }
0x10ec   : > { %v3177_v56 = vadd.f32 %v3176_v55, %v3121_v48  ;;  %v3178_v5 = vpop.f32.mrb[21].mxu0 }
0x10ed   : > { %v3179_v57 = vadd.f32 %v3178_v5, %v3121_v48  ;;  %v3180_v6 = vpop.f32.mrb[22].mxu0  ;;  %v3223_v48 = vadd.f32 %v3222_v39, %v3221_v0 }
0x10ee   : > { %v3185_v10 = vmax.f32 %v3177_v56, 0.0  ;;  %v3181_v20 = vadd.f32 %v3180_v6, %v3126_v4  ;;  %v3182_v9 = vpop.f32.mrb[23].mxu0 }
0x10ef   : > { %v3186_v21 = vmax.f32 %v3179_v57, 0.0  ;;  %v3183_v26 = vadd.f32 %v3182_v9, %v3126_v4 }
0x10f0   : > { %v3189_v13 = vadd.f32 %v3185_v10, %v4493_v43  ;;  %v3187_v61 = vmax.f32 %v3181_v20, 0.0 }
0x10f1   : > { %v3190_v58 = vadd.f32 %v3186_v21, %v4495_v28  ;;  %v3188_v15 = vmax.f32 %v3183_v26, 0.0 }
0x10f2   : > { %v3191_v24 = vadd.f32 %v3187_v61, %v4514_v31  ;;  %v3236_v29 = vmul.f32 %v3229_v17, %v3189_v13 }
0x10f3   : > { %v3192_v62 = vadd.f32 %v3188_v15, %v4529_v36  ;;  %v3237_v47 = vmul.f32 %v3229_v17, %v3190_v58  ;;  %v3272_v36 = vunpack.c.l.s4 %v4003_v12 }
0x10f4   : > { %v3238_v2 = vmul.f32 %v3234_v30, %v3191_v24 }
0x10f5   : > { %v3239_v11 = vmul.f32 %v3234_v30, %v3192_v62  ;;  %v3273_v51 = vunpack.c.0.s8 %v3272_v36 }
0x10f6   : > { %v3240_v38 = vadd.f32 %v3238_v2, %v3236_v29 }
0x10f7   : > { %v3247_v33 = vadd.f32 %v3239_v11, %v3237_v47  ;;  %v3276_v52 = vsub.s32 %v3273_v51, %v5034_v42 }
0x10f8   : > { %v3241_v43 = vrot.slane %v3240_v38, 4 }
0x10f9   : > { %v3248_v34 = vrot.slane %v3247_v33, 4 }
0x10fa   : > { %v3242_v28 = vadd.f32 %v3241_v43, %v3240_v38 }
0x10fb   : > { %v3249_v16 = vadd.f32 %v3248_v34, %v3247_v33 }
0x10fc   : > { %v3243_v3 = vrot.slane %v3242_v28, 2 }
0x10fd   : > { %v3250_v31 = vrot.slane %v3249_v16, 2 }
0x10fe   : > { %v3244_v27 = vadd.f32 %v3243_v3, %v3242_v28 }
0x10ff   : > { %v3251_v41 = vadd.f32 %v3250_v31, %v3249_v16 }
0x1100   : > { %v3245_v60 = vrot.slane %v3244_v27, 1 }
0x1101   : > { %v3252_v40 = vrot.slane %v3251_v41, 1 }
0x1102   : > { %v3246_v19 = vadd.f32 %v3245_v60, %v3244_v27 }
0x1103   : > { %v3253_v50 = vadd.f32 %v3252_v40, %v3251_v41 }
0x1104   : > { %v3254_v45 = vadd.f32 %v3246_v19, %v3216_v46 }
0x1105   : > { %v3255_v7 = vadd.f32 %v3253_v50, %v3223_v48 }
0x1106   : > { %v3266_v49 = vadd.f32 %v3265_v63, %v3254_v45 }
0x1107   : > { %v3267_v4 = vadd.f32 %v3265_v63, %v3255_v7 }
0x1109   : > { %v3270_v53 = vcombine.low %v3266_v49, %v3267_v4 }
0x110b   : > { %v3277_v54 = vrot.slane %v3270_v53, %v3276_v52 }
0x110d   : > { %v3284_v55 = vrot.slane %v3277_v54, %v3276_v52 }
0x110f   : > { %3290 = vst.msk [vmem:[%s1024_s20] sm:$0x3] %vm3288_vm9, %v3284_v55 }
0x1110 PF: > { %p3645_p5 = scmp.ge.s32.totalorder %s3948_s16, 2  ;;  %s3330_s2 = sand.u32 1, %s3936_s10  }
0x1111   : > { %s3331_s14 = scalar_lea.sflag [#allocation4], %s3330_s2 }
0x1112   : > { %p3642_p1 = pnand %p3645_p5, %p4219_p6 }
0x1114   : > { %3931 = dma.done.wait (!%p3642_p1), %s3331_s14, 16  }
0x1115   : > { %3933 = vsyncadd (!%p3642_p1), %s3331_s14, 4294967280  ;;  %s5204_s28 = sld [smem:[#allocation33_spill]]  ;;  %s5205_s11 = sld [smem:[#allocation34_spill]] }
0x1116   : > { %p80_p2 = scmp.ge.s32.totalorder %s4202_s15, 4   ;;  %s5206_s10 = smov %s3940_s7 }
0x1117   : > { %s5208_s16 = smov %s4202_s15 }
0x1118   :  { %82 = sbr.rel (!%p80_p2) target bundleno = 72 (0x48), region = 228 }
0x111b   : > { %s5207_s7 = smov %s5204_s28 }
0x111f   :  { %3335 = vsyncpa [#allocation4], 1 }
0x1120   :  { %3337 = vsyncpa [#allocation4 + $0x1], 1 }

</bundles_post_ra>
